<compile_context>
chip_gen: v7x
topology: tpu7x:2x2x1
jax: 0.10.0
libtpu: 0.0.40
codegen_flags: <defaults>
</compile_context>

<pallas_src>
import functools
import math

import jax
import jax.numpy as jnp
from jax.experimental import pallas as pl
from jax.experimental.pallas import tpu as pltpu

BN_EPS = 1e-5
BN_SCALE = 1.0 / math.sqrt(1.0 + BN_EPS)
DTYPE = jnp.bfloat16                 # matmul-operand / activation dtype
VMEM_LIMIT = 32 * 1024 * 1024        # explicit scoped-VMEM limit (safe on v5e/v6e/v7x)


def _mosaic_params(*sem):
    return pltpu.CompilerParams(dimension_semantics=sem,
                                vmem_limit_bytes=VMEM_LIMIT)


def _pick_tile(m, cap, min_grid=2):
    """Largest tile <= cap that divides m and keeps the sublane dim a multiple
    of 8 (or the full dim).  Prefers a tile giving >= min_grid grid steps so the
    two v7x TensorCores both get work.  Falls back to the full dim (always a
    legal block) for awkward m."""
    cap = max(1, min(cap, m))
    best = None
    for t in range(cap, 0, -1):
        if m % t:
            continue
        if t != m and t % 8:
            continue
        if best is None:
            best = t
        if m // t >= min_grid:
            return t
    return best if best is not None else m


def _edge_tile(n, k, cin, c_scr, budget=20 << 20):
    """VMEM-budget-derived row tile for the edge-conv style kernels."""
    per_row = (2 * k * cin * 2      # neighbor block, bf16, double-buffered
               + 2 * cin * 2        # center block
               + k * c_scr * 4      # f32 scratch (single-buffered)
               + 4 * c_scr * 4)     # output block + live-value headroom
    cap = max(8, min(512, budget // max(per_row, 1)))
    return _pick_tile(n, cap)


def _pool_tile(n, cin, cout, budget=16 << 20):
    # keep the (tn, cout) f32 intermediate small (spill control for cout=1024)
    cap = max(64, min(512, (512 * 1024) // (cout * 4)))
    cap = min(cap, max(8, budget // (2 * cin * 2 + 2 * cout * 4)))
    return _pick_tile(n, cap)


# ----------------------------------------------------------------------------
# Kernel 1: edge conv = one big (k*tm, cin)@(cin, cout) MXU matmul per tile +
# center-weight matmul + LeakyReLU + max over the k neighbors.
# Neighbor rows are neighbor-major: scratch slice y_scr[j] is contiguous.
# ----------------------------------------------------------------------------
def _edgeconv_kernel(nbr_ref, ctr_ref, wd_ref, wc_ref, o_ref, y_scr, *, k, slope):
    _, tm, cin = ctr_ref.shape
    cout = o_ref.shape[-1]
    nbr = nbr_ref[0].reshape(k * tm, cin)                     # neighbor-major rows
    y_scr[...] = jnp.dot(nbr, wd_ref[...],
                         preferred_element_type=jnp.float32).reshape(k, tm, cout)
    yc = jnp.dot(ctr_ref[0], wc_ref[...], preferred_element_type=jnp.float32)
    acc = None
    for j in range(k):                                        # contiguous slices
        yj = y_scr[j] + yc
        yj = jnp.where(yj >= 0, yj, slope * yj)
        acc = yj if acc is None else jnp.maximum(acc, yj)
    o_ref[0] = acc.astype(o_ref.dtype)


def edgeconv_max(nbr, ctr, wd, wc, k, slope):
    # nbr: (B, k, N, cin) bf16, ctr: (B, N, cin) bf16 -> (B, N, cout) bf16
    b, _, n, cin = nbr.shape
    cout = wd.shape[1]
    tm = _edge_tile(n, k, cin, cout)
    return pl.pallas_call(
        functools.partial(_edgeconv_kernel, k=k, slope=slope),
        out_shape=jax.ShapeDtypeStruct((b, n, cout), DTYPE),
        grid=(b, n // tm),
        in_specs=[pl.BlockSpec((1, k, tm, cin), lambda bi, ni: (bi, 0, ni, 0)),
                  pl.BlockSpec((1, tm, cin), lambda bi, ni: (bi, ni, 0)),
                  pl.BlockSpec((cin, cout), lambda bi, ni: (0, 0)),
                  pl.BlockSpec((cin, cout), lambda bi, ni: (0, 0))],
        out_specs=pl.BlockSpec((1, tm, cout), lambda bi, ni: (bi, ni, 0)),
        scratch_shapes=[pltpu.VMEM((k, tm, cout), jnp.float32)],
        compiler_params=_mosaic_params("parallel", "parallel"),
    )(nbr, ctr, wd, wc)


# ----------------------------------------------------------------------------
# Kernel 2: Transform_Net head = conv1(6->64)+bn+lrelu, conv2(64->128)+bn+lrelu,
# max over k — fused into one kernel (center weight folded, no repeated center).
# ----------------------------------------------------------------------------
def _tnet_head_kernel(nbr_ref, ctr_ref, w1n_ref, w1c_ref, w2_ref, o_ref, h_scr,
                      *, k, slope):
    _, tm, cin = ctr_ref.shape
    c_mid = w1n_ref.shape[1]
    nbr = nbr_ref[0].reshape(k * tm, cin)
    h_scr[...] = jnp.dot(nbr, w1n_ref[...],
                         preferred_element_type=jnp.float32).reshape(k, tm, c_mid)
    yc1 = jnp.dot(ctr_ref[0], w1c_ref[...], preferred_element_type=jnp.float32)
    acc = None
    for j in range(k):                                        # contiguous slices
        h1 = h_scr[j] + yc1
        h1 = jnp.where(h1 >= 0, h1, slope * h1)
        yj = jnp.dot(h1.astype(w2_ref.dtype), w2_ref[...],
                     preferred_element_type=jnp.float32)
        yj = jnp.where(yj >= 0, yj, slope * yj)
        acc = yj if acc is None else jnp.maximum(acc, yj)
    o_ref[0] = acc.astype(o_ref.dtype)


def tnet_head(nbr, ctr, w1n, w1c, w2, k, slope=0.2):
    b, _, n, cin = nbr.shape
    c_mid = w1n.shape[1]
    cout = w2.shape[1]
    tm = _edge_tile(n, k, cin, c_mid)
    return pl.pallas_call(
        functools.partial(_tnet_head_kernel, k=k, slope=slope),
        out_shape=jax.ShapeDtypeStruct((b, n, cout), DTYPE),
        grid=(b, n // tm),
        in_specs=[pl.BlockSpec((1, k, tm, cin), lambda bi, ni: (bi, 0, ni, 0)),
                  pl.BlockSpec((1, tm, cin), lambda bi, ni: (bi, ni, 0)),
                  pl.BlockSpec((cin, c_mid), lambda bi, ni: (0, 0)),
                  pl.BlockSpec((cin, c_mid), lambda bi, ni: (0, 0)),
                  pl.BlockSpec((c_mid, cout), lambda bi, ni: (0, 0))],
        out_specs=pl.BlockSpec((1, tm, cout), lambda bi, ni: (bi, ni, 0)),
        scratch_shapes=[pltpu.VMEM((k, tm, c_mid), jnp.float32)],
        compiler_params=_mosaic_params("parallel", "parallel"),
    )(nbr, ctr, w1n, w1c, w2)


# ----------------------------------------------------------------------------
# Kernel 3: 1x1 conv + LeakyReLU + pool over N (max, optionally also mean).
# grid = (batch, N tiles); the N axis is a reduction with VMEM accumulators.
# Output is a single lane-dense (b, 1, cout or 2*cout) slab.
# ----------------------------------------------------------------------------
def _pool_conv_kernel(x_ref, w_ref, o_ref, mx_scr, sm_scr, *, slope, with_mean,
                      n_total):
    ni = pl.program_id(1)
    y = jnp.dot(x_ref[0], w_ref[...], preferred_element_type=jnp.float32)
    y = jnp.where(y >= 0, y, slope * y)
    pmax = jnp.max(y, axis=0, keepdims=True)

    @pl.when(ni == 0)
    def _():
        mx_scr[...] = pmax

    @pl.when(ni > 0)
    def _():
        mx_scr[...] = jnp.maximum(mx_scr[...], pmax)

    if with_mean:
        psum = jnp.sum(y, axis=0, keepdims=True)

        @pl.when(ni == 0)
        def _():
            sm_scr[...] = psum

        @pl.when(ni > 0)
        def _():
            sm_scr[...] = sm_scr[...] + psum

    @pl.when(ni == pl.num_programs(1) - 1)
    def _():
        if with_mean:
            res = jnp.concatenate([mx_scr[...], sm_scr[...] * (1.0 / n_total)],
                                  axis=-1)
        else:
            res = mx_scr[...]
        o_ref[...] = res[None].astype(o_ref.dtype)


def conv_act_pool(x, w, slope, with_mean):
    # x: (b, n, cin) bf16, w: (cin, cout) bf16 -> (b, 2*cout) or (b, cout) f32
    b, n, cin = x.shape
    cout = w.shape[1]
    tn = _pool_tile(n, cin, cout)
    width = 2 * cout if with_mean else cout
    out = pl.pallas_call(
        functools.partial(_pool_conv_kernel, slope=slope, with_mean=with_mean,
                          n_total=n),
        out_shape=jax.ShapeDtypeStruct((b, 1, width), jnp.float32),
        grid=(b, n // tn),
        in_specs=[pl.BlockSpec((1, tn, cin), lambda bi, ni: (bi, ni, 0)),
                  pl.BlockSpec((cin, cout), lambda bi, ni: (0, 0))],
        out_specs=pl.BlockSpec((1, 1, width), lambda bi, ni: (bi, 0, 0)),
        scratch_shapes=[pltpu.VMEM((1, cout), jnp.float32),
                        pltpu.VMEM((1, cout), jnp.float32)],
        compiler_params=_mosaic_params("parallel", "arbitrary"),
    )(x, w)
    return out.reshape(b, width)


# ----------------------------------------------------------------------------
# Kernel 4: row-tiled pairwise "negative distance" for kNN.
# pd[b, i, j] = 2 * x_i . x_j - ||x_j||^2   (row-norm term dropped: constant
# along the top-k axis).  bf16 operands / output, f32 accumulation; column
# norms are precomputed in the wrapper (f32) and passed in.
# ----------------------------------------------------------------------------
def _pdist_kernel(xr_ref, xct_ref, cn_ref, o_ref):
    g = jnp.dot(xr_ref[0], xct_ref[0], preferred_element_type=jnp.float32)  # (tr, N)
    o_ref[0] = (2.0 * g - cn_ref[0]).astype(o_ref.dtype)


def pairwise_neg_dist(x_pts):
    # x_pts: (B, N, C) bf16 -> (B, N, N) bf16
    b, n, c = x_pts.shape
    xct = jnp.swapaxes(x_pts, 1, 2)                                   # (B, C, N) bf16
    cn = jnp.sum(x_pts.astype(jnp.float32) ** 2, axis=-1)[:, None, :]  # (B, 1, N) f32
    tr = _pick_tile(n, 256)
    return pl.pallas_call(
        _pdist_kernel,
        out_shape=jax.ShapeDtypeStruct((b, n, n), DTYPE),
        grid=(b, n // tr),
        in_specs=[pl.BlockSpec((1, tr, c), lambda bi, ri: (bi, ri, 0)),
                  pl.BlockSpec((1, c, n), lambda bi, ri: (bi, 0, 0)),
                  pl.BlockSpec((1, 1, n), lambda bi, ri: (bi, 0, 0))],
        out_specs=pl.BlockSpec((1, tr, n), lambda bi, ri: (bi, ri, 0)),
        compiler_params=_mosaic_params("parallel", "parallel"),
    )(x_pts, xct, cn)


# ----------------------------------------------------------------------------
# Kernel 5: fused Transform_Net tail: linear1+bn+lrelu, linear2+bn+lrelu,
# transform (+bias).  All weights stay resident in VMEM; one pallas_call.
# ----------------------------------------------------------------------------
def _tnet_tail_kernel(h_ref, w1_ref, w2_ref, w3_ref, b3_ref, o_ref, *, slope):
    y = jnp.dot(h_ref[...], w1_ref[...], preferred_element_type=jnp.float32)
    y = jnp.where(y >= 0, y, slope * y)
    y = jnp.dot(y.astype(w2_ref.dtype), w2_ref[...],
                preferred_element_type=jnp.float32)
    y = jnp.where(y >= 0, y, slope * y)
    t = jnp.dot(y.astype(w3_ref.dtype), w3_ref[...],
                preferred_element_type=jnp.float32) + b3_ref[...]
    o_ref[...] = t.astype(o_ref.dtype)


def tnet_tail(h, w1, w2, w3, b3, slope=0.2):
    b = h.shape[0]
    return pl.pallas_call(
        functools.partial(_tnet_tail_kernel, slope=slope),
        out_shape=jax.ShapeDtypeStruct((b, 9), jnp.float32),
        grid=(1,),
        in_specs=[pl.BlockSpec(h.shape, lambda i: (0, 0)),
                  pl.BlockSpec(w1.shape, lambda i: (0, 0)),
                  pl.BlockSpec(w2.shape, lambda i: (0, 0)),
                  pl.BlockSpec(w3.shape, lambda i: (0, 0)),
                  pl.BlockSpec((1, 9), lambda i: (0, 0))],
        out_specs=pl.BlockSpec((b, 9), lambda i: (0, 0)),
        compiler_params=pltpu.CompilerParams(vmem_limit_bytes=VMEM_LIMIT),
    )(h, w1, w2, w3, b3.reshape(1, 9))


# ----------------------------------------------------------------------------
# Glue (top-k + gather, tiny 3x3 bmm) in plain JAX
# ----------------------------------------------------------------------------
def knn_gather(x_pts, k):
    """x_pts: (B, N, C) bf16 -> neighbor features (B, k, N, C), neighbor-major."""
    pd = pairwise_neg_dist(x_pts)                 # (B, N, N) bf16
    idx = jax.lax.top_k(pd, k)[1]                 # (B, N, k), includes self
    idx_t = jnp.swapaxes(idx, 1, 2)               # (B, k, N) — tiny int transpose
    # TODO(synk): fuse this row gather into the edge-conv kernel (scalar-prefetch
    # indices + in-kernel DMA gather) to drop the k-fold neighbor copy in HBM.
    return jax.vmap(lambda xt, ix: xt[ix])(x_pts, idx_t)      # (B, k, N, C) bf16


def gcm_block(x_feat, w, k, slope):
    b, n, c = x_feat.shape
    x_bf = x_feat.astype(DTYPE)
    nbr = knn_gather(x_bf, k)                                  # (B, k, N, C) bf16
    wd = w[:c].astype(DTYPE)                                   # neighbor weight
    wc = (w[c:] - w[:c]).astype(DTYPE)                         # combined center weight
    return edgeconv_max(nbr, x_bf, wd, wc, k, slope)           # (B, N, cout) bf16


def transform_net(x_pts, p, k):
    b, n, c = x_pts.shape                                      # c == 3
    slope = 0.2
    x_bf = x_pts.astype(DTYPE)
    nbr = knn_gather(x_bf, k)                                  # (B, k, N, 3) bf16
    w1n = p['t_w1'][:c].astype(DTYPE)
    w1c = (p['t_w1'][c:] - p['t_w1'][:c]).astype(DTYPE)
    h = tnet_head(nbr, x_bf, w1n, w1c, p['t_w2'].astype(DTYPE), k, slope)  # (B,N,128)
    g = conv_act_pool(h, p['t_w3'].astype(DTYPE), slope, with_mean=False)  # (B, 1024)
    t = tnet_tail(g.astype(DTYPE), p['t_wl1'].astype(DTYPE),
                  p['t_wl2'].astype(DTYPE), p['t_wtr'].astype(DTYPE),
                  p['t_btr'], slope)                           # (B, 9)
    return t.reshape(b, 3, 3)


def dgcnn_forward(x, params, cfg):
    # x: (B, C_in, N), same layout as the PyTorch module input
    x_pts = jnp.transpose(x, (0, 2, 1)).astype(jnp.float32)    # (B, N, C)
    k, slope = cfg['k'], cfg['leakyrelu_slope']
    if cfg['use_spatial_transform']:
        t = transform_net(x_pts, params, k)                    # (B, 3, 3)
        x_pts = jnp.einsum('bnc,bcd->bnd', x_pts, t)           # tiny 3x3 bmm (glue)
    feats = []
    h = x_pts
    for w in params['local_ws']:
        h = gcm_block(h, w, k, slope)                          # (B, N, hidden) bf16
        feats.append(h)
    # TODO(synk): write each block's output into its channel slice of one
    # preallocated (B,N,sum_hidden) slab via out_specs + input_output_aliases
    # to drop this (cheap, bf16) concat pass entirely.
    x_local = feats[0] if len(feats) == 1 else jnp.concatenate(feats, axis=-1)
    pooled = conv_act_pool(x_local, params['w_global'].astype(DTYPE),
                           slope, with_mean=cfg['use_mean_global_feature'])
    return pooled                                              # (B, 2g) or (B, g)


# ----------------------------------------------------------------------------
# Deterministic parameter construction (weights stored as (C_in, C_out))
# ----------------------------------------------------------------------------
def init_params(key, cfg):
    ks = jax.random.split(key, 16)

    def w(kk, cin, cout):
        return jax.random.normal(kk, (cin, cout), jnp.float32) / math.sqrt(cin)

    p = {}
    # Transform_Net (BatchNorm folded: eval mode, default running stats)
    p['t_w1'] = w(ks[0], 6, 64) * BN_SCALE
    p['t_w2'] = w(ks[1], 64, 128) * BN_SCALE
    p['t_w3'] = w(ks[2], 128, 1024) * BN_SCALE
    p['t_wl1'] = w(ks[3], 1024, 512) * BN_SCALE
    p['t_wl2'] = w(ks[4], 512, 256) * BN_SCALE
    p['t_wtr'] = jnp.zeros((256, 9), jnp.float32)              # nn.init.constant_(weight, 0)
    p['t_btr'] = jnp.eye(3, dtype=jnp.float32).reshape(9)      # nn.init.eye_(bias.view(3,3))
    # GCM blocks
    local_ws = []
    prev = cfg['input_dim']
    for i, hdim in enumerate(cfg['l_hidden_local']):
        local_ws.append(w(ks[5 + i], 2 * prev, hdim))
        prev = hdim
    p['local_ws'] = local_ws
    # layers_global
    p['w_global'] = w(ks[12], sum(cfg['l_hidden_local']), cfg['global_feature_dim'])
    return p


if __name__ == "__main__":
    cfg = dict(k=4, leakyrelu_slope=0.01, l_hidden_local=[32, 32],
               global_feature_dim=64, input_dim=3, output_feature='global',
               use_spatial_transform=True, use_mean_global_feature=True,
               use_batch_norm=False)

    key = jax.random.PRNGKey(0)
    pkey, xkey = jax.random.split(key)
    params = init_params(pkey, cfg)

    # (B, C_in, N) = (2, 3, 16), same layout as the PyTorch module input
    x = jax.random.normal(xkey, (2, cfg['input_dim'], 16), jnp.float32)

    out = jax.jit(lambda a: dgcnn_forward(a, params, cfg))(x)
    out = jax.block_until_ready(out)
    assert out.shape == (2, 2 * cfg['global_feature_dim']), out.shape
    assert bool(jnp.all(jnp.isfinite(out)))
    print("KERNEL_OK")
</pallas_src>

<mosaic_0001>
module attributes {stable_mosaic.version = 11 : i64} {
  func.func @_pdist_kernel(%arg0: i32, %arg1: i32, %arg2: memref<1x8x3xbf16, #tpu.memory_space<vmem>>, %arg3: memref<1x3x16xbf16, #tpu.memory_space<vmem>>, %arg4: memref<1x1x16xf32, #tpu.memory_space<vmem>>, %arg5: memref<1x8x16xbf16, #tpu.memory_space<vmem>>) attributes {dimension_semantics = [#tpu.dimension_semantics<parallel>, #tpu.dimension_semantics<parallel>], iteration_bounds = array<i64: 2, 2>, scalar_prefetch = 0 : i64, scratch_operands = 0 : i64, tpu.core_type = #tpu.core_type<tc>, window_params = [{transform_indices = @transform_0, window_bounds = array<i64: 1, 8, 3>}, {transform_indices = @transform_1, window_bounds = array<i64: 1, 3, 16>}, {transform_indices = @transform_2, window_bounds = array<i64: 1, 1, 16>}, {transform_indices = @transform_3, window_bounds = array<i64: 1, 8, 16>}]} {
    %c0 = arith.constant 0 : index
    %c0_0 = arith.constant 0 : index
    %c0_1 = arith.constant 0 : index
    %0 = vector.load %arg2[%c0, %c0_0, %c0_1] : memref<1x8x3xbf16, #tpu.memory_space<vmem>>, vector<1x8x3xbf16>
    %1 = vector.shape_cast %0 : vector<1x8x3xbf16> to vector<8x3xbf16>
    %c0_2 = arith.constant 0 : index
    %c0_3 = arith.constant 0 : index
    %c0_4 = arith.constant 0 : index
    %2 = vector.load %arg3[%c0_2, %c0_3, %c0_4] : memref<1x3x16xbf16, #tpu.memory_space<vmem>>, vector<1x3x16xbf16>
    %3 = vector.shape_cast %2 : vector<1x3x16xbf16> to vector<3x16xbf16>
    %cst = arith.constant dense<0.000000e+00> : vector<8x16xf32>
    %4 = tpu.matmul %1, %3, %cst {dimension_numbers = #tpu.dot_dimension_numbers<[1], [0], [0], [1], [0, 0, 1, 1], [], []>} : vector<8x3xbf16>, vector<3x16xbf16>, vector<8x16xf32> -> vector<8x16xf32>
    %cst_5 = arith.constant 2.000000e+00 : f32
    %5 = vector.broadcast %cst_5 : f32 to vector<8x16xf32>
    %6 = arith.mulf %5, %4 : vector<8x16xf32>
    %c0_6 = arith.constant 0 : index
    %c0_7 = arith.constant 0 : index
    %c0_8 = arith.constant 0 : index
    %7 = vector.load %arg4[%c0_6, %c0_7, %c0_8] : memref<1x1x16xf32, #tpu.memory_space<vmem>>, vector<1x1x16xf32>
    %8 = vector.shape_cast %7 : vector<1x1x16xf32> to vector<1x16xf32>
    %9 = vector.broadcast %8 : vector<1x16xf32> to vector<8x16xf32>
    %10 = arith.subf %6, %9 : vector<8x16xf32>
    %11 = arith.truncf %10 : vector<8x16xf32> to vector<8x16xbf16>
    %c0_9 = arith.constant 0 : index
    %c0_10 = arith.constant 0 : index
    %c0_11 = arith.constant 0 : index
    %12 = vector.load %arg5[%c0_9, %c0_10, %c0_11] : memref<1x8x16xbf16, #tpu.memory_space<vmem>>, vector<1x8x16xbf16>
    %13 = vector.shape_cast %12 : vector<1x8x16xbf16> to vector<8x16xbf16>
    %14 = vector.shape_cast %11 : vector<8x16xbf16> to vector<1x8x16xbf16>
    tpu.vector_store %arg5[%c0_9, %c0_10, %c0_11], %14 {strides = array<i32>} : memref<1x8x16xbf16, #tpu.memory_space<vmem>>, vector<1x8x16xbf16>,
    return
  }
  func.func @transform_0(%arg0: i32, %arg1: i32) -> (i32, i32, i32) {
    %c0_i32 = arith.constant 0 : i32
    %c0_i32_0 = arith.constant 0 : i32
    return %arg0, %arg1, %c0_i32 : i32, i32, i32
  }
  func.func @transform_1(%arg0: i32, %arg1: i32) -> (i32, i32, i32) {
    %c0_i32 = arith.constant 0 : i32
    %c0_i32_0 = arith.constant 0 : i32
    %c0_i32_1 = arith.constant 0 : i32
    return %arg0, %c0_i32, %c0_i32_0 : i32, i32, i32
  }
  func.func @transform_2(%arg0: i32, %arg1: i32) -> (i32, i32, i32) {
    %c0_i32 = arith.constant 0 : i32
    %c0_i32_0 = arith.constant 0 : i32
    %c0_i32_1 = arith.constant 0 : i32
    return %arg0, %c0_i32, %c0_i32_0 : i32, i32, i32
  }
  func.func @transform_3(%arg0: i32, %arg1: i32) -> (i32, i32, i32) {
    %c0_i32 = arith.constant 0 : i32
    %c0_i32_0 = arith.constant 0 : i32
    return %arg0, %arg1, %c0_i32 : i32, i32, i32
  }
}

module attributes {stable_mosaic.version = 11 : i64} {
  func.func @_tnet_head_kernel(%arg0: i32, %arg1: i32, %arg2: memref<1x4x8x3xbf16, #tpu.memory_space<vmem>>, %arg3: memref<1x8x3xbf16, #tpu.memory_space<vmem>>, %arg4: memref<3x64xbf16, #tpu.memory_space<vmem>>, %arg5: memref<3x64xbf16, #tpu.memory_space<vmem>>, %arg6: memref<64x128xbf16, #tpu.memory_space<vmem>>, %arg7: memref<1x8x128xbf16, #tpu.memory_space<vmem>>, %arg8: memref<4x8x64xf32, #tpu.memory_space<vmem>>) attributes {dimension_semantics = [#tpu.dimension_semantics<parallel>, #tpu.dimension_semantics<parallel>], iteration_bounds = array<i64: 2, 2>, scalar_prefetch = 0 : i64, scratch_operands = 1 : i64, tpu.core_type = #tpu.core_type<tc>, window_params = [{transform_indices = @transform_0, window_bounds = array<i64: 1, 4, 8, 3>}, {transform_indices = @transform_1, window_bounds = array<i64: 1, 8, 3>}, {pipeline_mode = #tpu.pipeline_mode<synchronous>, transform_indices = @transform_2, window_bounds = array<i64: 3, 64>}, {pipeline_mode = #tpu.pipeline_mode<synchronous>, transform_indices = @transform_3, window_bounds = array<i64: 3, 64>}, {pipeline_mode = #tpu.pipeline_mode<synchronous>, transform_indices = @transform_4, window_bounds = array<i64: 64, 128>}, {transform_indices = @transform_5, window_bounds = array<i64: 1, 8, 128>}]} {
    %c0 = arith.constant 0 : index
    %c0_0 = arith.constant 0 : index
    %c0_1 = arith.constant 0 : index
    %c0_2 = arith.constant 0 : index
    %0 = vector.load %arg2[%c0, %c0_0, %c0_1, %c0_2] : memref<1x4x8x3xbf16, #tpu.memory_space<vmem>>, vector<1x4x8x3xbf16>
    %1 = vector.shape_cast %0 : vector<1x4x8x3xbf16> to vector<4x8x3xbf16>
    %2 = vector.shape_cast %1 : vector<4x8x3xbf16> to vector<32x3xbf16>
    %c0_3 = arith.constant 0 : index
    %c0_4 = arith.constant 0 : index
    %3 = vector.load %arg4[%c0_3, %c0_4] : memref<3x64xbf16, #tpu.memory_space<vmem>>, vector<3x64xbf16>
    %cst = arith.constant dense<0.000000e+00> : vector<32x64xf32>
    %4 = tpu.matmul %2, %3, %cst {dimension_numbers = #tpu.dot_dimension_numbers<[1], [0], [0], [1], [0, 0, 1, 1], [], []>} : vector<32x3xbf16>, vector<3x64xbf16>, vector<32x64xf32> -> vector<32x64xf32>
    %5 = vector.shape_cast %4 : vector<32x64xf32> to vector<4x8x64xf32>
    %c0_5 = arith.constant 0 : index
    %c0_6 = arith.constant 0 : index
    %c0_7 = arith.constant 0 : index
    %6 = vector.load %arg8[%c0_5, %c0_6, %c0_7] : memref<4x8x64xf32, #tpu.memory_space<vmem>>, vector<4x8x64xf32>
    tpu.vector_store %arg8[%c0_5, %c0_6, %c0_7], %5 {strides = array<i32>} : memref<4x8x64xf32, #tpu.memory_space<vmem>>, vector<4x8x64xf32>,
    %c0_8 = arith.constant 0 : index
    %c0_9 = arith.constant 0 : index
    %c0_10 = arith.constant 0 : index
    %7 = vector.load %arg3[%c0_8, %c0_9, %c0_10] : memref<1x8x3xbf16, #tpu.memory_space<vmem>>, vector<1x8x3xbf16>
    %8 = vector.shape_cast %7 : vector<1x8x3xbf16> to vector<8x3xbf16>
    %c0_11 = arith.constant 0 : index
    %c0_12 = arith.constant 0 : index
    %9 = vector.load %arg5[%c0_11, %c0_12] : memref<3x64xbf16, #tpu.memory_space<vmem>>, vector<3x64xbf16>
    %cst_13 = arith.constant dense<0.000000e+00> : vector<8x64xf32>
    %10 = tpu.matmul %8, %9, %cst_13 {dimension_numbers = #tpu.dot_dimension_numbers<[1], [0], [0], [1], [0, 0, 1, 1], [], []>} : vector<8x3xbf16>, vector<3x64xbf16>, vector<8x64xf32> -> vector<8x64xf32>
    %c0_14 = arith.constant 0 : index
    %c0_15 = arith.constant 0 : index
    %c0_16 = arith.constant 0 : index
    %11 = vector.load %arg8[%c0_14, %c0_15, %c0_16] : memref<4x8x64xf32, #tpu.memory_space<vmem>>, vector<1x8x64xf32>
    %12 = vector.shape_cast %11 : vector<1x8x64xf32> to vector<8x64xf32>
    %13 = arith.addf %12, %10 : vector<8x64xf32>
    %cst_17 = arith.constant 0.000000e+00 : f32
    %14 = vector.broadcast %cst_17 : f32 to vector<8x64xf32>
    %15 = arith.cmpf oge, %13, %14 : vector<8x64xf32>
    %cst_18 = arith.constant 2.000000e-01 : f32
    %16 = vector.broadcast %cst_18 : f32 to vector<8x64xf32>
    %17 = arith.mulf %16, %13 : vector<8x64xf32>
    %18 = arith.select %15, %13, %17 : vector<8x64xi1>, vector<8x64xf32>
    %19 = arith.truncf %18 : vector<8x64xf32> to vector<8x64xbf16>
    %c0_19 = arith.constant 0 : index
    %c0_20 = arith.constant 0 : index
    %20 = vector.load %arg6[%c0_19, %c0_20] : memref<64x128xbf16, #tpu.memory_space<vmem>>, vector<64x128xbf16>
    %cst_21 = arith.constant dense<0.000000e+00> : vector<8x128xf32>
    %21 = tpu.matmul %19, %20, %cst_21 {dimension_numbers = #tpu.dot_dimension_numbers<[1], [0], [0], [1], [0, 0, 1, 1], [], []>} : vector<8x64xbf16>, vector<64x128xbf16>, vector<8x128xf32> -> vector<8x128xf32>
    %cst_22 = arith.constant 0.000000e+00 : f32
    %22 = vector.broadcast %cst_22 : f32 to vector<8x128xf32>
    %23 = arith.cmpf oge, %21, %22 : vector<8x128xf32>
    %cst_23 = arith.constant 2.000000e-01 : f32
    %24 = vector.broadcast %cst_23 : f32 to vector<8x128xf32>
    %25 = arith.mulf %24, %21 : vector<8x128xf32>
    %26 = arith.select %23, %21, %25 : vector<8x128xi1>, vector<8x128xf32>
    %c1 = arith.constant 1 : index
    %c0_24 = arith.constant 0 : index
    %c0_25 = arith.constant 0 : index
    %27 = vector.load %arg8[%c1, %c0_24, %c0_25] : memref<4x8x64xf32, #tpu.memory_space<vmem>>, vector<1x8x64xf32>
    %28 = vector.shape_cast %27 : vector<1x8x64xf32> to vector<8x64xf32>
    %29 = arith.addf %28, %10 : vector<8x64xf32>
    %cst_26 = arith.constant 0.000000e+00 : f32
    %30 = vector.broadcast %cst_26 : f32 to vector<8x64xf32>
    %31 = arith.cmpf oge, %29, %30 : vector<8x64xf32>
    %cst_27 = arith.constant 2.000000e-01 : f32
    %32 = vector.broadcast %cst_27 : f32 to vector<8x64xf32>
    %33 = arith.mulf %32, %29 : vector<8x64xf32>
    %34 = arith.select %31, %29, %33 : vector<8x64xi1>, vector<8x64xf32>
    %35 = arith.truncf %34 : vector<8x64xf32> to vector<8x64xbf16>
    %c0_28 = arith.constant 0 : index
    %c0_29 = arith.constant 0 : index
    %36 = vector.load %arg6[%c0_28, %c0_29] : memref<64x128xbf16, #tpu.memory_space<vmem>>, vector<64x128xbf16>
    %cst_30 = arith.constant dense<0.000000e+00> : vector<8x128xf32>
    %37 = tpu.matmul %35, %36, %cst_30 {dimension_numbers = #tpu.dot_dimension_numbers<[1], [0], [0], [1], [0, 0, 1, 1], [], []>} : vector<8x64xbf16>, vector<64x128xbf16>, vector<8x128xf32> -> vector<8x128xf32>
    %cst_31 = arith.constant 0.000000e+00 : f32
    %38 = vector.broadcast %cst_31 : f32 to vector<8x128xf32>
    %39 = arith.cmpf oge, %37, %38 : vector<8x128xf32>
    %cst_32 = arith.constant 2.000000e-01 : f32
    %40 = vector.broadcast %cst_32 : f32 to vector<8x128xf32>
    %41 = arith.mulf %40, %37 : vector<8x128xf32>
    %42 = arith.select %39, %37, %41 : vector<8x128xi1>, vector<8x128xf32>
    %43 = arith.maximumf %26, %42 : vector<8x128xf32>
    %c2 = arith.constant 2 : index
    %c0_33 = arith.constant 0 : index
    %c0_34 = arith.constant 0 : index
    %44 = vector.load %arg8[%c2, %c0_33, %c0_34] : memref<4x8x64xf32, #tpu.memory_space<vmem>>, vector<1x8x64xf32>
    %45 = vector.shape_cast %44 : vector<1x8x64xf32> to vector<8x64xf32>
    %46 = arith.addf %45, %10 : vector<8x64xf32>
    %cst_35 = arith.constant 0.000000e+00 : f32
    %47 = vector.broadcast %cst_35 : f32 to vector<8x64xf32>
    %48 = arith.cmpf oge, %46, %47 : vector<8x64xf32>
    %cst_36 = arith.constant 2.000000e-01 : f32
    %49 = vector.broadcast %cst_36 : f32 to vector<8x64xf32>
    %50 = arith.mulf %49, %46 : vector<8x64xf32>
    %51 = arith.select %48, %46, %50 : vector<8x64xi1>, vector<8x64xf32>
    %52 = arith.truncf %51 : vector<8x64xf32> to vector<8x64xbf16>
    %c0_37 = arith.constant 0 : index
    %c0_38 = arith.constant 0 : index
    %53 = vector.load %arg6[%c0_37, %c0_38] : memref<64x128xbf16, #tpu.memory_space<vmem>>, vector<64x128xbf16>
    %cst_39 = arith.constant dense<0.000000e+00> : vector<8x128xf32>
    %54 = tpu.matmul %52, %53, %cst_39 {dimension_numbers = #tpu.dot_dimension_numbers<[1], [0], [0], [1], [0, 0, 1, 1], [], []>} : vector<8x64xbf16>, vector<64x128xbf16>, vector<8x128xf32> -> vector<8x128xf32>
    %cst_40 = arith.constant 0.000000e+00 : f32
    %55 = vector.broadcast %cst_40 : f32 to vector<8x128xf32>
    %56 = arith.cmpf oge, %54, %55 : vector<8x128xf32>
    %cst_41 = arith.constant 2.000000e-01 : f32
    %57 = vector.broadcast %cst_41 : f32 to vector<8x128xf32>
    %58 = arith.mulf %57, %54 : vector<8x128xf32>
    %59 = arith.select %56, %54, %58 : vector<8x128xi1>, vector<8x128xf32>
    %60 = arith.maximumf %43, %59 : vector<8x128xf32>
    %c3 = arith.constant 3 : index
    %c0_42 = arith.constant 0 : index
    %c0_43 = arith.constant 0 : index
    %61 = vector.load %arg8[%c3, %c0_42, %c0_43] : memref<4x8x64xf32, #tpu.memory_space<vmem>>, vector<1x8x64xf32>
    %62 = vector.shape_cast %61 : vector<1x8x64xf32> to vector<8x64xf32>
    %63 = arith.addf %62, %10 : vector<8x64xf32>
    %cst_44 = arith.constant 0.000000e+00 : f32
    %64 = vector.broadcast %cst_44 : f32 to vector<8x64xf32>
    %65 = arith.cmpf oge, %63, %64 : vector<8x64xf32>
    %cst_45 = arith.constant 2.000000e-01 : f32
    %66 = vector.broadcast %cst_45 : f32 to vector<8x64xf32>
    %67 = arith.mulf %66, %63 : vector<8x64xf32>
    %68 = arith.select %65, %63, %67 : vector<8x64xi1>, vector<8x64xf32>
    %69 = arith.truncf %68 : vector<8x64xf32> to vector<8x64xbf16>
    %c0_46 = arith.constant 0 : index
    %c0_47 = arith.constant 0 : index
    %70 = vector.load %arg6[%c0_46, %c0_47] : memref<64x128xbf16, #tpu.memory_space<vmem>>, vector<64x128xbf16>
    %cst_48 = arith.constant dense<0.000000e+00> : vector<8x128xf32>
    %71 = tpu.matmul %69, %70, %cst_48 {dimension_numbers = #tpu.dot_dimension_numbers<[1], [0], [0], [1], [0, 0, 1, 1], [], []>} : vector<8x64xbf16>, vector<64x128xbf16>, vector<8x128xf32> -> vector<8x128xf32>
    %cst_49 = arith.constant 0.000000e+00 : f32
    %72 = vector.broadcast %cst_49 : f32 to vector<8x128xf32>
    %73 = arith.cmpf oge, %71, %72 : vector<8x128xf32>
    %cst_50 = arith.constant 2.000000e-01 : f32
    %74 = vector.broadcast %cst_50 : f32 to vector<8x128xf32>
    %75 = arith.mulf %74, %71 : vector<8x128xf32>
    %76 = arith.select %73, %71, %75 : vector<8x128xi1>, vector<8x128xf32>
    %77 = arith.maximumf %60, %76 : vector<8x128xf32>
    %78 = arith.truncf %77 : vector<8x128xf32> to vector<8x128xbf16>
    %c0_51 = arith.constant 0 : index
    %c0_52 = arith.constant 0 : index
    %c0_53 = arith.constant 0 : index
    %79 = vector.load %arg7[%c0_51, %c0_52, %c0_53] : memref<1x8x128xbf16, #tpu.memory_space<vmem>>, vector<1x8x128xbf16>
    %80 = vector.shape_cast %79 : vector<1x8x128xbf16> to vector<8x128xbf16>
    %81 = vector.shape_cast %78 : vector<8x128xbf16> to vector<1x8x128xbf16>
    tpu.vector_store %arg7[%c0_51, %c0_52, %c0_53], %81 {strides = array<i32>} : memref<1x8x128xbf16, #tpu.memory_space<vmem>>, vector<1x8x128xbf16>,
    return
  }
  func.func @transform_0(%arg0: i32, %arg1: i32) -> (i32, i32, i32, i32) {
    %c0_i32 = arith.constant 0 : i32
    %c0_i32_0 = arith.constant 0 : i32
    %c0_i32_1 = arith.constant 0 : i32
    return %arg0, %c0_i32, %arg1, %c0_i32_0 : i32, i32, i32, i32
  }
  func.func @transform_1(%arg0: i32, %arg1: i32) -> (i32, i32, i32) {
    %c0_i32 = arith.constant 0 : i32
    %c0_i32_0 = arith.constant 0 : i32
    return %arg0, %arg1, %c0_i32 : i32, i32, i32
  }
  func.func @transform_2(%arg0: i32, %arg1: i32) -> (i32, i32) {
    %c0_i32 = arith.constant 0 : i32
    %c0_i32_0 = arith.constant 0 : i32
    %c0_i32_1 = arith.constant 0 : i32
    return %c0_i32, %c0_i32_0 : i32, i32
  }
  func.func @transform_3(%arg0: i32, %arg1: i32) -> (i32, i32) {
    %c0_i32 = arith.constant 0 : i32
    %c0_i32_0 = arith.constant 0 : i32
    %c0_i32_1 = arith.constant 0 : i32
    return %c0_i32, %c0_i32_0 : i32, i32
  }
  func.func @transform_4(%arg0: i32, %arg1: i32) -> (i32, i32) {
    %c0_i32 = arith.constant 0 : i32
    %c0_i32_0 = arith.constant 0 : i32
    %c0_i32_1 = arith.constant 0 : i32
    return %c0_i32, %c0_i32_0 : i32, i32
  }
  func.func @transform_5(%arg0: i32, %arg1: i32) -> (i32, i32, i32) {
    %c0_i32 = arith.constant 0 : i32
    %c0_i32_0 = arith.constant 0 : i32
    return %arg0, %arg1, %c0_i32 : i32, i32, i32
  }
}

module attributes {stable_mosaic.version = 11 : i64} {
  func.func @_pool_conv_kernel(%arg0: i32, %arg1: i32, %arg2: memref<1x8x128xbf16, #tpu.memory_space<vmem>>, %arg3: memref<128x1024xbf16, #tpu.memory_space<vmem>>, %arg4: memref<1x1x1024xf32, #tpu.memory_space<vmem>>, %arg5: memref<1x1024xf32, #tpu.memory_space<vmem>>, %arg6: memref<1x1024xf32, #tpu.memory_space<vmem>>) attributes {dimension_semantics = [#tpu.dimension_semantics<parallel>, #tpu.dimension_semantics<arbitrary>], iteration_bounds = array<i64: 2, 2>, scalar_prefetch = 0 : i64, scratch_operands = 2 : i64, tpu.core_type = #tpu.core_type<tc>, window_params = [{transform_indices = @transform_0, window_bounds = array<i64: 1, 8, 128>}, {pipeline_mode = #tpu.pipeline_mode<synchronous>, transform_indices = @transform_1, window_bounds = array<i64: 128, 1024>}, {transform_indices = @transform_2, window_bounds = array<i64: 1, 1, 1024>}]} {
    %c0 = arith.constant 0 : index
    %c0_0 = arith.constant 0 : index
    %c0_1 = arith.constant 0 : index
    %0 = vector.load %arg2[%c0, %c0_0, %c0_1] : memref<1x8x128xbf16, #tpu.memory_space<vmem>>, vector<1x8x128xbf16>
    %1 = vector.shape_cast %0 : vector<1x8x128xbf16> to vector<8x128xbf16>
    %c0_2 = arith.constant 0 : index
    %c0_3 = arith.constant 0 : index
    %2 = vector.load %arg3[%c0_2, %c0_3] : memref<128x1024xbf16, #tpu.memory_space<vmem>>, vector<128x1024xbf16>
    %cst = arith.constant dense<0.000000e+00> : vector<8x1024xf32>
    %3 = tpu.matmul %1, %2, %cst {dimension_numbers = #tpu.dot_dimension_numbers<[1], [0], [0], [1], [0, 0, 1, 1], [], []>} : vector<8x128xbf16>, vector<128x1024xbf16>, vector<8x1024xf32> -> vector<8x1024xf32>
    %cst_4 = arith.constant 0.000000e+00 : f32
    %4 = vector.broadcast %cst_4 : f32 to vector<8x1024xf32>
    %5 = arith.cmpf oge, %3, %4 : vector<8x1024xf32>
    %cst_5 = arith.constant 2.000000e-01 : f32
    %6 = vector.broadcast %cst_5 : f32 to vector<8x1024xf32>
    %7 = arith.mulf %6, %3 : vector<8x1024xf32>
    %8 = arith.select %5, %3, %7 : vector<8x1024xi1>, vector<8x1024xf32>
    %cst_6 = arith.constant dense<0xFF800000> : vector<1024xf32>
    %9 = vector.multi_reduction <maximumf>, %8, %cst_6 [0] : vector<8x1024xf32> to vector<1024xf32>
    %10 = vector.shape_cast %9 : vector<1024xf32> to vector<1x1024xf32>
    %c0_i32 = arith.constant 0 : i32
    %11 = arith.cmpi eq, %arg1, %c0_i32 : i32
    %12 = arith.extui %11 : i1 to i32
    %c0_i32_7 = arith.constant 0 : i32
    %13 = arith.cmpi ne, %12, %c0_i32_7 : i32
    scf.if %13 {
      %c0_11 = arith.constant 0 : index
      %c0_12 = arith.constant 0 : index
      %20 = vector.load %arg5[%c0_11, %c0_12] : memref<1x1024xf32, #tpu.memory_space<vmem>>, vector<1x1024xf32>
      tpu.vector_store %arg5[%c0_11, %c0_12], %10 {strides = array<i32>} : memref<1x1024xf32, #tpu.memory_space<vmem>>, vector<1x1024xf32>,
    } else {
    }
    %c0_i32_8 = arith.constant 0 : i32
    %14 = arith.cmpi sgt, %arg1, %c0_i32_8 : i32
    %15 = arith.extui %14 : i1 to i32
    %c0_i32_9 = arith.constant 0 : i32
    %16 = arith.cmpi ne, %15, %c0_i32_9 : i32
    scf.if %16 {
      %c0_11 = arith.constant 0 : index
      %c0_12 = arith.constant 0 : index
      %20 = vector.load %arg5[%c0_11, %c0_12] : memref<1x1024xf32, #tpu.memory_space<vmem>>, vector<1x1024xf32>
      %21 = arith.maximumf %20, %10 : vector<1x1024xf32>
      %c0_13 = arith.constant 0 : index
      %c0_14 = arith.constant 0 : index
      %22 = vector.load %arg5[%c0_13, %c0_14] : memref<1x1024xf32, #tpu.memory_space<vmem>>, vector<1x1024xf32>
      tpu.vector_store %arg5[%c0_13, %c0_14], %21 {strides = array<i32>} : memref<1x1024xf32, #tpu.memory_space<vmem>>, vector<1x1024xf32>,
    } else {
    }
    %c1_i32 = arith.constant 1 : i32
    %17 = arith.cmpi eq, %arg1, %c1_i32 : i32
    %18 = arith.extui %17 : i1 to i32
    %c0_i32_10 = arith.constant 0 : i32
    %19 = arith.cmpi ne, %18, %c0_i32_10 : i32
    scf.if %19 {
      %c0_11 = arith.constant 0 : index
      %c0_12 = arith.constant 0 : index
      %20 = vector.load %arg5[%c0_11, %c0_12] : memref<1x1024xf32, #tpu.memory_space<vmem>>, vector<1x1024xf32>
      %21 = vector.shape_cast %20 : vector<1x1024xf32> to vector<1x1x1024xf32>
      %c0_13 = arith.constant 0 : index
      %c0_14 = arith.constant 0 : index
      %c0_15 = arith.constant 0 : index
      %22 = vector.load %arg4[%c0_13, %c0_14, %c0_15] : memref<1x1x1024xf32, #tpu.memory_space<vmem>>, vector<1x1x1024xf32>
      tpu.vector_store %arg4[%c0_13, %c0_14, %c0_15], %21 {strides = array<i32>} : memref<1x1x1024xf32, #tpu.memory_space<vmem>>, vector<1x1x1024xf32>,
    } else {
    }
    return
  }
  func.func @transform_0(%arg0: i32, %arg1: i32) -> (i32, i32, i32) {
    %c0_i32 = arith.constant 0 : i32
    %c0_i32_0 = arith.constant 0 : i32
    return %arg0, %arg1, %c0_i32 : i32, i32, i32
  }
  func.func @transform_1(%arg0: i32, %arg1: i32) -> (i32, i32) {
    %c0_i32 = arith.constant 0 : i32
    %c0_i32_0 = arith.constant 0 : i32
    %c0_i32_1 = arith.constant 0 : i32
    return %c0_i32, %c0_i32_0 : i32, i32
  }
  func.func @transform_2(%arg0: i32, %arg1: i32) -> (i32, i32, i32) {
    %c0_i32 = arith.constant 0 : i32
    %c0_i32_0 = arith.constant 0 : i32
    %c0_i32_1 = arith.constant 0 : i32
    return %arg0, %c0_i32, %c0_i32_0 : i32, i32, i32
  }
}

module attributes {stable_mosaic.version = 11 : i64} {
  func.func @_tnet_tail_kernel(%arg0: i32, %arg1: memref<2x1024xbf16, #tpu.memory_space<vmem>>, %arg2: memref<1024x512xbf16, #tpu.memory_space<vmem>>, %arg3: memref<512x256xbf16, #tpu.memory_space<vmem>>, %arg4: memref<256x9xbf16, #tpu.memory_space<vmem>>, %arg5: memref<1x9xf32, #tpu.memory_space<vmem>>, %arg6: memref<2x9xf32, #tpu.memory_space<vmem>>) attributes {dimension_semantics = [#tpu.dimension_semantics<arbitrary>], iteration_bounds = array<i64: 1>, scalar_prefetch = 0 : i64, scratch_operands = 0 : i64, tpu.core_type = #tpu.core_type<tc>, window_params = [{pipeline_mode = #tpu.pipeline_mode<synchronous>, transform_indices = @transform_0, window_bounds = array<i64: 2, 1024>}, {pipeline_mode = #tpu.pipeline_mode<synchronous>, transform_indices = @transform_1, window_bounds = array<i64: 1024, 512>}, {pipeline_mode = #tpu.pipeline_mode<synchronous>, transform_indices = @transform_2, window_bounds = array<i64: 512, 256>}, {pipeline_mode = #tpu.pipeline_mode<synchronous>, transform_indices = @transform_3, window_bounds = array<i64: 256, 9>}, {pipeline_mode = #tpu.pipeline_mode<synchronous>, transform_indices = @transform_4, window_bounds = array<i64: 1, 9>}, {pipeline_mode = #tpu.pipeline_mode<synchronous>, transform_indices = @transform_5, window_bounds = array<i64: 2, 9>}]} {
    %c0 = arith.constant 0 : index
    %c0_0 = arith.constant 0 : index
    %0 = vector.load %arg1[%c0, %c0_0] : memref<2x1024xbf16, #tpu.memory_space<vmem>>, vector<2x1024xbf16>
    %c0_1 = arith.constant 0 : index
    %c0_2 = arith.constant 0 : index
    %1 = vector.load %arg2[%c0_1, %c0_2] : memref<1024x512xbf16, #tpu.memory_space<vmem>>, vector<1024x512xbf16>
    %cst = arith.constant dense<0.000000e+00> : vector<2x512xf32>
    %2 = tpu.matmul %0, %1, %cst {dimension_numbers = #tpu.dot_dimension_numbers<[1], [0], [0], [1], [0, 0, 1, 1], [], []>} : vector<2x1024xbf16>, vector<1024x512xbf16>, vector<2x512xf32> -> vector<2x512xf32>
    %cst_3 = arith.constant 0.000000e+00 : f32
    %3 = vector.broadcast %cst_3 : f32 to vector<2x512xf32>
    %4 = arith.cmpf oge, %2, %3 : vector<2x512xf32>
    %cst_4 = arith.constant 2.000000e-01 : f32
    %5 = vector.broadcast %cst_4 : f32 to vector<2x512xf32>
    %6 = arith.mulf %5, %2 : vector<2x512xf32>
    %7 = arith.select %4, %2, %6 : vector<2x512xi1>, vector<2x512xf32>
    %8 = arith.truncf %7 : vector<2x512xf32> to vector<2x512xbf16>
    %c0_5 = arith.constant 0 : index
    %c0_6 = arith.constant 0 : index
    %9 = vector.load %arg3[%c0_5, %c0_6] : memref<512x256xbf16, #tpu.memory_space<vmem>>, vector<512x256xbf16>
    %cst_7 = arith.constant dense<0.000000e+00> : vector<2x256xf32>
    %10 = tpu.matmul %8, %9, %cst_7 {dimension_numbers = #tpu.dot_dimension_numbers<[1], [0], [0], [1], [0, 0, 1, 1], [], []>} : vector<2x512xbf16>, vector<512x256xbf16>, vector<2x256xf32> -> vector<2x256xf32>
    %cst_8 = arith.constant 0.000000e+00 : f32
    %11 = vector.broadcast %cst_8 : f32 to vector<2x256xf32>
    %12 = arith.cmpf oge, %10, %11 : vector<2x256xf32>
    %cst_9 = arith.constant 2.000000e-01 : f32
    %13 = vector.broadcast %cst_9 : f32 to vector<2x256xf32>
    %14 = arith.mulf %13, %10 : vector<2x256xf32>
    %15 = arith.select %12, %10, %14 : vector<2x256xi1>, vector<2x256xf32>
    %16 = arith.truncf %15 : vector<2x256xf32> to vector<2x256xbf16>
    %c0_10 = arith.constant 0 : index
    %c0_11 = arith.constant 0 : index
    %17 = vector.load %arg4[%c0_10, %c0_11] : memref<256x9xbf16, #tpu.memory_space<vmem>>, vector<256x9xbf16>
    %cst_12 = arith.constant dense<0.000000e+00> : vector<2x9xf32>
    %18 = tpu.matmul %16, %17, %cst_12 {dimension_numbers = #tpu.dot_dimension_numbers<[1], [0], [0], [1], [0, 0, 1, 1], [], []>} : vector<2x256xbf16>, vector<256x9xbf16>, vector<2x9xf32> -> vector<2x9xf32>
    %c0_13 = arith.constant 0 : index
    %c0_14 = arith.constant 0 : index
    %19 = vector.load %arg5[%c0_13, %c0_14] : memref<1x9xf32, #tpu.memory_space<vmem>>, vector<1x9xf32>
    %20 = vector.broadcast %19 : vector<1x9xf32> to vector<2x9xf32>
    %21 = arith.addf %18, %20 : vector<2x9xf32>
    %c0_15 = arith.constant 0 : index
    %c0_16 = arith.constant 0 : index
    %22 = vector.load %arg6[%c0_15, %c0_16] : memref<2x9xf32, #tpu.memory_space<vmem>>, vector<2x9xf32>
    tpu.vector_store %arg6[%c0_15, %c0_16], %21 {strides = array<i32>} : memref<2x9xf32, #tpu.memory_space<vmem>>, vector<2x9xf32>,
    return
  }
  func.func @transform_0(%arg0: i32) -> (i32, i32) {
    %c0_i32 = arith.constant 0 : i32
    %c0_i32_0 = arith.constant 0 : i32
    %c0_i32_1 = arith.constant 0 : i32
    return %c0_i32, %c0_i32_0 : i32, i32
  }
  func.func @transform_1(%arg0: i32) -> (i32, i32) {
    %c0_i32 = arith.constant 0 : i32
    %c0_i32_0 = arith.constant 0 : i32
    %c0_i32_1 = arith.constant 0 : i32
    return %c0_i32, %c0_i32_0 : i32, i32
  }
  func.func @transform_2(%arg0: i32) -> (i32, i32) {
    %c0_i32 = arith.constant 0 : i32
    %c0_i32_0 = arith.constant 0 : i32
    %c0_i32_1 = arith.constant 0 : i32
    return %c0_i32, %c0_i32_0 : i32, i32
  }
  func.func @transform_3(%arg0: i32) -> (i32, i32) {
    %c0_i32 = arith.constant 0 : i32
    %c0_i32_0 = arith.constant 0 : i32
    %c0_i32_1 = arith.constant 0 : i32
    return %c0_i32, %c0_i32_0 : i32, i32
  }
  func.func @transform_4(%arg0: i32) -> (i32, i32) {
    %c0_i32 = arith.constant 0 : i32
    %c0_i32_0 = arith.constant 0 : i32
    %c0_i32_1 = arith.constant 0 : i32
    return %c0_i32, %c0_i32_0 : i32, i32
  }
  func.func @transform_5(%arg0: i32) -> (i32, i32) {
    %c0_i32 = arith.constant 0 : i32
    %c0_i32_0 = arith.constant 0 : i32
    %c0_i32_1 = arith.constant 0 : i32
    return %c0_i32, %c0_i32_0 : i32, i32
  }
}

module attributes {stable_mosaic.version = 11 : i64} {
  func.func @_edgeconv_kernel(%arg0: i32, %arg1: i32, %arg2: memref<1x4x8x3xbf16, #tpu.memory_space<vmem>>, %arg3: memref<1x8x3xbf16, #tpu.memory_space<vmem>>, %arg4: memref<3x32xbf16, #tpu.memory_space<vmem>>, %arg5: memref<3x32xbf16, #tpu.memory_space<vmem>>, %arg6: memref<1x8x32xbf16, #tpu.memory_space<vmem>>, %arg7: memref<4x8x32xf32, #tpu.memory_space<vmem>>) attributes {dimension_semantics = [#tpu.dimension_semantics<parallel>, #tpu.dimension_semantics<parallel>], iteration_bounds = array<i64: 2, 2>, scalar_prefetch = 0 : i64, scratch_operands = 1 : i64, tpu.core_type = #tpu.core_type<tc>, window_params = [{transform_indices = @transform_0, window_bounds = array<i64: 1, 4, 8, 3>}, {transform_indices = @transform_1, window_bounds = array<i64: 1, 8, 3>}, {pipeline_mode = #tpu.pipeline_mode<synchronous>, transform_indices = @transform_2, window_bounds = array<i64: 3, 32>}, {pipeline_mode = #tpu.pipeline_mode<synchronous>, transform_indices = @transform_3, window_bounds = array<i64: 3, 32>}, {transform_indices = @transform_4, window_bounds = array<i64: 1, 8, 32>}]} {
    %c0 = arith.constant 0 : index
    %c0_0 = arith.constant 0 : index
    %c0_1 = arith.constant 0 : index
    %c0_2 = arith.constant 0 : index
    %0 = vector.load %arg2[%c0, %c0_0, %c0_1, %c0_2] : memref<1x4x8x3xbf16, #tpu.memory_space<vmem>>, vector<1x4x8x3xbf16>
    %1 = vector.shape_cast %0 : vector<1x4x8x3xbf16> to vector<4x8x3xbf16>
    %2 = vector.shape_cast %1 : vector<4x8x3xbf16> to vector<32x3xbf16>
    %c0_3 = arith.constant 0 : index
    %c0_4 = arith.constant 0 : index
    %3 = vector.load %arg4[%c0_3, %c0_4] : memref<3x32xbf16, #tpu.memory_space<vmem>>, vector<3x32xbf16>
    %cst = arith.constant dense<0.000000e+00> : vector<32x32xf32>
    %4 = tpu.matmul %2, %3, %cst {dimension_numbers = #tpu.dot_dimension_numbers<[1], [0], [0], [1], [0, 0, 1, 1], [], []>} : vector<32x3xbf16>, vector<3x32xbf16>, vector<32x32xf32> -> vector<32x32xf32>
    %5 = vector.shape_cast %4 : vector<32x32xf32> to vector<4x8x32xf32>
    %c0_5 = arith.constant 0 : index
    %c0_6 = arith.constant 0 : index
    %c0_7 = arith.constant 0 : index
    %6 = vector.load %arg7[%c0_5, %c0_6, %c0_7] : memref<4x8x32xf32, #tpu.memory_space<vmem>>, vector<4x8x32xf32>
    tpu.vector_store %arg7[%c0_5, %c0_6, %c0_7], %5 {strides = array<i32>} : memref<4x8x32xf32, #tpu.memory_space<vmem>>, vector<4x8x32xf32>,
    %c0_8 = arith.constant 0 : index
    %c0_9 = arith.constant 0 : index
    %c0_10 = arith.constant 0 : index
    %7 = vector.load %arg3[%c0_8, %c0_9, %c0_10] : memref<1x8x3xbf16, #tpu.memory_space<vmem>>, vector<1x8x3xbf16>
    %8 = vector.shape_cast %7 : vector<1x8x3xbf16> to vector<8x3xbf16>
    %c0_11 = arith.constant 0 : index
    %c0_12 = arith.constant 0 : index
    %9 = vector.load %arg5[%c0_11, %c0_12] : memref<3x32xbf16, #tpu.memory_space<vmem>>, vector<3x32xbf16>
    %cst_13 = arith.constant dense<0.000000e+00> : vector<8x32xf32>
    %10 = tpu.matmul %8, %9, %cst_13 {dimension_numbers = #tpu.dot_dimension_numbers<[1], [0], [0], [1], [0, 0, 1, 1], [], []>} : vector<8x3xbf16>, vector<3x32xbf16>, vector<8x32xf32> -> vector<8x32xf32>
    %c0_14 = arith.constant 0 : index
    %c0_15 = arith.constant 0 : index
    %c0_16 = arith.constant 0 : index
    %11 = vector.load %arg7[%c0_14, %c0_15, %c0_16] : memref<4x8x32xf32, #tpu.memory_space<vmem>>, vector<1x8x32xf32>
    %12 = vector.shape_cast %11 : vector<1x8x32xf32> to vector<8x32xf32>
    %13 = arith.addf %12, %10 : vector<8x32xf32>
    %cst_17 = arith.constant 0.000000e+00 : f32
    %14 = vector.broadcast %cst_17 : f32 to vector<8x32xf32>
    %15 = arith.cmpf oge, %13, %14 : vector<8x32xf32>
    %cst_18 = arith.constant 0.00999999977 : f32
    %16 = vector.broadcast %cst_18 : f32 to vector<8x32xf32>
    %17 = arith.mulf %16, %13 : vector<8x32xf32>
    %18 = arith.select %15, %13, %17 : vector<8x32xi1>, vector<8x32xf32>
    %c1 = arith.constant 1 : index
    %c0_19 = arith.constant 0 : index
    %c0_20 = arith.constant 0 : index
    %19 = vector.load %arg7[%c1, %c0_19, %c0_20] : memref<4x8x32xf32, #tpu.memory_space<vmem>>, vector<1x8x32xf32>
    %20 = vector.shape_cast %19 : vector<1x8x32xf32> to vector<8x32xf32>
    %21 = arith.addf %20, %10 : vector<8x32xf32>
    %cst_21 = arith.constant 0.000000e+00 : f32
    %22 = vector.broadcast %cst_21 : f32 to vector<8x32xf32>
    %23 = arith.cmpf oge, %21, %22 : vector<8x32xf32>
    %cst_22 = arith.constant 0.00999999977 : f32
    %24 = vector.broadcast %cst_22 : f32 to vector<8x32xf32>
    %25 = arith.mulf %24, %21 : vector<8x32xf32>
    %26 = arith.select %23, %21, %25 : vector<8x32xi1>, vector<8x32xf32>
    %27 = arith.maximumf %18, %26 : vector<8x32xf32>
    %c2 = arith.constant 2 : index
    %c0_23 = arith.constant 0 : index
    %c0_24 = arith.constant 0 : index
    %28 = vector.load %arg7[%c2, %c0_23, %c0_24] : memref<4x8x32xf32, #tpu.memory_space<vmem>>, vector<1x8x32xf32>
    %29 = vector.shape_cast %28 : vector<1x8x32xf32> to vector<8x32xf32>
    %30 = arith.addf %29, %10 : vector<8x32xf32>
    %cst_25 = arith.constant 0.000000e+00 : f32
    %31 = vector.broadcast %cst_25 : f32 to vector<8x32xf32>
    %32 = arith.cmpf oge, %30, %31 : vector<8x32xf32>
    %cst_26 = arith.constant 0.00999999977 : f32
    %33 = vector.broadcast %cst_26 : f32 to vector<8x32xf32>
    %34 = arith.mulf %33, %30 : vector<8x32xf32>
    %35 = arith.select %32, %30, %34 : vector<8x32xi1>, vector<8x32xf32>
    %36 = arith.maximumf %27, %35 : vector<8x32xf32>
    %c3 = arith.constant 3 : index
    %c0_27 = arith.constant 0 : index
    %c0_28 = arith.constant 0 : index
    %37 = vector.load %arg7[%c3, %c0_27, %c0_28] : memref<4x8x32xf32, #tpu.memory_space<vmem>>, vector<1x8x32xf32>
    %38 = vector.shape_cast %37 : vector<1x8x32xf32> to vector<8x32xf32>
    %39 = arith.addf %38, %10 : vector<8x32xf32>
    %cst_29 = arith.constant 0.000000e+00 : f32
    %40 = vector.broadcast %cst_29 : f32 to vector<8x32xf32>
    %41 = arith.cmpf oge, %39, %40 : vector<8x32xf32>
    %cst_30 = arith.constant 0.00999999977 : f32
    %42 = vector.broadcast %cst_30 : f32 to vector<8x32xf32>
    %43 = arith.mulf %42, %39 : vector<8x32xf32>
    %44 = arith.select %41, %39, %43 : vector<8x32xi1>, vector<8x32xf32>
    %45 = arith.maximumf %36, %44 : vector<8x32xf32>
    %46 = arith.truncf %45 : vector<8x32xf32> to vector<8x32xbf16>
    %c0_31 = arith.constant 0 : index
    %c0_32 = arith.constant 0 : index
    %c0_33 = arith.constant 0 : index
    %47 = vector.load %arg6[%c0_31, %c0_32, %c0_33] : memref<1x8x32xbf16, #tpu.memory_space<vmem>>, vector<1x8x32xbf16>
    %48 = vector.shape_cast %47 : vector<1x8x32xbf16> to vector<8x32xbf16>
    %49 = vector.shape_cast %46 : vector<8x32xbf16> to vector<1x8x32xbf16>
    tpu.vector_store %arg6[%c0_31, %c0_32, %c0_33], %49 {strides = array<i32>} : memref<1x8x32xbf16, #tpu.memory_space<vmem>>, vector<1x8x32xbf16>,
    return
  }
  func.func @transform_0(%arg0: i32, %arg1: i32) -> (i32, i32, i32, i32) {
    %c0_i32 = arith.constant 0 : i32
    %c0_i32_0 = arith.constant 0 : i32
    %c0_i32_1 = arith.constant 0 : i32
    return %arg0, %c0_i32, %arg1, %c0_i32_0 : i32, i32, i32, i32
  }
  func.func @transform_1(%arg0: i32, %arg1: i32) -> (i32, i32, i32) {
    %c0_i32 = arith.constant 0 : i32
    %c0_i32_0 = arith.constant 0 : i32
    return %arg0, %arg1, %c0_i32 : i32, i32, i32
  }
  func.func @transform_2(%arg0: i32, %arg1: i32) -> (i32, i32) {
    %c0_i32 = arith.constant 0 : i32
    %c0_i32_0 = arith.constant 0 : i32
    %c0_i32_1 = arith.constant 0 : i32
    return %c0_i32, %c0_i32_0 : i32, i32
  }
  func.func @transform_3(%arg0: i32, %arg1: i32) -> (i32, i32) {
    %c0_i32 = arith.constant 0 : i32
    %c0_i32_0 = arith.constant 0 : i32
    %c0_i32_1 = arith.constant 0 : i32
    return %c0_i32, %c0_i32_0 : i32, i32
  }
  func.func @transform_4(%arg0: i32, %arg1: i32) -> (i32, i32, i32) {
    %c0_i32 = arith.constant 0 : i32
    %c0_i32_0 = arith.constant 0 : i32
    return %arg0, %arg1, %c0_i32 : i32, i32, i32
  }
}

module attributes {stable_mosaic.version = 11 : i64} {
  func.func @_pdist_kernel(%arg0: i32, %arg1: i32, %arg2: memref<1x8x32xbf16, #tpu.memory_space<vmem>>, %arg3: memref<1x32x16xbf16, #tpu.memory_space<vmem>>, %arg4: memref<1x1x16xf32, #tpu.memory_space<vmem>>, %arg5: memref<1x8x16xbf16, #tpu.memory_space<vmem>>) attributes {dimension_semantics = [#tpu.dimension_semantics<parallel>, #tpu.dimension_semantics<parallel>], iteration_bounds = array<i64: 2, 2>, scalar_prefetch = 0 : i64, scratch_operands = 0 : i64, tpu.core_type = #tpu.core_type<tc>, window_params = [{transform_indices = @transform_0, window_bounds = array<i64: 1, 8, 32>}, {transform_indices = @transform_1, window_bounds = array<i64: 1, 32, 16>}, {transform_indices = @transform_2, window_bounds = array<i64: 1, 1, 16>}, {transform_indices = @transform_3, window_bounds = array<i64: 1, 8, 16>}]} {
    %c0 = arith.constant 0 : index
    %c0_0 = arith.constant 0 : index
    %c0_1 = arith.constant 0 : index
    %0 = vector.load %arg2[%c0, %c0_0, %c0_1] : memref<1x8x32xbf16, #tpu.memory_space<vmem>>, vector<1x8x32xbf16>
    %1 = vector.shape_cast %0 : vector<1x8x32xbf16> to vector<8x32xbf16>
    %c0_2 = arith.constant 0 : index
    %c0_3 = arith.constant 0 : index
    %c0_4 = arith.constant 0 : index
    %2 = vector.load %arg3[%c0_2, %c0_3, %c0_4] : memref<1x32x16xbf16, #tpu.memory_space<vmem>>, vector<1x32x16xbf16>
    %3 = vector.shape_cast %2 : vector<1x32x16xbf16> to vector<32x16xbf16>
    %cst = arith.constant dense<0.000000e+00> : vector<8x16xf32>
    %4 = tpu.matmul %1, %3, %cst {dimension_numbers = #tpu.dot_dimension_numbers<[1], [0], [0], [1], [0, 0, 1, 1], [], []>} : vector<8x32xbf16>, vector<32x16xbf16>, vector<8x16xf32> -> vector<8x16xf32>
    %cst_5 = arith.constant 2.000000e+00 : f32
    %5 = vector.broadcast %cst_5 : f32 to vector<8x16xf32>
    %6 = arith.mulf %5, %4 : vector<8x16xf32>
    %c0_6 = arith.constant 0 : index
    %c0_7 = arith.constant 0 : index
    %c0_8 = arith.constant 0 : index
    %7 = vector.load %arg4[%c0_6, %c0_7, %c0_8] : memref<1x1x16xf32, #tpu.memory_space<vmem>>, vector<1x1x16xf32>
    %8 = vector.shape_cast %7 : vector<1x1x16xf32> to vector<1x16xf32>
    %9 = vector.broadcast %8 : vector<1x16xf32> to vector<8x16xf32>
    %10 = arith.subf %6, %9 : vector<8x16xf32>
    %11 = arith.truncf %10 : vector<8x16xf32> to vector<8x16xbf16>
    %c0_9 = arith.constant 0 : index
    %c0_10 = arith.constant 0 : index
    %c0_11 = arith.constant 0 : index
    %12 = vector.load %arg5[%c0_9, %c0_10, %c0_11] : memref<1x8x16xbf16, #tpu.memory_space<vmem>>, vector<1x8x16xbf16>
    %13 = vector.shape_cast %12 : vector<1x8x16xbf16> to vector<8x16xbf16>
    %14 = vector.shape_cast %11 : vector<8x16xbf16> to vector<1x8x16xbf16>
    tpu.vector_store %arg5[%c0_9, %c0_10, %c0_11], %14 {strides = array<i32>} : memref<1x8x16xbf16, #tpu.memory_space<vmem>>, vector<1x8x16xbf16>,
    return
  }
  func.func @transform_0(%arg0: i32, %arg1: i32) -> (i32, i32, i32) {
    %c0_i32 = arith.constant 0 : i32
    %c0_i32_0 = arith.constant 0 : i32
    return %arg0, %arg1, %c0_i32 : i32, i32, i32
  }
  func.func @transform_1(%arg0: i32, %arg1: i32) -> (i32, i32, i32) {
    %c0_i32 = arith.constant 0 : i32
    %c0_i32_0 = arith.constant 0 : i32
    %c0_i32_1 = arith.constant 0 : i32
    return %arg0, %c0_i32, %c0_i32_0 : i32, i32, i32
  }
  func.func @transform_2(%arg0: i32, %arg1: i32) -> (i32, i32, i32) {
    %c0_i32 = arith.constant 0 : i32
    %c0_i32_0 = arith.constant 0 : i32
    %c0_i32_1 = arith.constant 0 : i32
    return %arg0, %c0_i32, %c0_i32_0 : i32, i32, i32
  }
  func.func @transform_3(%arg0: i32, %arg1: i32) -> (i32, i32, i32) {
    %c0_i32 = arith.constant 0 : i32
    %c0_i32_0 = arith.constant 0 : i32
    return %arg0, %arg1, %c0_i32 : i32, i32, i32
  }
}

module attributes {stable_mosaic.version = 11 : i64} {
  func.func @_edgeconv_kernel(%arg0: i32, %arg1: i32, %arg2: memref<1x4x8x32xbf16, #tpu.memory_space<vmem>>, %arg3: memref<1x8x32xbf16, #tpu.memory_space<vmem>>, %arg4: memref<32x32xbf16, #tpu.memory_space<vmem>>, %arg5: memref<32x32xbf16, #tpu.memory_space<vmem>>, %arg6: memref<1x8x32xbf16, #tpu.memory_space<vmem>>, %arg7: memref<4x8x32xf32, #tpu.memory_space<vmem>>) attributes {dimension_semantics = [#tpu.dimension_semantics<parallel>, #tpu.dimension_semantics<parallel>], iteration_bounds = array<i64: 2, 2>, scalar_prefetch = 0 : i64, scratch_operands = 1 : i64, tpu.core_type = #tpu.core_type<tc>, window_params = [{transform_indices = @transform_0, window_bounds = array<i64: 1, 4, 8, 32>}, {transform_indices = @transform_1, window_bounds = array<i64: 1, 8, 32>}, {pipeline_mode = #tpu.pipeline_mode<synchronous>, transform_indices = @transform_2, window_bounds = array<i64: 32, 32>}, {pipeline_mode = #tpu.pipeline_mode<synchronous>, transform_indices = @transform_3, window_bounds = array<i64: 32, 32>}, {transform_indices = @transform_4, window_bounds = array<i64: 1, 8, 32>}]} {
    %c0 = arith.constant 0 : index
    %c0_0 = arith.constant 0 : index
    %c0_1 = arith.constant 0 : index
    %c0_2 = arith.constant 0 : index
    %0 = vector.load %arg2[%c0, %c0_0, %c0_1, %c0_2] : memref<1x4x8x32xbf16, #tpu.memory_space<vmem>>, vector<1x4x8x32xbf16>
    %1 = vector.shape_cast %0 : vector<1x4x8x32xbf16> to vector<4x8x32xbf16>
    %2 = vector.shape_cast %1 : vector<4x8x32xbf16> to vector<32x32xbf16>
    %c0_3 = arith.constant 0 : index
    %c0_4 = arith.constant 0 : index
    %3 = vector.load %arg4[%c0_3, %c0_4] : memref<32x32xbf16, #tpu.memory_space<vmem>>, vector<32x32xbf16>
    %cst = arith.constant dense<0.000000e+00> : vector<32x32xf32>
    %4 = tpu.matmul %2, %3, %cst {dimension_numbers = #tpu.dot_dimension_numbers<[1], [0], [0], [1], [0, 0, 1, 1], [], []>} : vector<32x32xbf16>, vector<32x32xbf16>, vector<32x32xf32> -> vector<32x32xf32>
    %5 = vector.shape_cast %4 : vector<32x32xf32> to vector<4x8x32xf32>
    %c0_5 = arith.constant 0 : index
    %c0_6 = arith.constant 0 : index
    %c0_7 = arith.constant 0 : index
    %6 = vector.load %arg7[%c0_5, %c0_6, %c0_7] : memref<4x8x32xf32, #tpu.memory_space<vmem>>, vector<4x8x32xf32>
    tpu.vector_store %arg7[%c0_5, %c0_6, %c0_7], %5 {strides = array<i32>} : memref<4x8x32xf32, #tpu.memory_space<vmem>>, vector<4x8x32xf32>,
    %c0_8 = arith.constant 0 : index
    %c0_9 = arith.constant 0 : index
    %c0_10 = arith.constant 0 : index
    %7 = vector.load %arg3[%c0_8, %c0_9, %c0_10] : memref<1x8x32xbf16, #tpu.memory_space<vmem>>, vector<1x8x32xbf16>
    %8 = vector.shape_cast %7 : vector<1x8x32xbf16> to vector<8x32xbf16>
    %c0_11 = arith.constant 0 : index
    %c0_12 = arith.constant 0 : index
    %9 = vector.load %arg5[%c0_11, %c0_12] : memref<32x32xbf16, #tpu.memory_space<vmem>>, vector<32x32xbf16>
    %cst_13 = arith.constant dense<0.000000e+00> : vector<8x32xf32>
    %10 = tpu.matmul %8, %9, %cst_13 {dimension_numbers = #tpu.dot_dimension_numbers<[1], [0], [0], [1], [0, 0, 1, 1], [], []>} : vector<8x32xbf16>, vector<32x32xbf16>, vector<8x32xf32> -> vector<8x32xf32>
    %c0_14 = arith.constant 0 : index
    %c0_15 = arith.constant 0 : index
    %c0_16 = arith.constant 0 : index
    %11 = vector.load %arg7[%c0_14, %c0_15, %c0_16] : memref<4x8x32xf32, #tpu.memory_space<vmem>>, vector<1x8x32xf32>
    %12 = vector.shape_cast %11 : vector<1x8x32xf32> to vector<8x32xf32>
    %13 = arith.addf %12, %10 : vector<8x32xf32>
    %cst_17 = arith.constant 0.000000e+00 : f32
    %14 = vector.broadcast %cst_17 : f32 to vector<8x32xf32>
    %15 = arith.cmpf oge, %13, %14 : vector<8x32xf32>
    %cst_18 = arith.constant 0.00999999977 : f32
    %16 = vector.broadcast %cst_18 : f32 to vector<8x32xf32>
    %17 = arith.mulf %16, %13 : vector<8x32xf32>
    %18 = arith.select %15, %13, %17 : vector<8x32xi1>, vector<8x32xf32>
    %c1 = arith.constant 1 : index
    %c0_19 = arith.constant 0 : index
    %c0_20 = arith.constant 0 : index
    %19 = vector.load %arg7[%c1, %c0_19, %c0_20] : memref<4x8x32xf32, #tpu.memory_space<vmem>>, vector<1x8x32xf32>
    %20 = vector.shape_cast %19 : vector<1x8x32xf32> to vector<8x32xf32>
    %21 = arith.addf %20, %10 : vector<8x32xf32>
    %cst_21 = arith.constant 0.000000e+00 : f32
    %22 = vector.broadcast %cst_21 : f32 to vector<8x32xf32>
    %23 = arith.cmpf oge, %21, %22 : vector<8x32xf32>
    %cst_22 = arith.constant 0.00999999977 : f32
    %24 = vector.broadcast %cst_22 : f32 to vector<8x32xf32>
    %25 = arith.mulf %24, %21 : vector<8x32xf32>
    %26 = arith.select %23, %21, %25 : vector<8x32xi1>, vector<8x32xf32>
    %27 = arith.maximumf %18, %26 : vector<8x32xf32>
    %c2 = arith.constant 2 : index
    %c0_23 = arith.constant 0 : index
    %c0_24 = arith.constant 0 : index
    %28 = vector.load %arg7[%c2, %c0_23, %c0_24] : memref<4x8x32xf32, #tpu.memory_space<vmem>>, vector<1x8x32xf32>
    %29 = vector.shape_cast %28 : vector<1x8x32xf32> to vector<8x32xf32>
    %30 = arith.addf %29, %10 : vector<8x32xf32>
    %cst_25 = arith.constant 0.000000e+00 : f32
    %31 = vector.broadcast %cst_25 : f32 to vector<8x32xf32>
    %32 = arith.cmpf oge, %30, %31 : vector<8x32xf32>
    %cst_26 = arith.constant 0.00999999977 : f32
    %33 = vector.broadcast %cst_26 : f32 to vector<8x32xf32>
    %34 = arith.mulf %33, %30 : vector<8x32xf32>
    %35 = arith.select %32, %30, %34 : vector<8x32xi1>, vector<8x32xf32>
    %36 = arith.maximumf %27, %35 : vector<8x32xf32>
    %c3 = arith.constant 3 : index
    %c0_27 = arith.constant 0 : index
    %c0_28 = arith.constant 0 : index
    %37 = vector.load %arg7[%c3, %c0_27, %c0_28] : memref<4x8x32xf32, #tpu.memory_space<vmem>>, vector<1x8x32xf32>
    %38 = vector.shape_cast %37 : vector<1x8x32xf32> to vector<8x32xf32>
    %39 = arith.addf %38, %10 : vector<8x32xf32>
    %cst_29 = arith.constant 0.000000e+00 : f32
    %40 = vector.broadcast %cst_29 : f32 to vector<8x32xf32>
    %41 = arith.cmpf oge, %39, %40 : vector<8x32xf32>
    %cst_30 = arith.constant 0.00999999977 : f32
    %42 = vector.broadcast %cst_30 : f32 to vector<8x32xf32>
    %43 = arith.mulf %42, %39 : vector<8x32xf32>
    %44 = arith.select %41, %39, %43 : vector<8x32xi1>, vector<8x32xf32>
    %45 = arith.maximumf %36, %44 : vector<8x32xf32>
    %46 = arith.truncf %45 : vector<8x32xf32> to vector<8x32xbf16>
    %c0_31 = arith.constant 0 : index
    %c0_32 = arith.constant 0 : index
    %c0_33 = arith.constant 0 : index
    %47 = vector.load %arg6[%c0_31, %c0_32, %c0_33] : memref<1x8x32xbf16, #tpu.memory_space<vmem>>, vector<1x8x32xbf16>
    %48 = vector.shape_cast %47 : vector<1x8x32xbf16> to vector<8x32xbf16>
    %49 = vector.shape_cast %46 : vector<8x32xbf16> to vector<1x8x32xbf16>
    tpu.vector_store %arg6[%c0_31, %c0_32, %c0_33], %49 {strides = array<i32>} : memref<1x8x32xbf16, #tpu.memory_space<vmem>>, vector<1x8x32xbf16>,
    return
  }
  func.func @transform_0(%arg0: i32, %arg1: i32) -> (i32, i32, i32, i32) {
    %c0_i32 = arith.constant 0 : i32
    %c0_i32_0 = arith.constant 0 : i32
    %c0_i32_1 = arith.constant 0 : i32
    return %arg0, %c0_i32, %arg1, %c0_i32_0 : i32, i32, i32, i32
  }
  func.func @transform_1(%arg0: i32, %arg1: i32) -> (i32, i32, i32) {
    %c0_i32 = arith.constant 0 : i32
    %c0_i32_0 = arith.constant 0 : i32
    return %arg0, %arg1, %c0_i32 : i32, i32, i32
  }
  func.func @transform_2(%arg0: i32, %arg1: i32) -> (i32, i32) {
    %c0_i32 = arith.constant 0 : i32
    %c0_i32_0 = arith.constant 0 : i32
    %c0_i32_1 = arith.constant 0 : i32
    return %c0_i32, %c0_i32_0 : i32, i32
  }
  func.func @transform_3(%arg0: i32, %arg1: i32) -> (i32, i32) {
    %c0_i32 = arith.constant 0 : i32
    %c0_i32_0 = arith.constant 0 : i32
    %c0_i32_1 = arith.constant 0 : i32
    return %c0_i32, %c0_i32_0 : i32, i32
  }
  func.func @transform_4(%arg0: i32, %arg1: i32) -> (i32, i32, i32) {
    %c0_i32 = arith.constant 0 : i32
    %c0_i32_0 = arith.constant 0 : i32
    return %arg0, %arg1, %c0_i32 : i32, i32, i32
  }
}

module attributes {stable_mosaic.version = 11 : i64} {
  func.func @_pool_conv_kernel(%arg0: i32, %arg1: i32, %arg2: memref<1x8x64xbf16, #tpu.memory_space<vmem>>, %arg3: memref<64x64xbf16, #tpu.memory_space<vmem>>, %arg4: memref<1x1x128xf32, #tpu.memory_space<vmem>>, %arg5: memref<1x64xf32, #tpu.memory_space<vmem>>, %arg6: memref<1x64xf32, #tpu.memory_space<vmem>>) attributes {dimension_semantics = [#tpu.dimension_semantics<parallel>, #tpu.dimension_semantics<arbitrary>], iteration_bounds = array<i64: 2, 2>, scalar_prefetch = 0 : i64, scratch_operands = 2 : i64, tpu.core_type = #tpu.core_type<tc>, window_params = [{transform_indices = @transform_0, window_bounds = array<i64: 1, 8, 64>}, {pipeline_mode = #tpu.pipeline_mode<synchronous>, transform_indices = @transform_1, window_bounds = array<i64: 64, 64>}, {transform_indices = @transform_2, window_bounds = array<i64: 1, 1, 128>}]} {
    %c0 = arith.constant 0 : index
    %c0_0 = arith.constant 0 : index
    %c0_1 = arith.constant 0 : index
    %0 = vector.load %arg2[%c0, %c0_0, %c0_1] : memref<1x8x64xbf16, #tpu.memory_space<vmem>>, vector<1x8x64xbf16>
    %1 = vector.shape_cast %0 : vector<1x8x64xbf16> to vector<8x64xbf16>
    %c0_2 = arith.constant 0 : index
    %c0_3 = arith.constant 0 : index
    %2 = vector.load %arg3[%c0_2, %c0_3] : memref<64x64xbf16, #tpu.memory_space<vmem>>, vector<64x64xbf16>
    %cst = arith.constant dense<0.000000e+00> : vector<8x64xf32>
    %3 = tpu.matmul %1, %2, %cst {dimension_numbers = #tpu.dot_dimension_numbers<[1], [0], [0], [1], [0, 0, 1, 1], [], []>} : vector<8x64xbf16>, vector<64x64xbf16>, vector<8x64xf32> -> vector<8x64xf32>
    %cst_4 = arith.constant 0.000000e+00 : f32
    %4 = vector.broadcast %cst_4 : f32 to vector<8x64xf32>
    %5 = arith.cmpf oge, %3, %4 : vector<8x64xf32>
    %cst_5 = arith.constant 0.00999999977 : f32
    %6 = vector.broadcast %cst_5 : f32 to vector<8x64xf32>
    %7 = arith.mulf %6, %3 : vector<8x64xf32>
    %8 = arith.select %5, %3, %7 : vector<8x64xi1>, vector<8x64xf32>
    %cst_6 = arith.constant dense<0xFF800000> : vector<64xf32>
    %9 = vector.multi_reduction <maximumf>, %8, %cst_6 [0] : vector<8x64xf32> to vector<64xf32>
    %10 = vector.shape_cast %9 : vector<64xf32> to vector<1x64xf32>
    %c0_i32 = arith.constant 0 : i32
    %11 = arith.cmpi eq, %arg1, %c0_i32 : i32
    %12 = arith.extui %11 : i1 to i32
    %c0_i32_7 = arith.constant 0 : i32
    %13 = arith.cmpi ne, %12, %c0_i32_7 : i32
    scf.if %13 {
      %c0_16 = arith.constant 0 : index
      %c0_17 = arith.constant 0 : index
      %28 = vector.load %arg5[%c0_16, %c0_17] : memref<1x64xf32, #tpu.memory_space<vmem>>, vector<1x64xf32>
      tpu.vector_store %arg5[%c0_16, %c0_17], %10 {strides = array<i32>} : memref<1x64xf32, #tpu.memory_space<vmem>>, vector<1x64xf32>,
    } else {
    }
    %c0_i32_8 = arith.constant 0 : i32
    %14 = arith.cmpi sgt, %arg1, %c0_i32_8 : i32
    %15 = arith.extui %14 : i1 to i32
    %c0_i32_9 = arith.constant 0 : i32
    %16 = arith.cmpi ne, %15, %c0_i32_9 : i32
    scf.if %16 {
      %c0_16 = arith.constant 0 : index
      %c0_17 = arith.constant 0 : index
      %28 = vector.load %arg5[%c0_16, %c0_17] : memref<1x64xf32, #tpu.memory_space<vmem>>, vector<1x64xf32>
      %29 = arith.maximumf %28, %10 : vector<1x64xf32>
      %c0_18 = arith.constant 0 : index
      %c0_19 = arith.constant 0 : index
      %30 = vector.load %arg5[%c0_18, %c0_19] : memref<1x64xf32, #tpu.memory_space<vmem>>, vector<1x64xf32>
      tpu.vector_store %arg5[%c0_18, %c0_19], %29 {strides = array<i32>} : memref<1x64xf32, #tpu.memory_space<vmem>>, vector<1x64xf32>,
    } else {
    }
    %cst_10 = arith.constant dense<0.000000e+00> : vector<64xf32>
    %17 = vector.multi_reduction <add>, %8, %cst_10 [0] : vector<8x64xf32> to vector<64xf32>
    %18 = vector.shape_cast %17 : vector<64xf32> to vector<1x64xf32>
    %c0_i32_11 = arith.constant 0 : i32
    %19 = arith.cmpi eq, %arg1, %c0_i32_11 : i32
    %20 = arith.extui %19 : i1 to i32
    %c0_i32_12 = arith.constant 0 : i32
    %21 = arith.cmpi ne, %20, %c0_i32_12 : i32
    scf.if %21 {
      %c0_16 = arith.constant 0 : index
      %c0_17 = arith.constant 0 : index
      %28 = vector.load %arg6[%c0_16, %c0_17] : memref<1x64xf32, #tpu.memory_space<vmem>>, vector<1x64xf32>
      tpu.vector_store %arg6[%c0_16, %c0_17], %18 {strides = array<i32>} : memref<1x64xf32, #tpu.memory_space<vmem>>, vector<1x64xf32>,
    } else {
    }
    %c0_i32_13 = arith.constant 0 : i32
    %22 = arith.cmpi sgt, %arg1, %c0_i32_13 : i32
    %23 = arith.extui %22 : i1 to i32
    %c0_i32_14 = arith.constant 0 : i32
    %24 = arith.cmpi ne, %23, %c0_i32_14 : i32
    scf.if %24 {
      %c0_16 = arith.constant 0 : index
      %c0_17 = arith.constant 0 : index
      %28 = vector.load %arg6[%c0_16, %c0_17] : memref<1x64xf32, #tpu.memory_space<vmem>>, vector<1x64xf32>
      %29 = arith.addf %28, %18 : vector<1x64xf32>
      %c0_18 = arith.constant 0 : index
      %c0_19 = arith.constant 0 : index
      %30 = vector.load %arg6[%c0_18, %c0_19] : memref<1x64xf32, #tpu.memory_space<vmem>>, vector<1x64xf32>
      tpu.vector_store %arg6[%c0_18, %c0_19], %29 {strides = array<i32>} : memref<1x64xf32, #tpu.memory_space<vmem>>, vector<1x64xf32>,
    } else {
    }
    %c1_i32 = arith.constant 1 : i32
    %25 = arith.cmpi eq, %arg1, %c1_i32 : i32
    %26 = arith.extui %25 : i1 to i32
    %c0_i32_15 = arith.constant 0 : i32
    %27 = arith.cmpi ne, %26, %c0_i32_15 : i32
    scf.if %27 {
      %c0_16 = arith.constant 0 : index
      %c0_17 = arith.constant 0 : index
      %28 = vector.load %arg5[%c0_16, %c0_17] : memref<1x64xf32, #tpu.memory_space<vmem>>, vector<1x64xf32>
      %c0_18 = arith.constant 0 : index
      %c0_19 = arith.constant 0 : index
      %29 = vector.load %arg6[%c0_18, %c0_19] : memref<1x64xf32, #tpu.memory_space<vmem>>, vector<1x64xf32>
      %cst_20 = arith.constant 6.250000e-02 : f32
      %30 = vector.broadcast %cst_20 : f32 to vector<1x64xf32>
      %31 = arith.mulf %29, %30 : vector<1x64xf32>
      %32 = tpu.concatenate %28, %31 in 1 : vector<1x64xf32>, vector<1x64xf32> -> vector<1x128xf32>
      %33 = vector.shape_cast %32 : vector<1x128xf32> to vector<1x1x128xf32>
      %c0_21 = arith.constant 0 : index
      %c0_22 = arith.constant 0 : index
      %c0_23 = arith.constant 0 : index
      %34 = vector.load %arg4[%c0_21, %c0_22, %c0_23] : memref<1x1x128xf32, #tpu.memory_space<vmem>>, vector<1x1x128xf32>
      tpu.vector_store %arg4[%c0_21, %c0_22, %c0_23], %33 {strides = array<i32>} : memref<1x1x128xf32, #tpu.memory_space<vmem>>, vector<1x1x128xf32>,
    } else {
    }
    return
  }
  func.func @transform_0(%arg0: i32, %arg1: i32) -> (i32, i32, i32) {
    %c0_i32 = arith.constant 0 : i32
    %c0_i32_0 = arith.constant 0 : i32
    return %arg0, %arg1, %c0_i32 : i32, i32, i32
  }
  func.func @transform_1(%arg0: i32, %arg1: i32) -> (i32, i32) {
    %c0_i32 = arith.constant 0 : i32
    %c0_i32_0 = arith.constant 0 : i32
    %c0_i32_1 = arith.constant 0 : i32
    return %c0_i32, %c0_i32_0 : i32, i32
  }
  func.func @transform_2(%arg0: i32, %arg1: i32) -> (i32, i32, i32) {
    %c0_i32 = arith.constant 0 : i32
    %c0_i32_0 = arith.constant 0 : i32
    %c0_i32_1 = arith.constant 0 : i32
    return %arg0, %c0_i32, %c0_i32_0 : i32, i32, i32
  }
}

</mosaic_0001>

<bundles_post_ra>
// kernel: _lambda_.9
= control target key start
LH: loop header
LB: loop body
LE: loop exit
PB: predicated region body
PF: predicated region fallthrough
CT: control target
= control target key end

     0   :  { %s534_s12 = smov 0   ;;  %s536_s13 = smov 0   ;;  %s591_s0 = inlined_call_operand.vmem [shape: bf16[2,16,3], index: 0, kind: input, shape index: {}]   ;;  %s592_s1 = inlined_call_operand.vmem [shape: bf16[2,3,16], index: 1, kind: input, shape index: {}]   ;;  %s593_s2 = inlined_call_operand.vmem [shape: f32[2,1,16], index: 2, kind: input, shape index: {}]   ;;  %s594_s3 = inlined_call_operand.vmem [shape: bf16[2,16,16], index: 3, kind: output, shape index: {}]  }
   0x1   :  { %s538_s14 = smov 0   ;;  %s540_s15 = smov 0  }
   0x2   :  { %s542_s16 = smov 0  }
   0x3 LB: > { %s22_s17 = sadd.s32 1, %s501_s14  ;;  %s25_s18 = sadd.s32 1, %s505_s15  ;;  %s509_s16 = sphi %s542_s16, %s13_s16   ;;  %s505_s15 = sphi %s540_s15, %s598_s15   ;;  %s501_s14 = sphi %s538_s14, %s597_s14   ;;  %s497_s13 = sphi %s536_s13, %s596_s13   ;;  %s493_s12 = sphi %s534_s12, %s595_s12  }
   0x4   : > { %p23_p0 = scmp.ge.s32.totalorder %s22_s17, 2  ;;  %p410_p1 = scmp.ge.s32.totalorder %s509_s16, 1 }
   0x5   : > { %p173_p2 = scmp.lt.s32.totalorder %s509_s16, 5 }
   0x6   : > { %s600_s17 = smov (%p23_p0, %s22_s17), 0  ;;  %s602_s18 = smov (!%p23_p0, %s25_s18), %s505_s15 }
   0x7   : > { %p174_p3 = pnand %p410_p1, %p173_p2  ;;  %p27_p4 = scmp.ge.s32.totalorder %s602_s18, 2 }
   0x8   : > { %p210_p5 = scmp.lt.s32.totalorder (!%p174_p3), %s497_s13, 1  ;;  %p212_p6 = scmp.lt.s32.totalorder (!%p174_p3), %s493_s12, 1  ;;  %vm240_vm0 = vcmask (!%p174_p3), 1040384   ;;  %v511_v0 = vmov (!%p174_p3), 0.0   ;;  %vm241_vm1 = vcmask (!%p174_p3), 1041408   ;;  %v512_v1 = vmov (!%p174_p3), 65535  }
   0x9   : > { %s604_s18 = smov (%p27_p4, %s602_s18), 0  ;;  %177 = sbr.rel (%p174_p3) target bundleno = 244 (0xf4), region = 32 }
   0xa   : > { %422 = vmatprep.subr.bf16.mxu0 (!%p174_p3), %v511_v0  ;;  %v242_v2 = vsel (!%p174_p3), %vm240_vm0, 4294967295, %v512_v1  ;;  %vm513_vm2 = vmmov (!%p174_p3), 0   ;;  %vm236_vm3 = vcmask (!%p174_p3), 23552   ;;  %vm297_vm4 = vcmask (!%p174_p3), 125952  }
   0xb   : > { %424 = vmatprep.mubr.msk.bf16.mxu0 (!%p174_p3), %vm513_vm2, %v511_v0  ;;  %v243_v3 = vsel (!%p174_p3), %vm241_vm1, %v242_v2, 0 }
  0x10   : > { %s606_s13 = smov (!%p210_p5, %s497_s13), 1  ;;  %s608_s12 = smov (!%p212_p6, %s493_s12), 1 }
  0x11   : > { %s411_s19 = sshll.u32 %s606_s13, 1  ;;  %s224_s30 = scalar_lea.vmem %s593_s2, %s606_s13 }
  0x12   : > { %s215_s20 = sadd.s32 %s411_s19, %s608_s12  ;;  %s221_s23 = scalar_lea.vmem %s592_s1, %s411_s19  ;;  %v417_v8 = vld [vmem:[%s224_s30] ss:$0 sm:$0xff] }
  0x13   : > { %v235_v4 = vld [vmem:[%s221_s23] sm:$0x3]  ;;  %s412_s24 = sshll.u32 %s215_s20, 2 }
  0x14   : > { %v245_v5 = vand.u32 %v243_v3, %v235_v4  ;;  %s217_s27 = scalar_lea.vmem %s591_s0, %s412_s24  ;;  %s232_s6 = scalar_lea.vmem %s594_s3, %s412_s24 }
  0x15   : > { %v234_v6 = vld [vmem:[%s217_s27] sm:$0xf] }
  0x16   : > { %423 = vmatpush3.bf16.msra.mxu0 %v245_v5 }
  0x19   : > { %425 = vmatmul.mubr.msk.bf16.vlgmr.msra.gmra.mrb[0].mxu0 %vm236_vm3, %v234_v6 }
  0xec   : > { %v281_v7 = vpop.f32.mrb[0].mxu0 }
  0xed   : > { %v287_v9 = vmul.f32 2.0, %v281_v7  ;;  %v426_v10 = vpop.f32.mrb[1].mxu0 }
  0xee   : > { %v284_v11 = vpop.f32.mrb[2].mxu0 }
  0xef   : > { %v295_v12 = vsub.f32 %v287_v9, %v417_v8  ;;  %v427_v13 = vpop.f32.mrb[3].mxu0 }
  0xf1   : > { %v296_v14 = vpack.c.bf16 %v295_v12, %v295_v12 }
  0xf3   : > { %298 = vst.msk [vmem:[%s232_s6] sm:$0xf] %vm297_vm4, %v296_v14 }
  0xf4 PF: > { %s13_s16 = sadd.s32 1, %s509_s16   ;;  %s595_s12 = smov %s501_s14 }
  0xf5   : > { %p10_p7 = scmp.ge.s32.totalorder %s13_s16, 6   ;;  %s596_s13 = smov %s505_s15 }
  0xf6   : > { %s597_s14 = smov %s600_s17  ;;  %s598_s15 = smov %s604_s18 }
  0xf7   :  { %12 = sbr.rel (!%p10_p7) target bundleno = 3 (0x3), region = 68 }

// kernel: _lambda_.10
= control target key start
LH: loop header
LB: loop body
LE: loop exit
PB: predicated region body
PF: predicated region fallthrough
CT: control target
= control target key end

     0   :  { %s1086_s18 = smov 0   ;;  %s1088_s19 = smov 0   ;;  %s1243_s0 = inlined_call_operand.vmem [shape: bf16[2,4,16,3], index: 0, kind: input, shape index: {}]   ;;  %s1244_s1 = inlined_call_operand.vmem [shape: bf16[2,16,3], index: 1, kind: input, shape index: {}]   ;;  %s1245_s2 = inlined_call_operand.vmem [shape: bf16[3,64], index: 2, kind: input, shape index: {}]   ;;  %s1246_s3 = inlined_call_operand.vmem [shape: bf16[3,64], index: 3, kind: input, shape index: {}]   ;;  %s1247_s4 = inlined_call_operand.vmem [shape: bf16[64,128], index: 4, kind: input, shape index: {}]   ;;  %s1248_s5 = inlined_call_operand.vmem [shape: bf16[2,16,128], index: 5, kind: output, shape index: {}]  }
   0x1   :  { %s1090_s20 = smov 0   ;;  %s1092_s21 = smov 0  }
   0x2   :  { %s1094_s22 = smov 0   ;;  %s1096_s23 = smov 0  }
   0x3   :  { %s1098_s24 = smov 0  }
   0x4 LB: > { %s24_s25 = sadd.s32 1, %s1043_s22  ;;  %s27_s26 = sadd.s32 1, %s1047_s23  ;;  %s1051_s24 = sphi %s1098_s24, %s15_s24   ;;  %s1047_s23 = sphi %s1096_s23, %s1254_s23   ;;  %s1043_s22 = sphi %s1094_s22, %s1253_s22   ;;  %s1039_s21 = sphi %s1092_s21, %s1252_s21   ;;  %s1035_s20 = sphi %s1090_s20, %s1251_s20   ;;  %s1031_s19 = sphi %s1088_s19, %s1250_s19   ;;  %s1027_s18 = sphi %s1086_s18, %s1249_s18  }
   0x5   : > { %p25_p0 = scmp.ge.s32.totalorder %s24_s25, 2  ;;  %p43_p1 = scmp.ne.s32.totalorder %s1031_s19, %s1027_s18 }
   0x6   : > { %p44_p2 = scmp.eq.s32.totalorder %s1051_s24, 0  ;;  %s36_s30 = sadd.s32 1, %s1031_s19 }
   0x7   : > { %s1256_s25 = smov (%p25_p0, %s24_s25), 0  ;;  %s1258_s26 = smov (!%p25_p0, %s27_s26), %s1047_s23 }
   0x8   : > { %p45_p3 = por %p44_p2, %p43_p1  ;;  %p29_p4 = scmp.ge.s32.totalorder %s1258_s26, 2 }
   0x9   : > { %s32_s27 = ssub.s32 %s1043_s22, %s1256_s25  ;;  %p822_p6 = scmp.ge.s32.totalorder %s1051_s24, 4 }
   0xa   : > { %s1260_s26 = smov (%p29_p4, %s1258_s26), 0 }
   0xb   : > { %s31_s28 = ssub.s32 %s1047_s23, %s1260_s26  ;;  %197 = sbr.rel (%p822_p6) target bundleno = 26 (0x1a), region = 28 }
   0xc   : > { %s33_s29 = sor.u32 %s32_s27, %s31_s28 }
   0xd   : > { %p34_p5 = scmp.eq.s32.totalorder %s33_s29, 0 }
   0xf   : > { %s1137_s6 = scalar_select %p34_p5, %s1031_s19, %s36_s30  }
  0x12   : > { %200 = sbr.rel (!%p45_p3) target bundleno = 26 (0x1a), region = 32  ;;  %s202_s7 = sand.u32 (%p45_p3), 1, %s1031_s19  }
  0x13   : > { %s824_s8 = sshll.u32 (%p45_p3), %s1047_s23, 3  ;;  %s823_s9 = sshll.u32 (%p45_p3), %s202_s7, 4 }
  0x14   : > { %s206_s10 = sadd.s32 (%p45_p3), %s1043_s22, %s824_s8  ;;  %s204_s15 = scalar_lea.vmem (%p45_p3), [#allocation3], %s823_s9 }
  0x15   : > { %s825_s11 = sshll.u32 (%p45_p3), %s206_s10, 2 }
  0x16   : > { %s208_s14 = scalar_lea.vmem (%p45_p3), %s1243_s0, %s825_s11 }
  0x17   : > { %v224_v0 = vld [vmem:[%s208_s14] sm:$0xf] (%p45_p3)  ;;  %v226_v1 = vld [vmem:[%s208_s14 + $0x8] sm:$0xf] (%p45_p3)  ;;  %v228_v2 = vld [vmem:[%s208_s14 + $0x10] sm:$0xf] (%p45_p3) }
  0x18   : > { %225 = vst [vmem:[%s204_s15] sm:$0xf] (%p45_p3), %v224_v0  ;;  %227 = vst [vmem:[%s204_s15 + $0x4] sm:$0xf] (%p45_p3), %v226_v1  ;;  %v230_v3 = vld [vmem:[%s208_s14 + $0x18] sm:$0xf] (%p45_p3) }
  0x19   : > { %229 = vst [vmem:[%s204_s15 + $0x8] sm:$0xf] %v228_v2  ;;  %231 = vst [vmem:[%s204_s15 + $0xc] sm:$0xf] %v230_v3 }
  0x1a PF: > { %p826_p7 = scmp.ge.s32.totalorder %s1051_s24, 1  ;;  %p272_p8 = scmp.lt.s32.totalorder %s1051_s24, 5 }
  0x1c   : > { %p273_p9 = pnand %p826_p7, %p272_p8 }
  0x1d   : > { %v338_v4 = vld [vmem:[%s1245_s2] sm:$0x3] (!%p273_p9)  ;;  %vm356_vm0 = vcmask (!%p273_p9), 1040384   ;;  %vm357_vm1 = vcmask (!%p273_p9), 1041408   ;;  %s279_s27 = sand.u32 (!%p273_p9), 1, %s1027_s18   ;;  %v1053_v5 = vmov (!%p273_p9), 65535  }
  0x1e   : > { %276 = sbr.rel (%p273_p9) target bundleno = 504 (0x1f8), region = 77  ;;  %v358_v6 = vsel (!%p273_p9), %vm356_vm0, 4294967295, %v1053_v5  ;;  %s827_s28 = sshll.u32 (!%p273_p9), %s279_s27, 4  ;;  %vm349_vm2 = vcmask (!%p273_p9), 23552   ;;  %v418_v7 = vld [vmem:[%s1246_s3] sm:$0x3] (!%p273_p9) }
  0x1f   : > { %v359_v8 = vsel (!%p273_p9), %vm357_vm1, %v358_v6, 0  ;;  %v1054_v9 = vmov (!%p273_p9), 0.0   ;;  %p317_p10 = scmp.lt.s32.totalorder (!%p273_p9), %s1039_s21, 1  ;;  %s281_s7 = scalar_lea.vmem (!%p273_p9), [#allocation3], %s827_s28  ;;  %vm1055_vm3 = vmmov (!%p273_p9), 0   ;;  %v993_v15 = vld [vmem:[%s1247_s4] sm:$0xff] (!%p273_p9)  }
  0x20   : > { %878 = vmatprep.subr.bf16.mxu1 (!%p273_p9), %v1054_v9  ;;  %v361_v10 = vand.u32 (!%p273_p9), %v359_v8, %v338_v4  ;;  %v991_v11 = vld [vmem:[%s281_s7] sm:$0xff] (!%p273_p9)   ;;  %v423_v12 = vand.u32 (!%p273_p9), %v418_v7, %v359_v8  ;;  %880 = vmatprep.mubr.msk.bf16.mxu1 (!%p273_p9), %vm1055_vm3, %v1054_v9  ;;  %p319_p11 = scmp.lt.s32.totalorder (!%p273_p9), %s1035_s20, 1  ;;  %v992_v13 = vld [vmem:[%s281_s7 + $0x8] sm:$0xff] (!%p273_p9)   ;;  %vm412_vm4 = vcmask (!%p273_p9), 523264  }
  0x21   : > { %874 = vmatprep.mubr.msk.bf16.mxu0 (!%p273_p9), %vm349_vm2, %v991_v11  ;;  %v994_v16 = vld [vmem:[%s1247_s4 + $0x8] sm:$0xff] (!%p273_p9)   ;;  %v995_v17 = vld [vmem:[%s1247_s4 + $0x10] sm:$0xff] (!%p273_p9)   ;;  %v996_v18 = vld [vmem:[%s1247_s4 + $0x18] sm:$0xff] (!%p273_p9)  }
  0x22   : > { %872 = vmatprep.subr.bf16.mxu0 (!%p273_p9), %v361_v10  ;;  %879 = vmatpush3.bf16.msra.mxu1 (!%p273_p9), %v423_v12 }
  0x23   : > { %873 = vmatpush3.bf16.msra.mxu0 (!%p273_p9), %v361_v10  ;;  %896 = vmatprep.subr.bf16.mxu1 (!%p273_p9), %v1054_v9 }
  0x24   : > { %884 = vmatprep.subr.bf16.mxu0 (!%p273_p9), %v1054_v9 }
  0x25   : > { %s1262_s21 = smov (!%p317_p10, %s1039_s21), 1  ;;  %s1264_s20 = smov (!%p319_p11, %s1035_s20), 1 }
  0x26   : > { %s828_s18 = sshll.u32 %s1262_s21, 1  ;;  %875 = vmatmul.mubr.msk.bf16.vlgmr.msra.gmra.mrb[0].mxu0 %vm349_vm2, %v992_v13 }
  0x27   : > { %s1163_s8 = sadd.s32 %s828_s18, %s1264_s20  ;;  %892 = vmatprep.mubr.msk.bf16.mxu0 %vm1055_vm3, %v1054_v9  ;;  %885 = vmatpush3.bf16.msra.mxu0 %v993_v15 }
  0x28   : > { %s829_s9 = sshll.u32 %s1163_s8, 2  ;;  %886 = vmatprep.subr.bf16.mxu0 %v1054_v9 }
  0x29   : > { %s324_s12 = scalar_lea.vmem %s1244_s1, %s829_s9  ;;  %s332_s30 = scalar_lea.vmem %s1248_s5, %s829_s9 }
  0x2a   : > { %v417_v14 = vld [vmem:[%s324_s12] sm:$0xf] }
  0x2b   : > { %881 = vmatmul.mubr.msk.bf16.vlgmr.msra.gmra.mrb[0].mxu1 %vm349_vm2, %v417_v14  ;;  %887 = vmatpush3.bf16.msra.mxu0 %v994_v16 }
  0x2c   : > { %904 = vmatprep.mubr.msk.bf16.mxu1 %vm1055_vm3, %v1054_v9  ;;  %897 = vmatpush3.bf16.msra.mxu1 %v993_v15 }
  0x2d   : > { %898 = vmatprep.subr.bf16.mxu1 %v1054_v9  ;;  %888 = vmatprep.subr.bf16.mxu0 %v1054_v9 }
  0x2f   : > { %889 = vmatpush3.bf16.msra.mxu0 %v995_v17 }
  0x30   : > { %899 = vmatpush3.bf16.msra.mxu1 %v994_v16  ;;  %890 = vmatprep.subr.bf16.mxu0 %v1054_v9 }
  0x31   : > { %900 = vmatprep.subr.bf16.mxu1 %v1054_v9 }
  0x33   : > { %891 = vmatpush3.bf16.msra.mxu0 %v996_v18 }
  0x34   : > { %901 = vmatpush3.bf16.msra.mxu1 %v995_v17  ;;  %908 = vmatprep.subr.bf16.mxu0 %v1054_v9 }
  0x35   : > { %902 = vmatprep.subr.bf16.mxu1 %v1054_v9 }
  0x38   : > { %903 = vmatpush3.bf16.msra.mxu1 %v996_v18 }
  0x39   : > { %920 = vmatprep.subr.bf16.mxu1 %v1054_v9 }
  0xf9   : > { %v876_v19 = vpop.f32.mrb[0].mxu0 }
  0xfa   : > { %415 = vst.msk [vmem:[#allocation2 + $0x10] sm:$0xff] %vm412_vm4, %v876_v19  ;;  %v397_v20 = vpop.f32.mrb[1].mxu0 }
  0xfb   : > { %413 = vst.msk [vmem:[#allocation2] sm:$0xff] %vm412_vm4, %v397_v20  ;;  %v877_v21 = vpop.f32.mrb[2].mxu0 }
  0xfc   : > { %416 = vst.msk [vmem:[#allocation2 + $0x18] sm:$0xff] %vm412_vm4, %v877_v21  ;;  %v400_v23 = vpop.f32.mrb[3].mxu0 }
  0xfd   : > { %414 = vst.msk [vmem:[#allocation2 + $0x8] sm:$0xff] %vm412_vm4, %v400_v23 }
  0xfe   : > { %v459_v22 = vpop.f32.mrb[0].mxu1 }
  0xff   : > { %v882_v24 = vpop.f32.mrb[1].mxu1 }
 0x100   : > { %v462_v25 = vpop.f32.mrb[2].mxu1 }
 0x101   : > { %v883_v26 = vpop.f32.mrb[3].mxu1  ;;  %v604_v37 = vld [vmem:[#allocation2 + $0x10] sm:$0xff] }
 0x102   : > { %v465_v27 = vld [vmem:[#allocation2] sm:$0xff]  ;;  %v605_v39 = vadd.f32 %v604_v37, %v459_v22 }
 0x103   : > { %v466_v28 = vadd.f32 %v465_v27, %v459_v22  ;;  %v658_v38 = vld [vmem:[#allocation2 + $0x18] sm:$0xff] }
 0x104   : > { %v550_v29 = vld [vmem:[#allocation2 + $0x8] sm:$0xff]  ;;  %v659_v40 = vadd.f32 %v658_v38, %v459_v22  ;;  %v607_v41 = vmul.f32 0.2, %v605_v39  ;;  %vm606_vm7 = vcmp.ge.f32.partialorder %v605_v39, 0.0 }
 0x105   : > { %vm467_vm5 = vcmp.ge.f32.partialorder %v466_v28, 0.0  ;;  %v468_v30 = vmul.f32 0.2, %v466_v28  ;;  %v551_v31 = vadd.f32 %v550_v29, %v459_v22 }
 0x106   : > { %v661_v42 = vmul.f32 0.2, %v659_v40  ;;  %vm660_vm8 = vcmp.ge.f32.partialorder %v659_v40, 0.0  ;;  %v608_v43 = vsel %vm606_vm7, %v605_v39, %v607_v41 }
 0x107   : > { %v469_v32 = vsel %vm467_vm5, %v466_v28, %v468_v30  ;;  %vm552_vm6 = vcmp.ge.f32.partialorder %v551_v31, 0.0  ;;  %v553_v33 = vmul.f32 0.2, %v551_v31  ;;  %v609_v45 = vpack.c.bf16 %v608_v43, %v608_v43 }
 0x108   : > { %v470_v34 = vpack.c.bf16 %v469_v32, %v469_v32  ;;  %v662_v44 = vsel %vm660_vm8, %v659_v40, %v661_v42 }
 0x109   : > { %v554_v35 = vsel %vm552_vm6, %v551_v31, %v553_v33  ;;  %v663_v46 = vpack.c.bf16 %v662_v44, %v662_v44 }
 0x10a   : > { %v555_v36 = vpack.c.bf16 %v554_v35, %v554_v35  ;;  %893 = vmatmul.mubr.msk.bf16.vlgmr.msra.gmra.mrb[4].mxu0 %vm412_vm4, %v470_v34 }
 0x10b   : > { %909 = vmatpush3.bf16.msra.mxu0 %v993_v15  ;;  %916 = vmatprep.mubr.msk.bf16.mxu0 %vm1055_vm3, %v1054_v9 }
 0x10c   : > { %905 = vmatmul.mubr.msk.bf16.vlgmr.msra.gmra.mrb[4].mxu1 %vm412_vm4, %v555_v36  ;;  %910 = vmatprep.subr.bf16.mxu0 %v1054_v9 }
 0x10d   : > { %921 = vmatpush3.bf16.msra.mxu1 %v993_v15  ;;  %928 = vmatprep.mubr.msk.bf16.mxu1 %vm1055_vm3, %v1054_v9 }
 0x10e   : > { %922 = vmatprep.subr.bf16.mxu1 %v1054_v9 }
 0x10f   : > { %911 = vmatpush3.bf16.msra.mxu0 %v994_v16 }
 0x110   : > { %912 = vmatprep.subr.bf16.mxu0 %v1054_v9 }
 0x111   : > { %923 = vmatpush3.bf16.msra.mxu1 %v994_v16 }
 0x112   : > { %924 = vmatprep.subr.bf16.mxu1 %v1054_v9 }
 0x113   : > { %913 = vmatpush3.bf16.msra.mxu0 %v995_v17 }
 0x114   : > { %914 = vmatprep.subr.bf16.mxu0 %v1054_v9 }
 0x115   : > { %925 = vmatpush3.bf16.msra.mxu1 %v995_v17 }
 0x116   : > { %926 = vmatprep.subr.bf16.mxu1 %v1054_v9 }
 0x117   : > { %915 = vmatpush3.bf16.msra.mxu0 %v996_v18 }
 0x119   : > { %927 = vmatpush3.bf16.msra.mxu1 %v996_v18 }
 0x11a   : > { %917 = vmatmul.mubr.msk.bf16.vlgmr.msra.gmra.mrb[8].mxu0 %vm412_vm4, %v609_v45 }
 0x11c   : > { %929 = vmatmul.mubr.msk.bf16.vlgmr.msra.gmra.mrb[8].mxu1 %vm412_vm4, %v663_v46 }
 0x1dd   : > { %v540_v47 = vpop.f32.mrb[4].mxu0 }
 0x1de   : > { %v547_v48 = vmul.f32 0.2, %v540_v47  ;;  %v894_v49 = vpop.f32.mrb[5].mxu0  ;;  %vm546_vm9 = vcmp.ge.f32.partialorder %v540_v47, 0.0 }
 0x1df   : > { %v543_v50 = vpop.f32.mrb[6].mxu0  ;;  %v593_v51 = vpop.f32.mrb[4].mxu1 }
 0x1e0   : > { %vm599_vm10 = vcmp.ge.f32.partialorder %v593_v51, 0.0  ;;  %v600_v52 = vmul.f32 0.2, %v593_v51  ;;  %v895_v53 = vpop.f32.mrb[7].mxu0  ;;  %v906_v54 = vpop.f32.mrb[5].mxu1  ;;  %v548_v56 = vsel %vm546_vm9, %v540_v47, %v547_v48 }
 0x1e1   : > { %v596_v55 = vpop.f32.mrb[6].mxu1 }
 0x1e2   : > { %v601_v57 = vsel %vm599_vm10, %v593_v51, %v600_v52  ;;  %v907_v58 = vpop.f32.mrb[7].mxu1 }
 0x1e3   : > { %v602_v59 = vmax.f32 %v548_v56, %v601_v57 }
 0x1ed   : > { %v647_v60 = vpop.f32.mrb[8].mxu0 }
 0x1ee   : > { %vm653_vm11 = vcmp.ge.f32.partialorder %v647_v60, 0.0  ;;  %v654_v61 = vmul.f32 0.2, %v647_v60  ;;  %v918_v62 = vpop.f32.mrb[9].mxu0 }
 0x1ef   : > { %v650_v63 = vpop.f32.mrb[10].mxu0  ;;  %v701_v0 = vpop.f32.mrb[8].mxu1 }
 0x1f0   : > { %v655_v1 = vsel %vm653_vm11, %v647_v60, %v654_v61  ;;  %vm707_vm12 = vcmp.ge.f32.partialorder %v701_v0, 0.0  ;;  %v708_v2 = vmul.f32 0.2, %v701_v0  ;;  %v919_v3 = vpop.f32.mrb[11].mxu0  ;;  %v930_v4 = vpop.f32.mrb[9].mxu1 }
 0x1f1   : > { %v656_v5 = vmax.f32 %v602_v59, %v655_v1  ;;  %v704_v6 = vpop.f32.mrb[10].mxu1 }
 0x1f2   : > { %v709_v7 = vsel %vm707_vm12, %v701_v0, %v708_v2  ;;  %v931_v8 = vpop.f32.mrb[11].mxu1 }
 0x1f3   : > { %v710_v9 = vmax.f32 %v656_v5, %v709_v7 }
 0x1f5   : > { %v711_v10 = vpack.c.bf16 %v710_v9, %v710_v9 }
 0x1f7   : > { %712 = vst [vmem:[%s332_s30] sm:$0xf] %v711_v10 }
 0x1f8 PF: > { %s15_s24 = sadd.s32 1, %s1051_s24   ;;  %s1249_s18 = smov %s1031_s19 }
 0x1f9   : > { %p12_p12 = scmp.ge.s32.totalorder %s15_s24, 6   ;;  %s1250_s19 = smov %s1137_s6 }
 0x1fa   : > { %s1251_s20 = smov %s1043_s22  ;;  %s1252_s21 = smov %s1047_s23 }
 0x1fb   : > { %s1253_s22 = smov %s1256_s25  ;;  %s1254_s23 = smov %s1260_s26 }
 0x1fc   :  { %14 = sbr.rel (!%p12_p12) target bundleno = 4 (0x4), region = 122 }

// kernel: _lambda_.11
= control target key start
LH: loop header
LB: loop body
LE: loop exit
PB: predicated region body
PF: predicated region fallthrough
CT: control target
= control target key end

     0   :  { %s1169_s9 = smov 0   ;;  %s1171_s10 = smov 0   ;;  %s1458_s0 = inlined_call_operand.vmem [shape: bf16[2,16,128], index: 0, kind: input, shape index: {}]   ;;  %s1459_s1 = inlined_call_operand.vmem [shape: bf16[128,1024], index: 1, kind: input, shape index: {}]   ;;  %s1460_s2 = inlined_call_operand.vmem [shape: f32[2,1,1024], index: 2, kind: output, shape index: {}]  }
   0x1   :  { %s1173_s11 = smov 0   ;;  %s1175_s12 = smov 0  }
   0x2   :  { %s1177_s13 = smov 0  }
   0x3 LB: > { %s21_s14 = sadd.s32 1, %s1141_s11  ;;  %s24_s15 = sadd.s32 1, %s1145_s12  ;;  %s1149_s13 = sphi %s1177_s13, %s12_s13   ;;  %s1145_s12 = sphi %s1175_s12, %s1464_s12   ;;  %s1141_s11 = sphi %s1173_s11, %s1463_s11   ;;  %s1137_s10 = sphi %s1171_s10, %s1462_s10   ;;  %s1133_s9 = sphi %s1169_s9, %s1461_s9  }
   0x4   : > { %p22_p0 = scmp.ge.s32.totalorder %s21_s14, 2  ;;  %p995_p1 = scmp.ge.s32.totalorder %s1149_s13, 1 }
   0x5   : > { %p129_p2 = scmp.lt.s32.totalorder %s1149_s13, 5 }
   0x6   : > { %s1466_s14 = smov (%p22_p0, %s21_s14), 0  ;;  %s1468_s15 = smov (!%p22_p0, %s24_s15), %s1145_s12 }
   0x7   : > { %p130_p3 = pnand %p995_p1, %p129_p2  ;;  %p26_p4 = scmp.ge.s32.totalorder %s1468_s15, 2 }
   0x8   : > { %v167_v0 = vld [vmem:[%s1459_s1] sm:$0xff] (!%p130_p3)  ;;  %v168_v2 = vld [vmem:[%s1459_s1 + $0x8] sm:$0xff] (!%p130_p3)  ;;  %p153_p5 = scmp.lt.s32.totalorder (!%p130_p3), %s1137_s10, 1  ;;  %v1151_v8 = vmov (!%p130_p3), 0   ;;  %p155_p6 = scmp.lt.s32.totalorder (!%p130_p3), %s1133_s9, 1  ;;  %v169_v63 = vld [vmem:[%s1459_s1 + $0x10] sm:$0xff] (!%p130_p3) }
   0x9   : > { %s1470_s15 = smov (%p26_p4, %s1468_s15), 0  ;;  %133 = sbr.rel (%p130_p3) target bundleno = 345 (0x159), region = 28 }
   0xa   : > { %v171_v1 = vld [vmem:[%s1459_s1 + $0x20] sm:$0xff] (!%p130_p3)  ;;  %v172_v4 = vld [vmem:[%s1459_s1 + $0x28] sm:$0xff] (!%p130_p3)  ;;  %583 = vmatprep.mubr.bf16.mxu0 (!%p130_p3), %v1151_v8  ;;  %624 = vmatprep.mubr.bf16.mxu1 (!%p130_p3), %v1151_v8  ;;  %p1063_p7 = scmp.ne.s32.totalorder (!%p130_p3), %s1133_s9, 0 }
   0xb   : > { %v1000_v3 = vcombine.high (!%p130_p3), %v167_v0, %v171_v1  ;;  %v999_v5 = vcombine.low (!%p130_p3), %v167_v0, %v171_v1  ;;  %v175_v6 = vld [vmem:[%s1459_s1 + $0x40] sm:$0xff] (!%p130_p3)  ;;  %v1002_v9 = vcombine.high (!%p130_p3), %v168_v2, %v172_v4  ;;  %v1001_v10 = vcombine.low (!%p130_p3), %v168_v2, %v172_v4  ;;  %v176_v12 = vld [vmem:[%s1459_s1 + $0x48] sm:$0xff] (!%p130_p3)  ;;  %v173_v0 = vld [vmem:[%s1459_s1 + $0x30] sm:$0xff] (!%p130_p3) }
   0xc   : > { %v179_v7 = vld [vmem:[%s1459_s1 + $0x60] sm:$0xff] (!%p130_p3)  ;;  %v180_v13 = vld [vmem:[%s1459_s1 + $0x68] sm:$0xff] (!%p130_p3)  ;;  %v170_v1 = vld [vmem:[%s1459_s1 + $0x18] sm:$0xff] (!%p130_p3) }
   0xd   : > { %v1008_v11 = vcombine.high (!%p130_p3), %v175_v6, %v179_v7  ;;  %v183_v14 = vld [vmem:[%s1459_s1 + $0x80] sm:$0xff] (!%p130_p3)  ;;  %551 = vmatprep.subr.bf16.mxu0 (!%p130_p3), %v1000_v3  ;;  %v1010_v15 = vcombine.high (!%p130_p3), %v176_v12, %v180_v13  ;;  %v184_v17 = vld [vmem:[%s1459_s1 + $0x88] sm:$0xff] (!%p130_p3)  ;;  %592 = vmatprep.subr.bf16.mxu1 (!%p130_p3), %v1002_v9  ;;  %v1007_v19 = vcombine.low (!%p130_p3), %v175_v6, %v179_v7  ;;  %v174_v2 = vld [vmem:[%s1459_s1 + $0x38] sm:$0xff] (!%p130_p3) }
   0xe   : > { %v187_v16 = vld [vmem:[%s1459_s1 + $0xa0] sm:$0xff] (!%p130_p3)  ;;  %v188_v18 = vld [vmem:[%s1459_s1 + $0xa8] sm:$0xff] (!%p130_p3)  ;;  %552 = vmatpush1.bf16.msra.mxu0 (!%p130_p3), %v999_v5  ;;  %593 = vmatpush1.bf16.msra.mxu1 (!%p130_p3), %v1001_v10  ;;  %v1009_v20 = vcombine.low (!%p130_p3), %v176_v12, %v180_v13  ;;  %v1004_v5 = vcombine.high (!%p130_p3), %v169_v63, %v173_v0  ;;  %v1006_v6 = vcombine.high (!%p130_p3), %v170_v1, %v174_v2  ;;  %v177_v7 = vld [vmem:[%s1459_s1 + $0x50] sm:$0xff] (!%p130_p3) }
   0xf   : > { %553 = vmatprep.subr.bf16.mxu0 (!%p130_p3), %v1008_v11  ;;  %v1016_v21 = vcombine.high (!%p130_p3), %v183_v14, %v187_v16  ;;  %594 = vmatprep.subr.bf16.mxu1 (!%p130_p3), %v1010_v15  ;;  %v1018_v22 = vcombine.high (!%p130_p3), %v184_v17, %v188_v18  ;;  %v191_v23 = vld [vmem:[%s1459_s1 + $0xc0] sm:$0xff] (!%p130_p3)  ;;  %v192_v25 = vld [vmem:[%s1459_s1 + $0xc8] sm:$0xff] (!%p130_p3)  ;;  %v1015_v27 = vcombine.low (!%p130_p3), %v183_v14, %v187_v16  ;;  %v181_v9 = vld [vmem:[%s1459_s1 + $0x70] sm:$0xff] (!%p130_p3) }
  0x10   : > { %s1472_s10 = smov (!%p153_p5, %s1137_s10), 1  ;;  %v195_v24 = vld [vmem:[%s1459_s1 + $0xe0] sm:$0xff]  ;;  %v196_v26 = vld [vmem:[%s1459_s1 + $0xe8] sm:$0xff]  ;;  %v1017_v28 = vcombine.low %v184_v17, %v188_v18  ;;  %v178_v10 = vld [vmem:[%s1459_s1 + $0x58] sm:$0xff]  ;;  %v1003_v13 = vcombine.low %v169_v63, %v173_v0  ;;  %v1005_v14 = vcombine.low %v170_v1, %v174_v2  ;;  %v1012_v15 = vcombine.high %v177_v7, %v181_v9 }
  0x11   : > { %s998_s19 = sshll.u32 %s1472_s10, 3  ;;  %v1024_v29 = vcombine.high %v191_v23, %v195_v24  ;;  %v1026_v30 = vcombine.high %v192_v25, %v196_v26  ;;  %v199_v31 = vld [vmem:[%s1459_s1 + $0x100] sm:$0xff]  ;;  %v200_v33 = vld [vmem:[%s1459_s1 + $0x108] sm:$0xff]  ;;  %v1023_v35 = vcombine.low %v191_v23, %v195_v24  ;;  %v1025_v36 = vcombine.low %v192_v25, %v196_v26  ;;  %s996_s8 = sshll.u32 %s1472_s10, 1  ;;  %v182_v11 = vld [vmem:[%s1459_s1 + $0x78] sm:$0xff] }
  0x12   : > { %s1251_s22 = scalar_lea.vmem %s1460_s2, %s998_s19  ;;  %554 = vmatpush1.bf16.msra.mxu0 %v1007_v19  ;;  %595 = vmatpush1.bf16.msra.mxu1 %v1009_v20  ;;  %v203_v32 = vld [vmem:[%s1459_s1 + $0x120] sm:$0xff]  ;;  %v204_v34 = vld [vmem:[%s1459_s1 + $0x128] sm:$0xff]  ;;  %v1014_v16 = vcombine.high %v178_v10, %v182_v11  ;;  %v185_v17 = vld [vmem:[%s1459_s1 + $0x90] sm:$0xff] }
  0x13   : > { %555 = vmatprep.subr.bf16.mxu0 %v1016_v21  ;;  %596 = vmatprep.subr.bf16.mxu1 %v1018_v22  ;;  %v1032_v37 = vcombine.high %v199_v31, %v203_v32  ;;  %v1034_v38 = vcombine.high %v200_v33, %v204_v34  ;;  %v207_v39 = vld [vmem:[%s1459_s1 + $0x140] sm:$0xff]  ;;  %v208_v41 = vld [vmem:[%s1459_s1 + $0x148] sm:$0xff]  ;;  %v1031_v43 = vcombine.low %v199_v31, %v203_v32  ;;  %s156_s7 = scalar_select %p155_p6, %s1133_s9, 1  ;;  %v189_v18 = vld [vmem:[%s1459_s1 + $0xb0] sm:$0xff] }
  0x14   : > { %v211_v40 = vld [vmem:[%s1459_s1 + $0x160] sm:$0xff]  ;;  %v212_v42 = vld [vmem:[%s1459_s1 + $0x168] sm:$0xff]  ;;  %v1033_v44 = vcombine.low %v200_v33, %v204_v34  ;;  %v186_v19 = vld [vmem:[%s1459_s1 + $0x98] sm:$0xff]  ;;  %v1011_v21 = vcombine.low %v177_v7, %v181_v9  ;;  %v1013_v22 = vcombine.low %v178_v10, %v182_v11  ;;  %v1020_v23 = vcombine.high %v185_v17, %v189_v18 }
  0x15   : > { %v1040_v45 = vcombine.high %v207_v39, %v211_v40  ;;  %v1042_v46 = vcombine.high %v208_v41, %v212_v42  ;;  %v215_v47 = vld [vmem:[%s1459_s1 + $0x180] sm:$0xff]  ;;  %v216_v49 = vld [vmem:[%s1459_s1 + $0x188] sm:$0xff]  ;;  %v1039_v51 = vcombine.low %v207_v39, %v211_v40  ;;  %v1041_v52 = vcombine.low %v208_v41, %v212_v42  ;;  %s158_s24 = sadd.s32 %s996_s8, %s156_s7  ;;  %v190_v20 = vld [vmem:[%s1459_s1 + $0xb8] sm:$0xff] }
  0x16   : > { %556 = vmatpush1.bf16.msra.mxu0 %v1015_v27  ;;  %597 = vmatpush1.bf16.msra.mxu1 %v1017_v28  ;;  %v219_v48 = vld [vmem:[%s1459_s1 + $0x1a0] sm:$0xff]  ;;  %v220_v50 = vld [vmem:[%s1459_s1 + $0x1a8] sm:$0xff]  ;;  %s997_s25 = sshll.u32 %s158_s24, 2  ;;  %v1022_v24 = vcombine.high %v186_v19, %v190_v20  ;;  %v193_v25 = vld [vmem:[%s1459_s1 + $0xd0] sm:$0xff] }
  0x17   : > { %557 = vmatprep.subr.bf16.mxu0 %v1024_v29  ;;  %598 = vmatprep.subr.bf16.mxu1 %v1026_v30  ;;  %v1048_v53 = vcombine.high %v215_v47, %v219_v48  ;;  %v1050_v54 = vcombine.high %v216_v49, %v220_v50  ;;  %v223_v55 = vld [vmem:[%s1459_s1 + $0x1c0] sm:$0xff]  ;;  %v224_v57 = vld [vmem:[%s1459_s1 + $0x1c8] sm:$0xff]  ;;  %v1047_v59 = vcombine.low %v215_v47, %v219_v48  ;;  %s160_s8 = scalar_lea.vmem %s1458_s0, %s997_s25  ;;  %v197_v26 = vld [vmem:[%s1459_s1 + $0xf0] sm:$0xff] }
  0x18   : > { %v227_v56 = vld [vmem:[%s1459_s1 + $0x1e0] sm:$0xff]  ;;  %v228_v58 = vld [vmem:[%s1459_s1 + $0x1e8] sm:$0xff]  ;;  %v1049_v60 = vcombine.low %v216_v49, %v220_v50  ;;  %v194_v27 = vld [vmem:[%s1459_s1 + $0xd8] sm:$0xff]  ;;  %v1019_v29 = vcombine.low %v185_v17, %v189_v18  ;;  %v1021_v30 = vcombine.low %v186_v19, %v190_v20  ;;  %v1028_v31 = vcombine.high %v193_v25, %v197_v26 }
  0x19   : > { %v1056_v61 = vcombine.high %v223_v55, %v227_v56  ;;  %v1058_v62 = vcombine.high %v224_v57, %v228_v58  ;;  %v1055_v3 = vcombine.low %v223_v55, %v227_v56  ;;  %v1057_v4 = vcombine.low %v224_v57, %v228_v58  ;;  %v1343_v12 = vld [vmem:[%s160_s8] sm:$0xf]  ;;  %v198_v28 = vld [vmem:[%s1459_s1 + $0xf8] sm:$0xff]  ;;  %v201_v33 = vld [vmem:[%s1459_s1 + $0x110] sm:$0xff] }
  0x1a   : > { %558 = vmatpush1.bf16.msra.mxu0 %v1023_v35  ;;  %599 = vmatpush1.bf16.msra.mxu1 %v1025_v36  ;;  %v1030_v32 = vcombine.high %v194_v27, %v198_v28  ;;  %v205_v34 = vld [vmem:[%s1459_s1 + $0x130] sm:$0xff]  ;;  %v206_v35 = vld [vmem:[%s1459_s1 + $0x138] sm:$0xff]  ;;  %v1027_v36 = vcombine.low %v193_v25, %v197_v26 }
  0x1b   : > { %559 = vmatprep.subr.bf16.mxu0 %v1032_v37  ;;  %600 = vmatprep.subr.bf16.mxu1 %v1034_v38  ;;  %v1029_v37 = vcombine.low %v194_v27, %v198_v28  ;;  %v1036_v38 = vcombine.high %v201_v33, %v205_v34  ;;  %v209_v40 = vld [vmem:[%s1459_s1 + $0x150] sm:$0xff]  ;;  %v210_v42 = vld [vmem:[%s1459_s1 + $0x158] sm:$0xff] }
  0x1c   : > { %v213_v41 = vld [vmem:[%s1459_s1 + $0x170] sm:$0xff]  ;;  %v218_v50 = vld [vmem:[%s1459_s1 + $0x198] sm:$0xff] }
  0x1d   : > { %v217_v48 = vld [vmem:[%s1459_s1 + $0x190] sm:$0xff]  ;;  %v226_v58 = vld [vmem:[%s1459_s1 + $0x1d8] sm:$0xff] }
  0x1e   : > { %560 = vmatpush1.bf16.msra.mxu0 %v1031_v43  ;;  %601 = vmatpush1.bf16.msra.mxu1 %v1033_v44  ;;  %v214_v43 = vld [vmem:[%s1459_s1 + $0x178] sm:$0xff]  ;;  %v1035_v44 = vcombine.low %v201_v33, %v205_v34  ;;  %v221_v49 = vld [vmem:[%s1459_s1 + $0x1b0] sm:$0xff] }
  0x1f   : > { %561 = vmatprep.subr.bf16.mxu0 %v1040_v45  ;;  %602 = vmatprep.subr.bf16.mxu1 %v1042_v46  ;;  %v1044_v46 = vcombine.high %v209_v40, %v213_v41  ;;  %v1046_v47 = vcombine.high %v210_v42, %v214_v43  ;;  %v225_v56 = vld [vmem:[%s1459_s1 + $0x1d0] sm:$0xff] }
  0x20   : > { %v229_v57 = vld [vmem:[%s1459_s1 + $0x1f0] sm:$0xff] }
  0x21   : > { %v1059_v0 = vcombine.low %v225_v56, %v229_v57 }
  0x22   : > { %562 = vmatpush1.bf16.msra.mxu0 %v1039_v51  ;;  %603 = vmatpush1.bf16.msra.mxu1 %v1041_v52  ;;  %v222_v51 = vld [vmem:[%s1459_s1 + $0x1b8] sm:$0xff]  ;;  %v1043_v52 = vcombine.low %v209_v40, %v213_v41 }
  0x23   : > { %563 = vmatprep.subr.bf16.mxu0 %v1048_v53  ;;  %604 = vmatprep.subr.bf16.mxu1 %v1050_v54  ;;  %v1045_v53 = vcombine.low %v210_v42, %v214_v43  ;;  %v1052_v54 = vcombine.high %v217_v48, %v221_v49  ;;  %v1054_v55 = vcombine.high %v218_v50, %v222_v51 }
  0x26   : > { %564 = vmatpush1.bf16.msra.mxu0 %v1047_v59  ;;  %605 = vmatpush1.bf16.msra.mxu1 %v1049_v60  ;;  %v230_v59 = vld [vmem:[%s1459_s1 + $0x1f8] sm:$0xff]  ;;  %v1051_v60 = vcombine.low %v217_v48, %v221_v49 }
  0x27   : > { %565 = vmatprep.subr.bf16.mxu0 %v1056_v61  ;;  %606 = vmatprep.subr.bf16.mxu1 %v1058_v62  ;;  %v1053_v61 = vcombine.low %v218_v50, %v222_v51  ;;  %v1060_v62 = vcombine.high %v225_v56, %v229_v57  ;;  %v1062_v63 = vcombine.high %v226_v58, %v230_v59 }
  0x28   : > { %v1061_v1 = vcombine.low %v226_v58, %v230_v59 }
  0x2a   : > { %566 = vmatpush1.bf16.msra.mxu0 %v1055_v3  ;;  %607 = vmatpush1.bf16.msra.mxu1 %v1057_v4 }
  0x2b   : > { %633 = vmatprep.subr.bf16.mxu0 %v1004_v5  ;;  %674 = vmatprep.subr.bf16.mxu1 %v1006_v6 }
  0x2d   : > { %584 = vmatmul.mubr.bf16.vlgmr.msra.gmra.mrb[0].mxu0 %v1343_v12  ;;  %625 = vmatmul.mubr.bf16.vlgmr.msra.gmra.mrb[0].mxu1 %v1343_v12 }
  0x2e   : > { %634 = vmatpush1.bf16.msra.mxu0 %v1003_v13  ;;  %675 = vmatpush1.bf16.msra.mxu1 %v1005_v14 }
  0x2f   : > { %635 = vmatprep.subr.bf16.mxu0 %v1012_v15  ;;  %676 = vmatprep.subr.bf16.mxu1 %v1014_v16 }
  0x30   : > { %665 = vmatprep.mubr.bf16.mxu0 %v1151_v8  ;;  %706 = vmatprep.mubr.bf16.mxu1 %v1151_v8  ;;  %v202_v8 = vld [vmem:[%s1459_s1 + $0x118] sm:$0xff] }
  0x31   : > { %v1038_v39 = vcombine.high %v202_v8, %v206_v35  ;;  %v1037_v45 = vcombine.low %v202_v8, %v206_v35 }
  0x32   : > { %636 = vmatpush1.bf16.msra.mxu0 %v1011_v21  ;;  %677 = vmatpush1.bf16.msra.mxu1 %v1013_v22 }
  0x33   : > { %637 = vmatprep.subr.bf16.mxu0 %v1020_v23  ;;  %678 = vmatprep.subr.bf16.mxu1 %v1022_v24 }
  0x36   : > { %638 = vmatpush1.bf16.msra.mxu0 %v1019_v29  ;;  %679 = vmatpush1.bf16.msra.mxu1 %v1021_v30 }
  0x37   : > { %639 = vmatprep.subr.bf16.mxu0 %v1028_v31  ;;  %680 = vmatprep.subr.bf16.mxu1 %v1030_v32 }
  0x3a   : > { %640 = vmatpush1.bf16.msra.mxu0 %v1027_v36  ;;  %681 = vmatpush1.bf16.msra.mxu1 %v1029_v37 }
  0x3b   : > { %641 = vmatprep.subr.bf16.mxu0 %v1036_v38  ;;  %682 = vmatprep.subr.bf16.mxu1 %v1038_v39 }
  0x3e   : > { %642 = vmatpush1.bf16.msra.mxu0 %v1035_v44  ;;  %683 = vmatpush1.bf16.msra.mxu1 %v1037_v45 }
  0x3f   : > { %643 = vmatprep.subr.bf16.mxu0 %v1044_v46  ;;  %684 = vmatprep.subr.bf16.mxu1 %v1046_v47 }
  0x42   : > { %644 = vmatpush1.bf16.msra.mxu0 %v1043_v52  ;;  %685 = vmatpush1.bf16.msra.mxu1 %v1045_v53 }
  0x43   : > { %645 = vmatprep.subr.bf16.mxu0 %v1052_v54  ;;  %686 = vmatprep.subr.bf16.mxu1 %v1054_v55 }
  0x46   : > { %646 = vmatpush1.bf16.msra.mxu0 %v1051_v60  ;;  %687 = vmatpush1.bf16.msra.mxu1 %v1053_v61 }
  0x47   : > { %647 = vmatprep.subr.bf16.mxu0 %v1060_v62  ;;  %688 = vmatprep.subr.bf16.mxu1 %v1062_v63 }
  0x4a   : > { %648 = vmatpush1.bf16.msra.mxu0 %v1059_v0  ;;  %689 = vmatpush1.bf16.msra.mxu1 %v1061_v1 }
  0x4d   : > { %666 = vmatmul.mubr.bf16.vlgmr.msra.gmra.mrb[4].mxu0 %v1343_v12  ;;  %707 = vmatmul.mubr.bf16.vlgmr.msra.gmra.mrb[4].mxu1 %v1343_v12 }
 0x100   : > { %v585_v2 = vpop.f32.mrb[0].mxu0  ;;  %v626_v4 = vpop.f32.mrb[0].mxu1 }
 0x101   : > { %vm715_vm0 = vcmp.ge.f32.partialorder %v585_v2, 0.0  ;;  %v723_v3 = vmul.f32 0.2, %v585_v2  ;;  %v587_v5 = vpop.f32.mrb[1].mxu0  ;;  %vm717_vm1 = vcmp.ge.f32.partialorder %v626_v4, 0.0  ;;  %v628_v10 = vpop.f32.mrb[1].mxu1 }
 0x102   : > { %v725_v6 = vmul.f32 0.2, %v626_v4  ;;  %vm716_vm2 = vcmp.ge.f32.partialorder %v587_v5, 0.0  ;;  %v724_v7 = vmul.f32 0.2, %v587_v5  ;;  %v589_v11 = vpop.f32.mrb[2].mxu0 }
 0x103   : > { %v731_v9 = vsel %vm715_vm0, %v585_v2, %v723_v3  ;;  %vm718_vm3 = vcmp.ge.f32.partialorder %v628_v10, 0.0  ;;  %v630_v16 = vpop.f32.mrb[2].mxu1  ;;  %v590_v17 = vpop.f32.mrb[3].mxu0  ;;  %v726_v19 = vmul.f32 0.2, %v628_v10 }
 0x104   : > { %v739_v13 = vrot.slane %v731_v9, 4  ;;  %v733_v14 = vsel %vm717_vm1, %v626_v4, %v725_v6  ;;  %v732_v15 = vsel %vm716_vm2, %v587_v5, %v724_v7  ;;  %v631_v20 = vpop.f32.mrb[3].mxu1 }
 0x105   : > { %v751_v18 = vrot.slane %v733_v14, 4  ;;  %v745_v12 = vrot.slane %v732_v15, 4  ;;  %v734_v24 = vsel %vm718_vm3, %v628_v10, %v726_v19  ;;  %v806_v19 = vlaneseq (!%p1063_p7) }
 0x106   : > { %v740_v21 = vmax.f32 %v731_v9, %v739_v13  ;;  %v757_v26 = vrot.slane %v734_v24, 4  ;;  %v1152_v20 = vmov (!%p1063_p7), 1966171168  }
 0x107   : > { %v752_v22 = vmax.f32 %v733_v14, %v751_v18  ;;  %v746_v23 = vmax.f32 %v732_v15, %v745_v12 }
 0x108   : > { %v741_v25 = vrot.slane %v740_v21, 2  ;;  %v758_v30 = vmax.f32 %v734_v24, %v757_v26 }
 0x109   : > { %v753_v27 = vrot.slane %v752_v22, 2  ;;  %v747_v28 = vrot.slane %v746_v23, 2 }
 0x10a   : > { %v742_v29 = vmax.f32 %v740_v21, %v741_v25  ;;  %v759_v34 = vrot.slane %v758_v30, 2  ;;  %v804_v21 = vunpack.c.l.s4 (!%p1063_p7), %v1152_v20 }
 0x10b   : > { %v754_v31 = vmax.f32 %v752_v22, %v753_v27  ;;  %v748_v32 = vmax.f32 %v746_v23, %v747_v28  ;;  %v807_v23 = vshrl.u32 (!%p1063_p7), %v806_v19, 7 }
 0x10c   : > { %v743_v33 = vrot.slane %v742_v29, 1  ;;  %v760_v37 = vmax.f32 %v758_v30, %v759_v34  ;;  %v805_v27 = vunpack.c.0.s8 (!%p1063_p7), %v804_v21 }
 0x10d   : > { %v755_v8 = vrot.slane %v754_v31, 1  ;;  %v749_v35 = vrot.slane %v748_v32, 1 }
 0x10e   : > { %v1423_v36 = vmax.f32 %v742_v29, %v743_v33  ;;  %v761_v40 = vrot.slane %v760_v37, 1  ;;  %v808_v28 = vsub.s32 (!%p1063_p7), %v805_v27, %v807_v23 }
 0x10f   : > { %v1425_v38 = vmax.f32 %v754_v31, %v755_v8  ;;  %v1427_v39 = vmax.f32 %v748_v32, %v749_v35 }
 0x110   : > { %v1429_v41 = vmax.f32 %v760_v37, %v761_v40 }
 0x111   : > { %v799_v22 = vcombine.low (!%p1063_p7), %v1423_v36, %v1427_v39 }
 0x112   : > { %v800_v24 = vcombine.low (!%p1063_p7), %v1425_v38, %v1429_v41 }
 0x113   : > { %v809_v29 = vrot.slane (!%p1063_p7), %v799_v22, %v808_v28 }
 0x114   : > { %v816_v30 = vrot.slane (!%p1063_p7), %v800_v24, %v808_v28 }
 0x116   : > { %v831_v33 = vcombine.low (!%p1063_p7), %v809_v29, %v816_v30 }
 0x118   : > { %v839_v8 = vrot.slane (!%p1063_p7), %v831_v33, %v808_v28 }
 0x120   : > { %v667_v42 = vpop.f32.mrb[4].mxu0  ;;  %v708_v44 = vpop.f32.mrb[4].mxu1 }
 0x121   : > { %vm719_vm4 = vcmp.ge.f32.partialorder %v667_v42, 0.0  ;;  %v727_v43 = vmul.f32 0.2, %v667_v42  ;;  %v669_v45 = vpop.f32.mrb[5].mxu0  ;;  %vm721_vm5 = vcmp.ge.f32.partialorder %v708_v44, 0.0  ;;  %v710_v49 = vpop.f32.mrb[5].mxu1 }
 0x122   : > { %v729_v46 = vmul.f32 0.2, %v708_v44  ;;  %vm720_vm6 = vcmp.ge.f32.partialorder %v669_v45, 0.0  ;;  %v728_v47 = vmul.f32 0.2, %v669_v45  ;;  %v671_v50 = vpop.f32.mrb[6].mxu0 }
 0x123   : > { %v735_v48 = vsel %vm719_vm4, %v667_v42, %v727_v43  ;;  %vm722_vm7 = vcmp.ge.f32.partialorder %v710_v49, 0.0  ;;  %v712_v54 = vpop.f32.mrb[6].mxu1  ;;  %v672_v55 = vpop.f32.mrb[7].mxu0  ;;  %v730_v58 = vmul.f32 0.2, %v710_v49 }
 0x124   : > { %v763_v51 = vrot.slane %v735_v48, 4  ;;  %v737_v52 = vsel %vm721_vm5, %v708_v44, %v729_v46  ;;  %v736_v53 = vsel %vm720_vm6, %v669_v45, %v728_v47  ;;  %v713_v59 = vpop.f32.mrb[7].mxu1 }
 0x125   : > { %v775_v56 = vrot.slane %v737_v52, 4  ;;  %v769_v57 = vrot.slane %v736_v53, 4  ;;  %v738_v63 = vsel %vm722_vm7, %v710_v49, %v730_v58 }
 0x126   : > { %v764_v60 = vmax.f32 %v735_v48, %v763_v51  ;;  %v781_v1 = vrot.slane %v738_v63, 4 }
 0x127   : > { %v776_v61 = vmax.f32 %v737_v52, %v775_v56  ;;  %v770_v62 = vmax.f32 %v736_v53, %v769_v57 }
 0x128   : > { %v765_v0 = vrot.slane %v764_v60, 2  ;;  %v782_v5 = vmax.f32 %v738_v63, %v781_v1 }
 0x129   : > { %v777_v2 = vrot.slane %v776_v61, 2  ;;  %v771_v3 = vrot.slane %v770_v62, 2 }
 0x12a   : > { %v766_v4 = vmax.f32 %v764_v60, %v765_v0  ;;  %v783_v10 = vrot.slane %v782_v5, 2  ;;  %790 = sbr.rel (%p1063_p7) target bundleno = 317 (0x13d), region = 32 }
 0x12b   : > { %v778_v6 = vmax.f32 %v776_v61, %v777_v2  ;;  %v772_v7 = vmax.f32 %v770_v62, %v771_v3 }
 0x12c   : > { %v767_v9 = vrot.slane %v766_v4, 1  ;;  %v784_v15 = vmax.f32 %v782_v5, %v783_v10 }
 0x12d   : > { %v779_v11 = vrot.slane %v778_v6, 1  ;;  %v773_v13 = vrot.slane %v772_v7, 1 }
 0x12e   : > { %v768_v14 = vmax.f32 %v766_v4, %v767_v9  ;;  %v785_v18 = vrot.slane %v784_v15, 1 }
 0x12f   : > { %v780_v16 = vmax.f32 %v778_v6, %v779_v11  ;;  %v774_v17 = vmax.f32 %v772_v7, %v773_v13 }
 0x130   : > { %v786_v12 = vmax.f32 %v784_v15, %v785_v18 }
 0x131   : > { %v801_v25 = vcombine.low %v768_v14, %v774_v17 }
 0x132   : > { %v802_v26 = vcombine.low %v780_v16, %v786_v12 }
 0x133   : > { %v823_v31 = vrot.slane %v801_v25, %v808_v28 }
 0x134   : > { %v830_v32 = vrot.slane %v802_v26, %v808_v28 }
 0x136   : > { %v832_v34 = vcombine.low %v823_v31, %v830_v32 }
 0x138   : > { %v846_v35 = vrot.slane %v832_v34, %v808_v28 }
 0x13a   : > { %v847_v37 = vcombine.low %v839_v8, %v846_v35 }
 0x13c   : > { %849 = vst [vmem:[#allocation2] sm:$0xff] %v847_v37 }
 0x13d PF: > { %p1064_p8 = scmp.le.s32.totalorder %s1133_s9, 0 }
 0x13e   : > { %v870_v40 = vlaneseq (!%p1064_p8)  ;;  %v1153_v42 = vmov (!%p1064_p8), 1966171168   ;;  %v863_v44 = vcombine.low (!%p1064_p8), %v1423_v36, %v1427_v39  ;;  %v864_v46 = vcombine.low (!%p1064_p8), %v1425_v38, %v1429_v41 }
 0x13f   : > { %853 = sbr.rel (%p1064_p8) target bundleno = 336 (0x150), region = 36  ;;  %v868_v43 = vunpack.c.l.s4 (!%p1064_p8), %v1153_v42  ;;  %v865_v47 = vcombine.low (!%p1064_p8), %v768_v14, %v774_v17  ;;  %v866_v48 = vcombine.low (!%p1064_p8), %v780_v16, %v786_v12 }
 0x140   : > { %v871_v45 = vshrl.u32 (!%p1064_p8), %v870_v40, 7 }
 0x141   : > { %v869_v49 = vunpack.c.0.s8 (!%p1064_p8), %v868_v43 }
 0x143   : > { %v872_v50 = vsub.s32 (!%p1064_p8), %v869_v49, %v871_v45  ;;  %v854_v59 = vld [vmem:[#allocation2] sm:$0xff] (!%p1064_p8) }
 0x145   : > { %v873_v51 = vrot.slane (!%p1064_p8), %v863_v44, %v872_v50  ;;  %v880_v52 = vrot.slane (!%p1064_p8), %v864_v46, %v872_v50  ;;  %v887_v53 = vrot.slane (!%p1064_p8), %v865_v47, %v872_v50  ;;  %v894_v54 = vrot.slane (!%p1064_p8), %v866_v48, %v872_v50 }
 0x147   : > { %v895_v55 = vcombine.low %v873_v51, %v880_v52  ;;  %v896_v56 = vcombine.low %v887_v53, %v894_v54 }
 0x149   : > { %v903_v57 = vrot.slane %v895_v55, %v872_v50  ;;  %v910_v58 = vrot.slane %v896_v56, %v872_v50 }
 0x14b   : > { %v911_v60 = vcombine.low %v903_v57, %v910_v58 }
 0x14d   : > { %v913_v61 = vmax.f32 %v854_v59, %v911_v60 }
 0x14f   : > { %914 = vst [vmem:[#allocation2] sm:$0xff] %v913_v61 }
 0x150 PF: > { %p1065_p9 = scmp.ne.s32.totalorder %s1133_s9, 1 }
 0x152   : > { %918 = sbr.rel (%p1065_p9) target bundleno = 345 (0x159), region = 40 }
 0x156   : > { %v919_v36 = vld [vmem:[#allocation2] sm:$0xff] (!%p1065_p9) }
 0x157   : > { %920 = vst [vmem:[%s1251_s22] sm:$0xff] (!%p1065_p9), %v919_v36 }
 0x159 PF: > { %s12_s13 = sadd.s32 1, %s1149_s13   ;;  %s1461_s9 = smov %s1141_s11 }
 0x15a   : > { %p9_p10 = scmp.ge.s32.totalorder %s12_s13, 6   ;;  %s1462_s10 = smov %s1145_s12 }
 0x15b   : > { %s1463_s11 = smov %s1466_s14  ;;  %s1464_s12 = smov %s1470_s15 }
 0x15c   :  { %11 = sbr.rel (!%p9_p10) target bundleno = 3 (0x3), region = 70 }

// kernel: _lambda_.14
= control target key start
LH: loop header
LB: loop body
LE: loop exit
PB: predicated region body
PF: predicated region fallthrough
CT: control target
= control target key end

     0   :  { %s755_s15 = smov 0   ;;  %s757_s16 = smov 0   ;;  %s865_s0 = inlined_call_operand.vmem [shape: bf16[2,4,16,3], index: 0, kind: input, shape index: {}]   ;;  %s866_s1 = inlined_call_operand.vmem [shape: bf16[2,16,3], index: 1, kind: input, shape index: {}]   ;;  %s867_s2 = inlined_call_operand.vmem [shape: bf16[3,32], index: 2, kind: input, shape index: {}]   ;;  %s868_s3 = inlined_call_operand.vmem [shape: bf16[3,32], index: 3, kind: input, shape index: {}]   ;;  %s869_s4 = inlined_call_operand.vmem [shape: bf16[2,16,32], index: 4, kind: output, shape index: {}]  }
   0x1   :  { %s759_s17 = smov 0   ;;  %s761_s18 = smov 0  }
   0x2   :  { %s763_s19 = smov 0   ;;  %s765_s20 = smov 0  }
   0x3   :  { %s767_s21 = smov 0  }
   0x4 LB: > { %s23_s22 = sadd.s32 1, %s717_s19  ;;  %s26_s23 = sadd.s32 1, %s721_s20  ;;  %s725_s21 = sphi %s767_s21, %s14_s21   ;;  %s721_s20 = sphi %s765_s20, %s875_s20   ;;  %s717_s19 = sphi %s763_s19, %s874_s19   ;;  %s713_s18 = sphi %s761_s18, %s873_s18   ;;  %s709_s17 = sphi %s759_s17, %s872_s17   ;;  %s705_s16 = sphi %s757_s16, %s871_s16   ;;  %s701_s15 = sphi %s755_s15, %s870_s15  }
   0x5   : > { %p24_p0 = scmp.ge.s32.totalorder %s23_s22, 2  ;;  %p42_p1 = scmp.ne.s32.totalorder %s705_s16, %s701_s15 }
   0x6   : > { %p43_p2 = scmp.eq.s32.totalorder %s725_s21, 0  ;;  %s35_s27 = sadd.s32 1, %s705_s16 }
   0x7   : > { %s877_s22 = smov (%p24_p0, %s23_s22), 0  ;;  %s879_s23 = smov (!%p24_p0, %s26_s23), %s721_s20 }
   0x8   : > { %p44_p3 = por %p43_p2, %p42_p1  ;;  %p28_p4 = scmp.ge.s32.totalorder %s879_s23, 2 }
   0x9   : > { %s31_s24 = ssub.s32 %s717_s19, %s877_s22  ;;  %p576_p6 = scmp.ge.s32.totalorder %s725_s21, 4 }
   0xa   : > { %s881_s23 = smov (%p28_p4, %s879_s23), 0 }
   0xb   : > { %s30_s25 = ssub.s32 %s721_s20, %s881_s23  ;;  %172 = sbr.rel (%p576_p6) target bundleno = 26 (0x1a), region = 24 }
   0xc   : > { %s32_s26 = sor.u32 %s31_s24, %s30_s25 }
   0xd   : > { %p33_p5 = scmp.eq.s32.totalorder %s32_s26, 0 }
   0xf   : > { %s806_s28 = scalar_select %p33_p5, %s705_s16, %s35_s27  }
  0x12   : > { %175 = sbr.rel (!%p44_p3) target bundleno = 26 (0x1a), region = 28  ;;  %s177_s29 = sand.u32 (%p44_p3), 1, %s705_s16  }
  0x13   : > { %s578_s30 = sshll.u32 (%p44_p3), %s721_s20, 3  ;;  %s577_s5 = sshll.u32 (%p44_p3), %s177_s29, 4 }
  0x14   : > { %s181_s6 = sadd.s32 (%p44_p3), %s717_s19, %s578_s30  ;;  %s179_s11 = scalar_lea.vmem (%p44_p3), [#allocation3], %s577_s5 }
  0x15   : > { %s579_s7 = sshll.u32 (%p44_p3), %s181_s6, 2 }
  0x16   : > { %s183_s10 = scalar_lea.vmem (%p44_p3), %s865_s0, %s579_s7 }
  0x17   : > { %v199_v0 = vld [vmem:[%s183_s10] sm:$0xf] (%p44_p3)  ;;  %v201_v1 = vld [vmem:[%s183_s10 + $0x8] sm:$0xf] (%p44_p3)  ;;  %v203_v2 = vld [vmem:[%s183_s10 + $0x10] sm:$0xf] (%p44_p3) }
  0x18   : > { %200 = vst [vmem:[%s179_s11] sm:$0xf] (%p44_p3), %v199_v0  ;;  %202 = vst [vmem:[%s179_s11 + $0x4] sm:$0xf] (%p44_p3), %v201_v1  ;;  %v205_v3 = vld [vmem:[%s183_s10 + $0x18] sm:$0xf] (%p44_p3) }
  0x19   : > { %204 = vst [vmem:[%s179_s11 + $0x8] sm:$0xf] %v203_v2  ;;  %206 = vst [vmem:[%s179_s11 + $0xc] sm:$0xf] %v205_v3 }
  0x1a PF: > { %p580_p7 = scmp.ge.s32.totalorder %s725_s21, 1  ;;  %p247_p8 = scmp.lt.s32.totalorder %s725_s21, 5 }
  0x1c   : > { %p248_p9 = pnand %p580_p7, %p247_p8 }
  0x1d   : > { %v311_v4 = vld [vmem:[%s867_s2] sm:$0x3] (!%p248_p9)  ;;  %vm329_vm0 = vcmask (!%p248_p9), 1040384   ;;  %vm330_vm1 = vcmask (!%p248_p9), 1041408   ;;  %s254_s14 = sand.u32 (!%p248_p9), 1, %s701_s15   ;;  %v727_v5 = vmov (!%p248_p9), 65535  }
  0x1e   : > { %251 = sbr.rel (%p248_p9) target bundleno = 275 (0x113), region = 73  ;;  %v331_v6 = vsel (!%p248_p9), %vm329_vm0, 4294967295, %v727_v5  ;;  %s581_s24 = sshll.u32 (!%p248_p9), %s254_s14, 4  ;;  %v391_v7 = vld [vmem:[%s868_s3] sm:$0x3] (!%p248_p9)  ;;  %vm322_vm2 = vcmask (!%p248_p9), 23552  }
  0x1f   : > { %v332_v8 = vsel (!%p248_p9), %vm330_vm1, %v331_v6, 0  ;;  %v728_v9 = vmov (!%p248_p9), 0.0   ;;  %p290_p10 = scmp.lt.s32.totalorder (!%p248_p9), %s713_s18, 1  ;;  %s256_s27 = scalar_lea.vmem (!%p248_p9), [#allocation3], %s581_s24  ;;  %vm729_vm3 = vmmov (!%p248_p9), 0   ;;  %vm385_vm4 = vcmask (!%p248_p9), 261120  }
  0x20   : > { %604 = vmatprep.subr.bf16.mxu1 (!%p248_p9), %v728_v9  ;;  %v334_v10 = vand.u32 (!%p248_p9), %v332_v8, %v311_v4  ;;  %v669_v11 = vld [vmem:[%s256_s27] sm:$0xff] (!%p248_p9)   ;;  %v396_v12 = vand.u32 (!%p248_p9), %v391_v7, %v332_v8  ;;  %606 = vmatprep.mubr.msk.bf16.mxu1 (!%p248_p9), %vm729_vm3, %v728_v9  ;;  %p292_p11 = scmp.lt.s32.totalorder (!%p248_p9), %s709_s17, 1  ;;  %v670_v13 = vld [vmem:[%s256_s27 + $0x8] sm:$0xff] (!%p248_p9)   ;;  %vm465_vm9 = vcmask (!%p248_p9), 257024  }
  0x21   : > { %600 = vmatprep.mubr.msk.bf16.mxu0 (!%p248_p9), %vm322_vm2, %v669_v11 }
  0x22   : > { %598 = vmatprep.subr.bf16.mxu0 (!%p248_p9), %v334_v10  ;;  %605 = vmatpush3.bf16.msra.mxu1 (!%p248_p9), %v396_v12 }
  0x23   : > { %599 = vmatpush3.bf16.msra.mxu0 (!%p248_p9), %v334_v10 }
  0x25   : > { %s883_s18 = smov (!%p290_p10, %s713_s18), 1  ;;  %s885_s17 = smov (!%p292_p11, %s709_s17), 1 }
  0x26   : > { %s582_s15 = sshll.u32 %s883_s18, 1  ;;  %601 = vmatmul.mubr.msk.bf16.vlgmr.msra.gmra.mrb[0].mxu0 %vm322_vm2, %v670_v13 }
  0x27   : > { %s829_s29 = sadd.s32 %s582_s15, %s885_s17 }
  0x28   : > { %s583_s30 = sshll.u32 %s829_s29, 2 }
  0x29   : > { %s297_s7 = scalar_lea.vmem %s866_s1, %s583_s30  ;;  %s305_s8 = scalar_lea.vmem %s869_s4, %s583_s30 }
  0x2a   : > { %v390_v14 = vld [vmem:[%s297_s7] sm:$0xf] }
  0x2b   : > { %607 = vmatmul.mubr.msk.bf16.vlgmr.msra.gmra.mrb[0].mxu1 %vm322_vm2, %v390_v14 }
  0xf9   : > { %v602_v15 = vpop.f32.mrb[0].mxu0 }
  0xfa   : > { %388 = vst.msk [vmem:[#allocation2 + $0x10] sm:$0xff] %vm385_vm4, %v602_v15  ;;  %v370_v16 = vpop.f32.mrb[1].mxu0 }
  0xfb   : > { %386 = vst.msk [vmem:[#allocation2] sm:$0xff] %vm385_vm4, %v370_v16  ;;  %v603_v17 = vpop.f32.mrb[2].mxu0 }
  0xfc   : > { %389 = vst.msk [vmem:[#allocation2 + $0x18] sm:$0xff] %vm385_vm4, %v603_v17  ;;  %v373_v19 = vpop.f32.mrb[3].mxu0 }
  0xfd   : > { %387 = vst.msk [vmem:[#allocation2 + $0x8] sm:$0xff] %vm385_vm4, %v373_v19 }
  0xfe   : > { %v432_v18 = vpop.f32.mrb[0].mxu1 }
  0xff   : > { %v608_v20 = vpop.f32.mrb[1].mxu1 }
 0x100   : > { %v435_v21 = vpop.f32.mrb[2].mxu1 }
 0x101   : > { %v609_v22 = vpop.f32.mrb[3].mxu1  ;;  %v451_v23 = vld [vmem:[#allocation2 + $0x10] sm:$0xff] }
 0x102   : > { %v438_v24 = vld [vmem:[#allocation2] sm:$0xff]  ;;  %v452_v26 = vadd.f32 %v451_v23, %v432_v18 }
 0x103   : > { %v439_v25 = vadd.f32 %v438_v24, %v432_v18  ;;  %v458_v27 = vld [vmem:[#allocation2 + $0x18] sm:$0xff] }
 0x104   : > { %v444_v28 = vld [vmem:[#allocation2 + $0x8] sm:$0xff]  ;;  %v459_v31 = vadd.f32 %v458_v27, %v432_v18  ;;  %v454_v33 = vmul.f32 0.01, %v452_v26  ;;  %vm453_vm7 = vcmp.ge.f32.partialorder %v452_v26, 0.0 }
 0x105   : > { %v441_v29 = vmul.f32 0.01, %v439_v25  ;;  %v445_v30 = vadd.f32 %v444_v28, %v432_v18  ;;  %vm440_vm5 = vcmp.ge.f32.partialorder %v439_v25, 0.0 }
 0x106   : > { %v461_v36 = vmul.f32 0.01, %v459_v31  ;;  %vm460_vm8 = vcmp.ge.f32.partialorder %v459_v31, 0.0  ;;  %v455_v38 = vsel %vm453_vm7, %v452_v26, %v454_v33 }
 0x107   : > { %vm446_vm6 = vcmp.ge.f32.partialorder %v445_v30, 0.0  ;;  %v447_v32 = vmul.f32 0.01, %v445_v30  ;;  %v442_v34 = vsel %vm440_vm5, %v439_v25, %v441_v29 }
 0x108   : > { %v462_v40 = vsel %vm460_vm8, %v459_v31, %v461_v36 }
 0x109   : > { %v448_v35 = vsel %vm446_vm6, %v445_v30, %v447_v32 }
 0x10a   : > { %v449_v37 = vmax.f32 %v442_v34, %v448_v35 }
 0x10c   : > { %v456_v39 = vmax.f32 %v449_v37, %v455_v38 }
 0x10e   : > { %v463_v41 = vmax.f32 %v456_v39, %v462_v40 }
 0x110   : > { %v464_v42 = vpack.c.bf16 %v463_v41, %v463_v41 }
 0x112   : > { %466 = vst.msk [vmem:[%s305_s8] sm:$0xf] %vm465_vm9, %v464_v42 }
 0x113 PF: > { %s14_s21 = sadd.s32 1, %s725_s21   ;;  %s870_s15 = smov %s705_s16 }
 0x114   : > { %p11_p12 = scmp.ge.s32.totalorder %s14_s21, 6   ;;  %s871_s16 = smov %s806_s28 }
 0x115   : > { %s872_s17 = smov %s717_s19  ;;  %s873_s18 = smov %s721_s20 }
 0x116   : > { %s874_s19 = smov %s877_s22  ;;  %s875_s20 = smov %s881_s23 }
 0x117   :  { %13 = sbr.rel (!%p11_p12) target bundleno = 4 (0x4), region = 118 }

// kernel: _lambda_.15
= control target key start
LH: loop header
LB: loop body
LE: loop exit
PB: predicated region body
PF: predicated region fallthrough
CT: control target
= control target key end

     0   :  { %s552_s12 = smov 0   ;;  %s554_s13 = smov 0   ;;  %s609_s0 = inlined_call_operand.vmem [shape: bf16[2,16,32], index: 0, kind: input, shape index: {}]   ;;  %s610_s1 = inlined_call_operand.vmem [shape: bf16[2,32,16], index: 1, kind: input, shape index: {}]   ;;  %s611_s2 = inlined_call_operand.vmem [shape: f32[2,1,16], index: 2, kind: input, shape index: {}]   ;;  %s612_s3 = inlined_call_operand.vmem [shape: bf16[2,16,16], index: 3, kind: output, shape index: {}]  }
   0x1   :  { %s556_s14 = smov 0   ;;  %s558_s15 = smov 0  }
   0x2   :  { %s560_s16 = smov 0  }
   0x3 LB: > { %s22_s17 = sadd.s32 1, %s520_s14  ;;  %s25_s18 = sadd.s32 1, %s524_s15  ;;  %s528_s16 = sphi %s560_s16, %s13_s16   ;;  %s524_s15 = sphi %s558_s15, %s616_s15   ;;  %s520_s14 = sphi %s556_s14, %s615_s14   ;;  %s516_s13 = sphi %s554_s13, %s614_s13   ;;  %s512_s12 = sphi %s552_s12, %s613_s12  }
   0x4   : > { %p23_p0 = scmp.ge.s32.totalorder %s22_s17, 2  ;;  %p421_p1 = scmp.ge.s32.totalorder %s528_s16, 1 }
   0x5   : > { %p174_p2 = scmp.lt.s32.totalorder %s528_s16, 5 }
   0x6   : > { %s618_s17 = smov (%p23_p0, %s22_s17), 0  ;;  %s620_s18 = smov (!%p23_p0, %s25_s18), %s524_s15 }
   0x7   : > { %p175_p3 = pnand %p421_p1, %p174_p2  ;;  %p27_p4 = scmp.ge.s32.totalorder %s620_s18, 2 }
   0x8   : > { %p212_p5 = scmp.lt.s32.totalorder (!%p175_p3), %s516_s13, 1  ;;  %p214_p6 = scmp.lt.s32.totalorder (!%p175_p3), %s512_s12, 1  ;;  %v530_v0 = vmov (!%p175_p3), 0.0   ;;  %vm531_vm0 = vmmov (!%p175_p3), 0   ;;  %vm254_vm1 = vcmask (!%p175_p3), 261120   ;;  %vm308_vm2 = vcmask (!%p175_p3), 125952  }
   0x9   : > { %s622_s18 = smov (%p27_p4, %s620_s18), 0  ;;  %178 = sbr.rel (%p175_p3) target bundleno = 246 (0xf6), region = 32 }
   0xa   : > { %438 = vmatprep.subr.bf16.mxu0 (!%p175_p3), %v530_v0  ;;  %442 = vmatprep.mubr.msk.bf16.mxu0 (!%p175_p3), %vm531_vm0, %v530_v0 }
  0x10   : > { %s624_s13 = smov (!%p212_p5, %s516_s13), 1  ;;  %s626_s12 = smov (!%p214_p6, %s512_s12), 1 }
  0x11   : > { %s434_s19 = sshll.u32 %s624_s13, 4  ;;  %s422_s20 = sshll.u32 %s624_s13, 1 }
  0x12   : > { %s224_s23 = scalar_lea.vmem %s610_s1, %s434_s19  ;;  %s217_s24 = sadd.s32 %s422_s20, %s626_s12 }
  0x13   : > { %v488_v1 = vld [vmem:[%s224_s23] sm:$0xff]   ;;  %s423_s25 = sshll.u32 %s217_s24, 2  ;;  %v489_v2 = vld [vmem:[%s224_s23 + $0x8] sm:$0xff]   ;;  %s227_s4 = scalar_lea.vmem %s611_s2, %s624_s13 }
  0x14   : > { %439 = vmatpush3.bf16.msra.mxu0 %v488_v1  ;;  %s219_s28 = scalar_lea.vmem %s609_s0, %s423_s25  ;;  %v431_v5 = vld [vmem:[%s227_s4] ss:$0 sm:$0xff]  ;;  %s235_s7 = scalar_lea.vmem %s612_s3, %s423_s25 }
  0x15   : > { %440 = vmatprep.subr.bf16.mxu0 %v530_v0  ;;  %v237_v3 = vld [vmem:[%s219_s28] sm:$0xf] }
  0x18   : > { %441 = vmatpush3.bf16.msra.mxu0 %v489_v2 }
  0x1b   : > { %443 = vmatmul.mubr.msk.bf16.vlgmr.msra.gmra.mrb[0].mxu0 %vm254_vm1, %v237_v3 }
  0xee   : > { %v292_v4 = vpop.f32.mrb[0].mxu0 }
  0xef   : > { %v298_v6 = vmul.f32 2.0, %v292_v4  ;;  %v444_v7 = vpop.f32.mrb[1].mxu0 }
  0xf0   : > { %v295_v8 = vpop.f32.mrb[2].mxu0 }
  0xf1   : > { %v306_v9 = vsub.f32 %v298_v6, %v431_v5  ;;  %v445_v10 = vpop.f32.mrb[3].mxu0 }
  0xf3   : > { %v307_v11 = vpack.c.bf16 %v306_v9, %v306_v9 }
  0xf5   : > { %309 = vst.msk [vmem:[%s235_s7] sm:$0xf] %vm308_vm2, %v307_v11 }
  0xf6 PF: > { %s13_s16 = sadd.s32 1, %s528_s16   ;;  %s613_s12 = smov %s520_s14 }
  0xf7   : > { %p10_p7 = scmp.ge.s32.totalorder %s13_s16, 6   ;;  %s614_s13 = smov %s524_s15 }
  0xf8   : > { %s615_s14 = smov %s618_s17  ;;  %s616_s15 = smov %s622_s18 }
  0xf9   :  { %12 = sbr.rel (!%p10_p7) target bundleno = 3 (0x3), region = 68 }

// kernel: _lambda_.12
= control target key start
LH: loop header
LB: loop body
LE: loop exit
PB: predicated region body
PF: predicated region fallthrough
CT: control target
= control target key end

     0   :  { %v3498_v36 = vmov 1966171168   ;;  %v283_v38 = vlaneseq  ;;  %vm2609_vm6 = vcmask 66560   ;;  %s4588_s1 = inlined_call_operand.vmem [shape: bf16[1024,512], index: 1, kind: input, shape index: {}]   ;;  %s4589_s0 = inlined_call_operand.vmem [shape: bf16[2,1024], index: 0, kind: input, shape index: {}]   ;;  %s4590_s2 = inlined_call_operand.vmem [shape: bf16[512,256], index: 2, kind: input, shape index: {}]   ;;  %s4591_s3 = inlined_call_operand.vmem [shape: bf16[256,9], index: 3, kind: input, shape index: {}]   ;;  %s4592_s4 = inlined_call_operand.vmem [shape: f32[1,9], index: 4, kind: input, shape index: {}]   ;;  %s4593_s5 = inlined_call_operand.vmem [shape: f32[2,9], index: 5, kind: output, shape index: {}]  }
   0x1   :  { %v3001_v0 = vld [vmem:[%s4588_s1 + $0x4] ss:$16 sps:$4 sm:$0xff]   ;;  %v3005_v2 = vld [vmem:[%s4588_s1] ss:$16 sps:$4 sm:$0xff]   ;;  %v281_v37 = vunpack.c.l.s4 %v3498_v36 }
   0x2   :  { %v3003_v1 = vld [vmem:[%s4588_s1 + $0x204] ss:$16 sps:$4 sm:$0xff]   ;;  %1616 = vmatprep.subr.bf16.mxu1 %v3001_v0  ;;  %v3006_v3 = vld [vmem:[%s4588_s1 + $0x200] ss:$16 sps:$4 sm:$0xff]   ;;  %v284_v43 = vshrl.u32 %v283_v38, 7 }
   0x3   :  { %1657 = vmatprep.subr.bf16.mxu0 %v3003_v1  ;;  %v3007_v4 = vld [vmem:[%s4588_s1 + $0x24] ss:$16 sps:$4 sm:$0xff]   ;;  %1617 = vmatpush1.bf16.msra.mxu1 %v3005_v2  ;;  %v3011_v6 = vld [vmem:[%s4588_s1 + $0x20] ss:$16 sps:$4 sm:$0xff]   ;;  %v282_v42 = vunpack.c.0.s8 %v281_v37  ;;  %v3124_v37 = vld [vmem:[%s4588_s1 + $0x88] ss:$16 sps:$4 sm:$0xff]  }
   0x4   :  { %1658 = vmatpush1.bf16.msra.mxu0 %v3006_v3  ;;  %v3009_v5 = vld [vmem:[%s4588_s1 + $0x224] ss:$16 sps:$4 sm:$0xff]   ;;  %1618 = vmatprep.subr.bf16.mxu1 %v3007_v4  ;;  %v3012_v7 = vld [vmem:[%s4588_s1 + $0x220] ss:$16 sps:$4 sm:$0xff]  }
   0x5   :  { %1659 = vmatprep.subr.bf16.mxu0 %v3009_v5  ;;  %v3013_v8 = vld [vmem:[%s4588_s1 + $0x44] ss:$16 sps:$4 sm:$0xff]   ;;  %v3017_v10 = vld [vmem:[%s4588_s1 + $0x40] ss:$16 sps:$4 sm:$0xff]   ;;  %v3661_v49 = vsub.s32 %v282_v42, %v284_v43  ;;  %v3138_v43 = vld [vmem:[%s4588_s1 + $0xcc] ss:$16 sps:$4 sm:$0xff]  }
   0x6   :  { %v3015_v9 = vld [vmem:[%s4588_s1 + $0x244] ss:$16 sps:$4 sm:$0xff]   ;;  %v3018_v11 = vld [vmem:[%s4588_s1 + $0x240] ss:$16 sps:$4 sm:$0xff]  }
   0x7   :  { %1619 = vmatpush1.bf16.msra.mxu1 %v3011_v6  ;;  %v3019_v12 = vld [vmem:[%s4588_s1 + $0x64] ss:$16 sps:$4 sm:$0xff]   ;;  %v3023_v14 = vld [vmem:[%s4588_s1 + $0x60] ss:$16 sps:$4 sm:$0xff]  }
   0x8   :  { %1660 = vmatpush1.bf16.msra.mxu0 %v3012_v7  ;;  %1620 = vmatprep.subr.bf16.mxu1 %v3013_v8  ;;  %v3021_v13 = vld [vmem:[%s4588_s1 + $0x264] ss:$16 sps:$4 sm:$0xff]   ;;  %v3024_v15 = vld [vmem:[%s4588_s1 + $0x260] ss:$16 sps:$4 sm:$0xff]  }
   0x9   :  { %1661 = vmatprep.subr.bf16.mxu0 %v3015_v9  ;;  %v3025_v16 = vld [vmem:[%s4588_s1 + $0x84] ss:$16 sps:$4 sm:$0xff]   ;;  %v3029_v18 = vld [vmem:[%s4588_s1 + $0x80] ss:$16 sps:$4 sm:$0xff]  }
   0xa   :  { %v3027_v17 = vld [vmem:[%s4588_s1 + $0x284] ss:$16 sps:$4 sm:$0xff]   ;;  %v3030_v19 = vld [vmem:[%s4588_s1 + $0x280] ss:$16 sps:$4 sm:$0xff]  }
   0xb   :  { %1621 = vmatpush1.bf16.msra.mxu1 %v3017_v10  ;;  %v3031_v20 = vld [vmem:[%s4588_s1 + $0xa4] ss:$16 sps:$4 sm:$0xff]   ;;  %v3035_v22 = vld [vmem:[%s4588_s1 + $0xa0] ss:$16 sps:$4 sm:$0xff]  }
   0xc   :  { %1662 = vmatpush1.bf16.msra.mxu0 %v3018_v11  ;;  %1622 = vmatprep.subr.bf16.mxu1 %v3019_v12  ;;  %v3033_v21 = vld [vmem:[%s4588_s1 + $0x2a4] ss:$16 sps:$4 sm:$0xff]   ;;  %v3036_v23 = vld [vmem:[%s4588_s1 + $0x2a0] ss:$16 sps:$4 sm:$0xff]  }
   0xd   :  { %1663 = vmatprep.subr.bf16.mxu0 %v3021_v13  ;;  %v3037_v24 = vld [vmem:[%s4588_s1 + $0xc4] ss:$16 sps:$4 sm:$0xff]   ;;  %v3041_v26 = vld [vmem:[%s4588_s1 + $0xc0] ss:$16 sps:$4 sm:$0xff]  }
   0xe   :  { %v3039_v25 = vld [vmem:[%s4588_s1 + $0x2c4] ss:$16 sps:$4 sm:$0xff]   ;;  %v3042_v27 = vld [vmem:[%s4588_s1 + $0x2c0] ss:$16 sps:$4 sm:$0xff]  }
   0xf   :  { %1623 = vmatpush1.bf16.msra.mxu1 %v3023_v14  ;;  %v3043_v28 = vld [vmem:[%s4588_s1 + $0xe4] ss:$16 sps:$4 sm:$0xff]   ;;  %v3047_v30 = vld [vmem:[%s4588_s1 + $0xe0] ss:$16 sps:$4 sm:$0xff]  }
  0x10   :  { %1664 = vmatpush1.bf16.msra.mxu0 %v3024_v15  ;;  %1624 = vmatprep.subr.bf16.mxu1 %v3025_v16  ;;  %v3045_v29 = vld [vmem:[%s4588_s1 + $0x2e4] ss:$16 sps:$4 sm:$0xff]   ;;  %v3048_v31 = vld [vmem:[%s4588_s1 + $0x2e0] ss:$16 sps:$4 sm:$0xff]   ;;  %v3102_v16 = vld [vmem:[%s4588_s1 + $0xc] ss:$16 sps:$4 sm:$0xff]  }
  0x11   :  { %1665 = vmatprep.subr.bf16.mxu0 %v3027_v17  ;;  %v3049_v32 = vld [vmem:[%s4588_s1 + $0x104] ss:$16 sps:$4 sm:$0xff]   ;;  %v3053_v34 = vld [vmem:[%s4588_s1 + $0x100] ss:$16 sps:$4 sm:$0xff]  }
  0x12   :  { %v3051_v33 = vld [vmem:[%s4588_s1 + $0x304] ss:$16 sps:$4 sm:$0xff]   ;;  %v3054_v35 = vld [vmem:[%s4588_s1 + $0x300] ss:$16 sps:$4 sm:$0xff]  }
  0x13   :  { %1625 = vmatpush1.bf16.msra.mxu1 %v3029_v18  ;;  %v3055_v39 = vld [vmem:[%s4588_s1 + $0x124] ss:$16 sps:$4 sm:$0xff]   ;;  %v3059_v41 = vld [vmem:[%s4588_s1 + $0x120] ss:$16 sps:$4 sm:$0xff]  }
  0x14   :  { %1666 = vmatpush1.bf16.msra.mxu0 %v3030_v19  ;;  %1626 = vmatprep.subr.bf16.mxu1 %v3031_v20  ;;  %v3057_v40 = vld [vmem:[%s4588_s1 + $0x324] ss:$16 sps:$4 sm:$0xff]   ;;  %v3060_v44 = vld [vmem:[%s4588_s1 + $0x320] ss:$16 sps:$4 sm:$0xff]   ;;  %v3100_v20 = vld [vmem:[%s4588_s1 + $0x8] ss:$16 sps:$4 sm:$0xff]  }
  0x15   :  { %1667 = vmatprep.subr.bf16.mxu0 %v3033_v21  ;;  %v3061_v45 = vld [vmem:[%s4588_s1 + $0x144] ss:$16 sps:$4 sm:$0xff]   ;;  %v3065_v47 = vld [vmem:[%s4588_s1 + $0x140] ss:$16 sps:$4 sm:$0xff]  }
  0x16   :  { %v3063_v46 = vld [vmem:[%s4588_s1 + $0x344] ss:$16 sps:$4 sm:$0xff]   ;;  %v3066_v48 = vld [vmem:[%s4588_s1 + $0x340] ss:$16 sps:$4 sm:$0xff]  }
  0x17   :  { %1627 = vmatpush1.bf16.msra.mxu1 %v3035_v22  ;;  %v3067_v50 = vld [vmem:[%s4588_s1 + $0x164] ss:$16 sps:$4 sm:$0xff]   ;;  %v3071_v53 = vld [vmem:[%s4588_s1 + $0x160] ss:$16 sps:$4 sm:$0xff]   ;;  %v3108_v22 = vld [vmem:[%s4588_s1 + $0x2c] ss:$16 sps:$4 sm:$0xff]  }
  0x18   :  { %1668 = vmatpush1.bf16.msra.mxu0 %v3036_v23  ;;  %1628 = vmatprep.subr.bf16.mxu1 %v3037_v24  ;;  %v3069_v51 = vld [vmem:[%s4588_s1 + $0x364] ss:$16 sps:$4 sm:$0xff]   ;;  %v3072_v56 = vld [vmem:[%s4588_s1 + $0x360] ss:$16 sps:$4 sm:$0xff]  }
  0x19   :  { %1669 = vmatprep.subr.bf16.mxu0 %v3039_v25  ;;  %v21_v52 = vld [vmem:[%s4589_s0] sm:$0xff]  ;;  %v3106_v25 = vld [vmem:[%s4588_s1 + $0x28] ss:$16 sps:$4 sm:$0xff]  }
  0x1a   :  { %v286_v54 = vrot.slane %v21_v52, %v3661_v49  ;;  %v279_v55 = vcombine.high %v21_v52, %v21_v52  ;;  %v3073_v57 = vld [vmem:[%s4588_s1 + $0x184] ss:$16 sps:$4 sm:$0xff]   ;;  %v3077_v61 = vld [vmem:[%s4588_s1 + $0x180] ss:$16 sps:$4 sm:$0xff]  }
  0x1b   :  { %1629 = vmatpush1.bf16.msra.mxu1 %v3041_v26  ;;  %v3075_v58 = vld [vmem:[%s4588_s1 + $0x384] ss:$16 sps:$4 sm:$0xff]   ;;  %v3078_v0 = vld [vmem:[%s4588_s1 + $0x380] ss:$16 sps:$4 sm:$0xff]  }
  0x1c   :  { %1670 = vmatpush1.bf16.msra.mxu0 %v3042_v27  ;;  %1630 = vmatprep.subr.bf16.mxu1 %v3043_v28  ;;  %v294_v59 = vcombine.high %v286_v54, %v286_v54  ;;  %v293_v60 = vrot.slane %v279_v55, %v3661_v49  ;;  %v3079_v1 = vld [vmem:[%s4588_s1 + $0x1a4] ss:$16 sps:$4 sm:$0xff]   ;;  %v3083_v4 = vld [vmem:[%s4588_s1 + $0x1a0] ss:$16 sps:$4 sm:$0xff]   ;;  %v3733_v13 = vrot.slane %v286_v54, %v3661_v49  ;;  %v3114_v27 = vld [vmem:[%s4588_s1 + $0x4c] ss:$16 sps:$4 sm:$0xff]  }
  0x1d   :  { %1671 = vmatprep.subr.bf16.mxu0 %v3045_v29  ;;  %v3081_v2 = vld [vmem:[%s4588_s1 + $0x3a4] ss:$16 sps:$4 sm:$0xff]   ;;  %v3084_v5 = vld [vmem:[%s4588_s1 + $0x3a0] ss:$16 sps:$4 sm:$0xff]   ;;  %v3112_v29 = vld [vmem:[%s4588_s1 + $0x48] ss:$16 sps:$4 sm:$0xff]  }
  0x1e   :  { %v316_v62 = vrot.slane %v294_v59, %v3661_v49  ;;  %v3691_v63 = vrot.slane %v293_v60, %v3661_v49  ;;  %v3085_v6 = vld [vmem:[%s4588_s1 + $0x1c4] ss:$16 sps:$4 sm:$0xff]   ;;  %v3089_v8 = vld [vmem:[%s4588_s1 + $0x1c0] ss:$16 sps:$4 sm:$0xff]   ;;  %v295_v17 = vcombine.high %v293_v60, %v293_v60  ;;  %v3749_v19 = vcombine.high %v3733_v13, %v3733_v13  ;;  %v3156_v55 = vld [vmem:[%s4588_s1 + $0x12c] ss:$16 sps:$4 sm:$0xff]  }
  0x1f   :  { %1631 = vmatpush1.bf16.msra.mxu1 %v3047_v30  ;;  %v3087_v7 = vld [vmem:[%s4588_s1 + $0x3c4] ss:$16 sps:$4 sm:$0xff]   ;;  %v3090_v9 = vld [vmem:[%s4588_s1 + $0x3c0] ss:$16 sps:$4 sm:$0xff]   ;;  %v3162_v59 = vld [vmem:[%s4588_s1 + $0x14c] ss:$16 sps:$4 sm:$0xff]  }
  0x20   :  { %1672 = vmatpush1.bf16.msra.mxu0 %v3048_v31  ;;  %1632 = vmatprep.subr.bf16.mxu1 %v3049_v32  ;;  %v3702_v3 = vcombine.high %v316_v62, %v316_v62  ;;  %v3091_v10 = vld [vmem:[%s4588_s1 + $0x1e4] ss:$16 sps:$4 sm:$0xff]   ;;  %v3095_v12 = vld [vmem:[%s4588_s1 + $0x1e0] ss:$16 sps:$4 sm:$0xff]   ;;  %v3761_v23 = vrot.slane %v295_v17, %v3661_v49  ;;  %v3120_v31 = vld [vmem:[%s4588_s1 + $0x6c] ss:$16 sps:$4 sm:$0xff]  }
  0x21   :  { %1673 = vmatprep.subr.bf16.mxu0 %v3051_v33  ;;  %1648 = vmatprep.mubr.bf16.mxu1 %v316_v62  ;;  %v3093_v11 = vld [vmem:[%s4588_s1 + $0x3e4] ss:$16 sps:$4 sm:$0xff]   ;;  %v3096_v14 = vld [vmem:[%s4588_s1 + $0x3e0] ss:$16 sps:$4 sm:$0xff]   ;;  %v3118_v33 = vld [vmem:[%s4588_s1 + $0x68] ss:$16 sps:$4 sm:$0xff]  }
  0x22   :  { %1689 = vmatprep.mubr.bf16.mxu0 %v3702_v3  ;;  %v3099_v15 = vld [vmem:[%s4588_s1 + $0x404] ss:$16 sps:$4 sm:$0xff]   ;;  %v3097_v18 = vld [vmem:[%s4588_s1 + $0x400] ss:$16 sps:$4 sm:$0xff]   ;;  %v3142_v49 = vld [vmem:[%s4588_s1 + $0xe8] ss:$16 sps:$4 sm:$0xff]  }
  0x23   :  { %1633 = vmatpush1.bf16.msra.mxu1 %v3053_v34  ;;  %v3105_v21 = vld [vmem:[%s4588_s1 + $0x424] ss:$16 sps:$4 sm:$0xff]   ;;  %v3103_v24 = vld [vmem:[%s4588_s1 + $0x420] ss:$16 sps:$4 sm:$0xff]  }
  0x24   :  { %1674 = vmatpush1.bf16.msra.mxu0 %v3054_v35  ;;  %1634 = vmatprep.subr.bf16.mxu1 %v3055_v39  ;;  %v3111_v26 = vld [vmem:[%s4588_s1 + $0x444] ss:$16 sps:$4 sm:$0xff]   ;;  %v3109_v28 = vld [vmem:[%s4588_s1 + $0x440] ss:$16 sps:$4 sm:$0xff]   ;;  %v3126_v35 = vld [vmem:[%s4588_s1 + $0x8c] ss:$16 sps:$4 sm:$0xff]  }
  0x25   :  { %1675 = vmatprep.subr.bf16.mxu0 %v3057_v40  ;;  %v3117_v30 = vld [vmem:[%s4588_s1 + $0x464] ss:$16 sps:$4 sm:$0xff]   ;;  %v3115_v32 = vld [vmem:[%s4588_s1 + $0x460] ss:$16 sps:$4 sm:$0xff]   ;;  %v3132_v39 = vld [vmem:[%s4588_s1 + $0xac] ss:$16 sps:$4 sm:$0xff]  }
  0x26   :  { %v3123_v34 = vld [vmem:[%s4588_s1 + $0x484] ss:$16 sps:$4 sm:$0xff]   ;;  %v3121_v36 = vld [vmem:[%s4588_s1 + $0x480] ss:$16 sps:$4 sm:$0xff]  }
  0x27   :  { %1635 = vmatpush1.bf16.msra.mxu1 %v3059_v41  ;;  %v3129_v38 = vld [vmem:[%s4588_s1 + $0x4a4] ss:$16 sps:$4 sm:$0xff]   ;;  %v3127_v40 = vld [vmem:[%s4588_s1 + $0x4a0] ss:$16 sps:$4 sm:$0xff]   ;;  %v3130_v41 = vld [vmem:[%s4588_s1 + $0xa8] ss:$16 sps:$4 sm:$0xff]  }
  0x28   :  { %1676 = vmatpush1.bf16.msra.mxu0 %v3060_v44  ;;  %1636 = vmatprep.subr.bf16.mxu1 %v3061_v45  ;;  %v3135_v42 = vld [vmem:[%s4588_s1 + $0x4c4] ss:$16 sps:$4 sm:$0xff]   ;;  %v3133_v44 = vld [vmem:[%s4588_s1 + $0x4c0] ss:$16 sps:$4 sm:$0xff]   ;;  %v3136_v45 = vld [vmem:[%s4588_s1 + $0xc8] ss:$16 sps:$4 sm:$0xff]  }
  0x29   :  { %1677 = vmatprep.subr.bf16.mxu0 %v3063_v46  ;;  %v3141_v46 = vld [vmem:[%s4588_s1 + $0x4e4] ss:$16 sps:$4 sm:$0xff]   ;;  %v3145_v52 = vld [vmem:[%s4588_s1 + $0x500] ss:$16 sps:$4 sm:$0xff]  }
  0x2a   :  { %v3153_v54 = vld [vmem:[%s4588_s1 + $0x524] ss:$16 sps:$4 sm:$0xff]   ;;  %v3157_v60 = vld [vmem:[%s4588_s1 + $0x540] ss:$16 sps:$4 sm:$0xff]  }
  0x2b   :  { %1637 = vmatpush1.bf16.msra.mxu1 %v3065_v47  ;;  %v3144_v47 = vld [vmem:[%s4588_s1 + $0xec] ss:$16 sps:$4 sm:$0xff]   ;;  %v3189_v17 = vld [vmem:[%s4588_s1 + $0x5e4] ss:$16 sps:$4 sm:$0xff]  }
  0x2c   :  { %1678 = vmatpush1.bf16.msra.mxu0 %v3066_v48  ;;  %1638 = vmatprep.subr.bf16.mxu1 %v3067_v50  ;;  %v3139_v48 = vld [vmem:[%s4588_s1 + $0x4e0] ss:$16 sps:$4 sm:$0xff]   ;;  %v3147_v50 = vld [vmem:[%s4588_s1 + $0x504] ss:$16 sps:$4 sm:$0xff]  }
  0x2d   :  { %1679 = vmatprep.subr.bf16.mxu0 %v3069_v51  ;;  %v3150_v51 = vld [vmem:[%s4588_s1 + $0x10c] ss:$16 sps:$4 sm:$0xff]  }
  0x2f   :  { %1639 = vmatpush1.bf16.msra.mxu1 %v3071_v53  ;;  %v3148_v53 = vld [vmem:[%s4588_s1 + $0x108] ss:$16 sps:$4 sm:$0xff]  }
  0x30   :  { %1680 = vmatpush1.bf16.msra.mxu0 %v3072_v56  ;;  %1640 = vmatprep.subr.bf16.mxu1 %v3073_v57  ;;  %v3151_v56 = vld [vmem:[%s4588_s1 + $0x520] ss:$16 sps:$4 sm:$0xff]   ;;  %v3154_v57 = vld [vmem:[%s4588_s1 + $0x128] ss:$16 sps:$4 sm:$0xff]  }
  0x31   :  { %1681 = vmatprep.subr.bf16.mxu0 %v3075_v58  ;;  %v3159_v58 = vld [vmem:[%s4588_s1 + $0x544] ss:$16 sps:$4 sm:$0xff]  }
  0x33   :  { %1641 = vmatpush1.bf16.msra.mxu1 %v3077_v61  ;;  %v3160_v61 = vld [vmem:[%s4588_s1 + $0x148] ss:$16 sps:$4 sm:$0xff]  }
  0x34   :  { %1682 = vmatpush1.bf16.msra.mxu0 %v3078_v0  ;;  %1642 = vmatprep.subr.bf16.mxu1 %v3079_v1  ;;  %v3168_v0 = vld [vmem:[%s4588_s1 + $0x16c] ss:$16 sps:$4 sm:$0xff]   ;;  %v3163_v1 = vld [vmem:[%s4588_s1 + $0x560] ss:$16 sps:$4 sm:$0xff]  }
  0x35   :  { %1683 = vmatprep.subr.bf16.mxu0 %v3081_v2  ;;  %v3166_v2 = vld [vmem:[%s4588_s1 + $0x168] ss:$16 sps:$4 sm:$0xff]  }
  0x37   :  { %1643 = vmatpush1.bf16.msra.mxu1 %v3083_v4  ;;  %v3171_v4 = vld [vmem:[%s4588_s1 + $0x584] ss:$16 sps:$4 sm:$0xff]  }
  0x38   :  { %1684 = vmatpush1.bf16.msra.mxu0 %v3084_v5  ;;  %1644 = vmatprep.subr.bf16.mxu1 %v3085_v6  ;;  %v3174_v5 = vld [vmem:[%s4588_s1 + $0x18c] ss:$16 sps:$4 sm:$0xff]   ;;  %v3169_v6 = vld [vmem:[%s4588_s1 + $0x580] ss:$16 sps:$4 sm:$0xff]  }
  0x39   :  { %1685 = vmatprep.subr.bf16.mxu0 %v3087_v7  ;;  %v3172_v7 = vld [vmem:[%s4588_s1 + $0x188] ss:$16 sps:$4 sm:$0xff]  }
  0x3b   :  { %1645 = vmatpush1.bf16.msra.mxu1 %v3089_v8  ;;  %v3177_v8 = vld [vmem:[%s4588_s1 + $0x5a4] ss:$16 sps:$4 sm:$0xff]  }
  0x3c   :  { %1686 = vmatpush1.bf16.msra.mxu0 %v3090_v9  ;;  %1646 = vmatprep.subr.bf16.mxu1 %v3091_v10  ;;  %v3180_v9 = vld [vmem:[%s4588_s1 + $0x1ac] ss:$16 sps:$4 sm:$0xff]   ;;  %v3175_v10 = vld [vmem:[%s4588_s1 + $0x5a0] ss:$16 sps:$4 sm:$0xff]  }
  0x3d   :  { %1687 = vmatprep.subr.bf16.mxu0 %v3093_v11  ;;  %v3178_v11 = vld [vmem:[%s4588_s1 + $0x1a8] ss:$16 sps:$4 sm:$0xff]  }
  0x3f   :  { %1647 = vmatpush1.bf16.msra.mxu1 %v3095_v12  ;;  %v3183_v12 = vld [vmem:[%s4588_s1 + $0x5c4] ss:$16 sps:$4 sm:$0xff]  }
  0x40   :  { %1688 = vmatpush1.bf16.msra.mxu0 %v3096_v14  ;;  %1780 = vmatprep.subr.bf16.mxu1 %v3102_v16  ;;  %v3186_v14 = vld [vmem:[%s4588_s1 + $0x1cc] ss:$16 sps:$4 sm:$0xff]   ;;  %v3184_v16 = vld [vmem:[%s4588_s1 + $0x1c8] ss:$16 sps:$4 sm:$0xff]  }
  0x41   :  { %1698 = vmatprep.subr.bf16.mxu0 %v3099_v15  ;;  %v3181_v15 = vld [vmem:[%s4588_s1 + $0x5c0] ss:$16 sps:$4 sm:$0xff]  }
  0x42   :  { %1649 = vmatmul.mubr.bf16.vlgmr.msra.gmra.mrb[0].mxu1 %v3733_v13 }
  0x43   :  { %1690 = vmatmul.mubr.bf16.vlgmr.msra.gmra.mrb[0].mxu0 %v3749_v19  ;;  %1781 = vmatpush1.bf16.msra.mxu1 %v3100_v20  ;;  %v3187_v20 = vld [vmem:[%s4588_s1 + $0x5e0] ss:$16 sps:$4 sm:$0xff]  }
  0x44   :  { %1699 = vmatpush1.bf16.msra.mxu0 %v3097_v18  ;;  %1782 = vmatprep.subr.bf16.mxu1 %v3108_v22  ;;  %v3192_v18 = vld [vmem:[%s4588_s1 + $0x1ec] ss:$16 sps:$4 sm:$0xff]   ;;  %v3196_v22 = vld [vmem:[%s4588_s1 + $0x604] ss:$16 sps:$4 sm:$0xff]  }
  0x45   :  { %1700 = vmatprep.subr.bf16.mxu0 %v3105_v21  ;;  %1730 = vmatprep.mubr.bf16.mxu0 %v3761_v23  ;;  %v3190_v21 = vld [vmem:[%s4588_s1 + $0x1e8] ss:$16 sps:$4 sm:$0xff]  }
  0x46   :  { %1812 = vmatprep.mubr.bf16.mxu1 %v316_v62  ;;  %v3165_v62 = vld [vmem:[%s4588_s1 + $0x564] ss:$16 sps:$4 sm:$0xff]  }
  0x47   :  { %1783 = vmatpush1.bf16.msra.mxu1 %v3106_v25  ;;  %v3194_v25 = vld [vmem:[%s4588_s1 + $0x600] ss:$16 sps:$4 sm:$0xff]  }
  0x48   :  { %1701 = vmatpush1.bf16.msra.mxu0 %v3103_v24  ;;  %1784 = vmatprep.subr.bf16.mxu1 %v3114_v27  ;;  %v3199_v24 = vld [vmem:[%s4588_s1 + $0x20c] ss:$16 sps:$4 sm:$0xff]   ;;  %v3202_v27 = vld [vmem:[%s4588_s1 + $0x624] ss:$16 sps:$4 sm:$0xff]  }
  0x49   :  { %1702 = vmatprep.subr.bf16.mxu0 %v3111_v26  ;;  %v3197_v26 = vld [vmem:[%s4588_s1 + $0x208] ss:$16 sps:$4 sm:$0xff]  }
  0x4b   :  { %1785 = vmatpush1.bf16.msra.mxu1 %v3112_v29  ;;  %v3960_v29 = vcombine.high %v3761_v23, %v3761_v23 }
  0x4c   :  { %1703 = vmatpush1.bf16.msra.mxu0 %v3109_v28  ;;  %1786 = vmatprep.subr.bf16.mxu1 %v3120_v31  ;;  %v3205_v28 = vld [vmem:[%s4588_s1 + $0x22c] ss:$16 sps:$4 sm:$0xff]   ;;  %v3203_v31 = vld [vmem:[%s4588_s1 + $0x228] ss:$16 sps:$4 sm:$0xff]  }
  0x4d   :  { %1704 = vmatprep.subr.bf16.mxu0 %v3117_v30  ;;  %v3200_v30 = vld [vmem:[%s4588_s1 + $0x620] ss:$16 sps:$4 sm:$0xff]  }
  0x4f   :  { %1787 = vmatpush1.bf16.msra.mxu1 %v3118_v33  ;;  %v3206_v33 = vld [vmem:[%s4588_s1 + $0x640] ss:$16 sps:$4 sm:$0xff]  }
  0x50   :  { %1705 = vmatpush1.bf16.msra.mxu0 %v3115_v32  ;;  %1788 = vmatprep.subr.bf16.mxu1 %v3126_v35  ;;  %v3208_v32 = vld [vmem:[%s4588_s1 + $0x644] ss:$16 sps:$4 sm:$0xff]  }
  0x51   :  { %1706 = vmatprep.subr.bf16.mxu0 %v3123_v34  ;;  %v3209_v34 = vld [vmem:[%s4588_s1 + $0x248] ss:$16 sps:$4 sm:$0xff]   ;;  %v3214_v35 = vld [vmem:[%s4588_s1 + $0x664] ss:$16 sps:$4 sm:$0xff]  }
  0x53   :  { %1789 = vmatpush1.bf16.msra.mxu1 %v3124_v37  ;;  %v3215_v37 = vld [vmem:[%s4588_s1 + $0x268] ss:$16 sps:$4 sm:$0xff]  }
  0x54   :  { %1707 = vmatpush1.bf16.msra.mxu0 %v3121_v36  ;;  %1790 = vmatprep.subr.bf16.mxu1 %v3132_v39  ;;  %v3212_v36 = vld [vmem:[%s4588_s1 + $0x660] ss:$16 sps:$4 sm:$0xff]   ;;  %v3223_v39 = vld [vmem:[%s4588_s1 + $0x28c] ss:$16 sps:$4 sm:$0xff]  }
  0x55   :  { %1708 = vmatprep.subr.bf16.mxu0 %v3129_v38  ;;  %v3220_v38 = vld [vmem:[%s4588_s1 + $0x684] ss:$16 sps:$4 sm:$0xff]  }
  0x57   :  { %1791 = vmatpush1.bf16.msra.mxu1 %v3130_v41  ;;  %v3221_v41 = vld [vmem:[%s4588_s1 + $0x288] ss:$16 sps:$4 sm:$0xff]  }
  0x58   :  { %1709 = vmatpush1.bf16.msra.mxu0 %v3127_v40  ;;  %1792 = vmatprep.subr.bf16.mxu1 %v3138_v43  ;;  %v3218_v40 = vld [vmem:[%s4588_s1 + $0x680] ss:$16 sps:$4 sm:$0xff]   ;;  %v3229_v43 = vld [vmem:[%s4588_s1 + $0x2ac] ss:$16 sps:$4 sm:$0xff]  }
  0x59   :  { %1710 = vmatprep.subr.bf16.mxu0 %v3135_v42  ;;  %v3226_v42 = vld [vmem:[%s4588_s1 + $0x6a4] ss:$16 sps:$4 sm:$0xff]  }
  0x5b   :  { %1793 = vmatpush1.bf16.msra.mxu1 %v3136_v45  ;;  %v3227_v45 = vld [vmem:[%s4588_s1 + $0x2a8] ss:$16 sps:$4 sm:$0xff]  }
  0x5c   :  { %1711 = vmatpush1.bf16.msra.mxu0 %v3133_v44  ;;  %1794 = vmatprep.subr.bf16.mxu1 %v3144_v47  ;;  %v3224_v44 = vld [vmem:[%s4588_s1 + $0x6a0] ss:$16 sps:$4 sm:$0xff]   ;;  %v3235_v47 = vld [vmem:[%s4588_s1 + $0x2cc] ss:$16 sps:$4 sm:$0xff]  }
  0x5d   :  { %1712 = vmatprep.subr.bf16.mxu0 %v3141_v46  ;;  %v3232_v46 = vld [vmem:[%s4588_s1 + $0x6c4] ss:$16 sps:$4 sm:$0xff]  }
  0x5f   :  { %1795 = vmatpush1.bf16.msra.mxu1 %v3142_v49  ;;  %v3233_v49 = vld [vmem:[%s4588_s1 + $0x2c8] ss:$16 sps:$4 sm:$0xff]  }
  0x60   :  { %1713 = vmatpush1.bf16.msra.mxu0 %v3139_v48  ;;  %1796 = vmatprep.subr.bf16.mxu1 %v3150_v51  ;;  %v3230_v48 = vld [vmem:[%s4588_s1 + $0x6c0] ss:$16 sps:$4 sm:$0xff]   ;;  %v3241_v51 = vld [vmem:[%s4588_s1 + $0x2ec] ss:$16 sps:$4 sm:$0xff]  }
  0x61   :  { %1714 = vmatprep.subr.bf16.mxu0 %v3147_v50  ;;  %v3238_v50 = vld [vmem:[%s4588_s1 + $0x6e4] ss:$16 sps:$4 sm:$0xff]  }
  0x63   :  { %1797 = vmatpush1.bf16.msra.mxu1 %v3148_v53  ;;  %v3239_v53 = vld [vmem:[%s4588_s1 + $0x2e8] ss:$16 sps:$4 sm:$0xff]  }
  0x64   :  { %1715 = vmatpush1.bf16.msra.mxu0 %v3145_v52  ;;  %1798 = vmatprep.subr.bf16.mxu1 %v3156_v55  ;;  %v3236_v52 = vld [vmem:[%s4588_s1 + $0x6e0] ss:$16 sps:$4 sm:$0xff]   ;;  %v3247_v55 = vld [vmem:[%s4588_s1 + $0x30c] ss:$16 sps:$4 sm:$0xff]  }
  0x65   :  { %1716 = vmatprep.subr.bf16.mxu0 %v3153_v54  ;;  %v3244_v54 = vld [vmem:[%s4588_s1 + $0x704] ss:$16 sps:$4 sm:$0xff]  }
  0x67   :  { %1799 = vmatpush1.bf16.msra.mxu1 %v3154_v57  ;;  %v3245_v57 = vld [vmem:[%s4588_s1 + $0x308] ss:$16 sps:$4 sm:$0xff]  }
  0x68   :  { %1717 = vmatpush1.bf16.msra.mxu0 %v3151_v56  ;;  %1800 = vmatprep.subr.bf16.mxu1 %v3162_v59  ;;  %v3242_v56 = vld [vmem:[%s4588_s1 + $0x700] ss:$16 sps:$4 sm:$0xff]   ;;  %v3253_v59 = vld [vmem:[%s4588_s1 + $0x32c] ss:$16 sps:$4 sm:$0xff]  }
  0x69   :  { %1718 = vmatprep.subr.bf16.mxu0 %v3159_v58  ;;  %v3250_v58 = vld [vmem:[%s4588_s1 + $0x724] ss:$16 sps:$4 sm:$0xff]  }
  0x6b   :  { %1801 = vmatpush1.bf16.msra.mxu1 %v3160_v61  ;;  %v3251_v61 = vld [vmem:[%s4588_s1 + $0x328] ss:$16 sps:$4 sm:$0xff]  }
  0x6c   :  { %1719 = vmatpush1.bf16.msra.mxu0 %v3157_v60  ;;  %1802 = vmatprep.subr.bf16.mxu1 %v3168_v0  ;;  %v3248_v60 = vld [vmem:[%s4588_s1 + $0x720] ss:$16 sps:$4 sm:$0xff]   ;;  %v3259_v0 = vld [vmem:[%s4588_s1 + $0x34c] ss:$16 sps:$4 sm:$0xff]  }
  0x6d   :  { %1720 = vmatprep.subr.bf16.mxu0 %v3165_v62  ;;  %v3256_v62 = vld [vmem:[%s4588_s1 + $0x744] ss:$16 sps:$4 sm:$0xff]  }
  0x6f   :  { %1803 = vmatpush1.bf16.msra.mxu1 %v3166_v2  ;;  %v3257_v2 = vld [vmem:[%s4588_s1 + $0x348] ss:$16 sps:$4 sm:$0xff]  }
  0x70   :  { %1721 = vmatpush1.bf16.msra.mxu0 %v3163_v1  ;;  %1804 = vmatprep.subr.bf16.mxu1 %v3174_v5  ;;  %v3254_v1 = vld [vmem:[%s4588_s1 + $0x740] ss:$16 sps:$4 sm:$0xff]   ;;  %v3265_v5 = vld [vmem:[%s4588_s1 + $0x36c] ss:$16 sps:$4 sm:$0xff]  }
  0x71   :  { %1722 = vmatprep.subr.bf16.mxu0 %v3171_v4  ;;  %v3262_v4 = vld [vmem:[%s4588_s1 + $0x764] ss:$16 sps:$4 sm:$0xff]  }
  0x73   :  { %1805 = vmatpush1.bf16.msra.mxu1 %v3172_v7  ;;  %v3263_v7 = vld [vmem:[%s4588_s1 + $0x368] ss:$16 sps:$4 sm:$0xff]  }
  0x74   :  { %1723 = vmatpush1.bf16.msra.mxu0 %v3169_v6  ;;  %1806 = vmatprep.subr.bf16.mxu1 %v3180_v9  ;;  %v3260_v6 = vld [vmem:[%s4588_s1 + $0x760] ss:$16 sps:$4 sm:$0xff]   ;;  %v3271_v9 = vld [vmem:[%s4588_s1 + $0x38c] ss:$16 sps:$4 sm:$0xff]  }
  0x75   :  { %1724 = vmatprep.subr.bf16.mxu0 %v3177_v8  ;;  %v3268_v8 = vld [vmem:[%s4588_s1 + $0x784] ss:$16 sps:$4 sm:$0xff]  }
  0x77   :  { %1807 = vmatpush1.bf16.msra.mxu1 %v3178_v11  ;;  %v3269_v11 = vld [vmem:[%s4588_s1 + $0x388] ss:$16 sps:$4 sm:$0xff]  }
  0x78   :  { %1725 = vmatpush1.bf16.msra.mxu0 %v3175_v10  ;;  %1808 = vmatprep.subr.bf16.mxu1 %v3186_v14  ;;  %v3266_v10 = vld [vmem:[%s4588_s1 + $0x780] ss:$16 sps:$4 sm:$0xff]   ;;  %v3277_v14 = vld [vmem:[%s4588_s1 + $0x3ac] ss:$16 sps:$4 sm:$0xff]  }
  0x79   :  { %1726 = vmatprep.subr.bf16.mxu0 %v3183_v12  ;;  %v3274_v12 = vld [vmem:[%s4588_s1 + $0x7a4] ss:$16 sps:$4 sm:$0xff]  }
  0x7b   :  { %1809 = vmatpush1.bf16.msra.mxu1 %v3184_v16  ;;  %v3275_v16 = vld [vmem:[%s4588_s1 + $0x3a8] ss:$16 sps:$4 sm:$0xff]  }
  0x7c   :  { %1727 = vmatpush1.bf16.msra.mxu0 %v3181_v15  ;;  %1810 = vmatprep.subr.bf16.mxu1 %v3192_v18  ;;  %v3272_v15 = vld [vmem:[%s4588_s1 + $0x7a0] ss:$16 sps:$4 sm:$0xff]   ;;  %v3283_v18 = vld [vmem:[%s4588_s1 + $0x3cc] ss:$16 sps:$4 sm:$0xff]  }
  0x7d   :  { %1728 = vmatprep.subr.bf16.mxu0 %v3189_v17  ;;  %v3280_v17 = vld [vmem:[%s4588_s1 + $0x7c4] ss:$16 sps:$4 sm:$0xff]  }
  0x7f   :  { %1811 = vmatpush1.bf16.msra.mxu1 %v3190_v21  ;;  %v3281_v21 = vld [vmem:[%s4588_s1 + $0x3c8] ss:$16 sps:$4 sm:$0xff]  }
  0x80   :  { %1729 = vmatpush1.bf16.msra.mxu0 %v3187_v20  ;;  %1821 = vmatprep.subr.bf16.mxu1 %v3199_v24  ;;  %v3278_v20 = vld [vmem:[%s4588_s1 + $0x7c0] ss:$16 sps:$4 sm:$0xff]   ;;  %v3289_v24 = vld [vmem:[%s4588_s1 + $0x3ec] ss:$16 sps:$4 sm:$0xff]  }
  0x81   :  { %1739 = vmatprep.subr.bf16.mxu0 %v3196_v22  ;;  %v3286_v22 = vld [vmem:[%s4588_s1 + $0x7e4] ss:$16 sps:$4 sm:$0xff]  }
  0x82   :  { %1813 = vmatmul.mubr.bf16.vlgmr.msra.gmra.mrb[4].mxu1 %v3733_v13  ;;  %v3211_v13 = vld [vmem:[%s4588_s1 + $0x24c] ss:$16 sps:$4 sm:$0xff]  }
  0x83   :  { %1731 = vmatmul.mubr.bf16.vlgmr.msra.gmra.mrb[0].mxu0 %v3691_v63  ;;  %1822 = vmatpush1.bf16.msra.mxu1 %v3197_v26  ;;  %v3287_v26 = vld [vmem:[%s4588_s1 + $0x3e8] ss:$16 sps:$4 sm:$0xff]  }
  0x84   :  { %1740 = vmatpush1.bf16.msra.mxu0 %v3194_v25  ;;  %1823 = vmatprep.subr.bf16.mxu1 %v3205_v28  ;;  %v3284_v25 = vld [vmem:[%s4588_s1 + $0x7e0] ss:$16 sps:$4 sm:$0xff]   ;;  %v4145_v28 = vcombine.high %v3691_v63, %v3691_v63 }
  0x85   :  { %1741 = vmatprep.subr.bf16.mxu0 %v3202_v27  ;;  %1771 = vmatprep.mubr.bf16.mxu0 %v3960_v29  ;;  %v3292_v27 = vld [vmem:[%s4588_s1 + $0x40c] ss:$16 sps:$4 sm:$0xff]  }
  0x86   :  { %1853 = vmatprep.mubr.bf16.mxu1 %v3702_v3  ;;  %v3217_v3 = vld [vmem:[%s4588_s1 + $0x26c] ss:$16 sps:$4 sm:$0xff]  }
  0x87   :  { %1824 = vmatpush1.bf16.msra.mxu1 %v3203_v31  ;;  %v3295_v31 = vld [vmem:[%s4588_s1 + $0x42c] ss:$16 sps:$4 sm:$0xff]  }
  0x88   :  { %1742 = vmatpush1.bf16.msra.mxu0 %v3200_v30  ;;  %1825 = vmatprep.subr.bf16.mxu1 %v3211_v13  ;;  %v3290_v30 = vld [vmem:[%s4588_s1 + $0x408] ss:$16 sps:$4 sm:$0xff]   ;;  %v3298_v13 = vld [vmem:[%s4588_s1 + $0x44c] ss:$16 sps:$4 sm:$0xff]  }
  0x89   :  { %1743 = vmatprep.subr.bf16.mxu0 %v3208_v32  ;;  %v3293_v32 = vld [vmem:[%s4588_s1 + $0x428] ss:$16 sps:$4 sm:$0xff]  }
  0x8b   :  { %1826 = vmatpush1.bf16.msra.mxu1 %v3209_v34  ;;  %v3391_v34 = vld [vmem:[%s4590_s2 + $0x14] ss:$8 sps:$4 sm:$0xff]  }
  0x8c   :  { %1744 = vmatpush1.bf16.msra.mxu0 %v3206_v33  ;;  %1827 = vmatprep.subr.bf16.mxu1 %v3217_v3  ;;  %v3386_v33 = vld [vmem:[%s4590_s2] ss:$8 sps:$4 sm:$0xff]   ;;  %v3389_v3 = vld [vmem:[%s4590_s2 + $0x10] ss:$8 sps:$4 sm:$0xff]  }
  0x8d   :  { %1745 = vmatprep.subr.bf16.mxu0 %v3214_v35  ;;  %v3296_v35 = vld [vmem:[%s4588_s1 + $0x448] ss:$16 sps:$4 sm:$0xff]  }
  0x8f   :  { %1828 = vmatpush1.bf16.msra.mxu1 %v3215_v37  ;;  %v3299_v37 = vld [vmem:[%s4588_s1 + $0x468] ss:$16 sps:$4 sm:$0xff]  }
  0x90   :  { %1746 = vmatpush1.bf16.msra.mxu0 %v3212_v36  ;;  %1829 = vmatprep.subr.bf16.mxu1 %v3223_v39  ;;  %v3394_v36 = vld [vmem:[%s4590_s2 + $0x24] ss:$8 sps:$4 sm:$0xff]   ;;  %v3392_v39 = vld [vmem:[%s4590_s2 + $0x20] ss:$8 sps:$4 sm:$0xff]  }
  0x91   :  { %1747 = vmatprep.subr.bf16.mxu0 %v3220_v38  ;;  %v3304_v38 = vld [vmem:[%s4588_s1 + $0x48c] ss:$16 sps:$4 sm:$0xff]  }
  0x93   :  { %1830 = vmatpush1.bf16.msra.mxu1 %v3221_v41  ;;  %v3302_v41 = vld [vmem:[%s4588_s1 + $0x488] ss:$16 sps:$4 sm:$0xff]  }
  0x94   :  { %1748 = vmatpush1.bf16.msra.mxu0 %v3218_v40  ;;  %1831 = vmatprep.subr.bf16.mxu1 %v3229_v43  ;;  %v3397_v40 = vld [vmem:[%s4590_s2 + $0x34] ss:$8 sps:$4 sm:$0xff]   ;;  %v3395_v43 = vld [vmem:[%s4590_s2 + $0x30] ss:$8 sps:$4 sm:$0xff]  }
  0x95   :  { %1749 = vmatprep.subr.bf16.mxu0 %v3226_v42  ;;  %v3307_v42 = vld [vmem:[%s4588_s1 + $0x4ac] ss:$16 sps:$4 sm:$0xff]  }
  0x97   :  { %1832 = vmatpush1.bf16.msra.mxu1 %v3227_v45  ;;  %v3305_v45 = vld [vmem:[%s4588_s1 + $0x4a8] ss:$16 sps:$4 sm:$0xff]  }
  0x98   :  { %1750 = vmatpush1.bf16.msra.mxu0 %v3224_v44  ;;  %1833 = vmatprep.subr.bf16.mxu1 %v3235_v47  ;;  %v3400_v44 = vld [vmem:[%s4590_s2 + $0x44] ss:$8 sps:$4 sm:$0xff]   ;;  %v3398_v47 = vld [vmem:[%s4590_s2 + $0x40] ss:$8 sps:$4 sm:$0xff]  }
  0x99   :  { %1751 = vmatprep.subr.bf16.mxu0 %v3232_v46  ;;  %v3310_v46 = vld [vmem:[%s4588_s1 + $0x4cc] ss:$16 sps:$4 sm:$0xff]  }
  0x9b   :  { %1834 = vmatpush1.bf16.msra.mxu1 %v3233_v49  ;;  %v3308_v49 = vld [vmem:[%s4588_s1 + $0x4c8] ss:$16 sps:$4 sm:$0xff]  }
  0x9c   :  { %1752 = vmatpush1.bf16.msra.mxu0 %v3230_v48  ;;  %1835 = vmatprep.subr.bf16.mxu1 %v3241_v51  ;;  %v3403_v48 = vld [vmem:[%s4590_s2 + $0x54] ss:$8 sps:$4 sm:$0xff]  }
  0x9d   :  { %1753 = vmatprep.subr.bf16.mxu0 %v3238_v50  ;;  %v3401_v50 = vld [vmem:[%s4590_s2 + $0x50] ss:$8 sps:$4 sm:$0xff]   ;;  %v3313_v51 = vld [vmem:[%s4588_s1 + $0x4ec] ss:$16 sps:$4 sm:$0xff]  }
  0x9f   :  { %1836 = vmatpush1.bf16.msra.mxu1 %v3239_v53  ;;  %v3311_v53 = vld [vmem:[%s4588_s1 + $0x4e8] ss:$16 sps:$4 sm:$0xff]  }
  0xa0   :  { %1754 = vmatpush1.bf16.msra.mxu0 %v3236_v52  ;;  %1837 = vmatprep.subr.bf16.mxu1 %v3247_v55  ;;  %v3406_v52 = vld [vmem:[%s4590_s2 + $0x64] ss:$8 sps:$4 sm:$0xff]  }
  0xa1   :  { %1755 = vmatprep.subr.bf16.mxu0 %v3244_v54  ;;  %v3404_v54 = vld [vmem:[%s4590_s2 + $0x60] ss:$8 sps:$4 sm:$0xff]   ;;  %v3316_v55 = vld [vmem:[%s4588_s1 + $0x50c] ss:$16 sps:$4 sm:$0xff]  }
  0xa3   :  { %1838 = vmatpush1.bf16.msra.mxu1 %v3245_v57  ;;  %v3314_v57 = vld [vmem:[%s4588_s1 + $0x508] ss:$16 sps:$4 sm:$0xff]  }
  0xa4   :  { %1756 = vmatpush1.bf16.msra.mxu0 %v3242_v56  ;;  %1839 = vmatprep.subr.bf16.mxu1 %v3253_v59  ;;  %v3409_v56 = vld [vmem:[%s4590_s2 + $0x74] ss:$8 sps:$4 sm:$0xff]  }
  0xa5   :  { %1757 = vmatprep.subr.bf16.mxu0 %v3250_v58  ;;  %v3407_v58 = vld [vmem:[%s4590_s2 + $0x70] ss:$8 sps:$4 sm:$0xff]   ;;  %v3319_v59 = vld [vmem:[%s4588_s1 + $0x52c] ss:$16 sps:$4 sm:$0xff]  }
  0xa7   :  { %1840 = vmatpush1.bf16.msra.mxu1 %v3251_v61  ;;  %v3317_v61 = vld [vmem:[%s4588_s1 + $0x528] ss:$16 sps:$4 sm:$0xff]  }
  0xa8   :  { %1758 = vmatpush1.bf16.msra.mxu0 %v3248_v60  ;;  %1841 = vmatprep.subr.bf16.mxu1 %v3259_v0  ;;  %v3412_v60 = vld [vmem:[%s4590_s2 + $0x84] ss:$8 sps:$4 sm:$0xff]  }
  0xa9   :  { %1759 = vmatprep.subr.bf16.mxu0 %v3256_v62  ;;  %v3410_v62 = vld [vmem:[%s4590_s2 + $0x80] ss:$8 sps:$4 sm:$0xff]   ;;  %v3322_v0 = vld [vmem:[%s4588_s1 + $0x54c] ss:$16 sps:$4 sm:$0xff]  }
  0xab   :  { %1842 = vmatpush1.bf16.msra.mxu1 %v3257_v2  ;;  %v3320_v2 = vld [vmem:[%s4588_s1 + $0x548] ss:$16 sps:$4 sm:$0xff]  }
  0xac   :  { %1760 = vmatpush1.bf16.msra.mxu0 %v3254_v1  ;;  %1843 = vmatprep.subr.bf16.mxu1 %v3265_v5  ;;  %v3415_v1 = vld [vmem:[%s4590_s2 + $0x94] ss:$8 sps:$4 sm:$0xff]  }
  0xad   :  { %1761 = vmatprep.subr.bf16.mxu0 %v3262_v4  ;;  %v3413_v4 = vld [vmem:[%s4590_s2 + $0x90] ss:$8 sps:$4 sm:$0xff]   ;;  %v3325_v5 = vld [vmem:[%s4588_s1 + $0x56c] ss:$16 sps:$4 sm:$0xff]  }
  0xaf   :  { %1844 = vmatpush1.bf16.msra.mxu1 %v3263_v7  ;;  %v3323_v7 = vld [vmem:[%s4588_s1 + $0x568] ss:$16 sps:$4 sm:$0xff]  }
  0xb0   :  { %1762 = vmatpush1.bf16.msra.mxu0 %v3260_v6  ;;  %1845 = vmatprep.subr.bf16.mxu1 %v3271_v9  ;;  %v3418_v6 = vld [vmem:[%s4590_s2 + $0xa4] ss:$8 sps:$4 sm:$0xff]  }
  0xb1   :  { %1763 = vmatprep.subr.bf16.mxu0 %v3268_v8  ;;  %v3416_v8 = vld [vmem:[%s4590_s2 + $0xa0] ss:$8 sps:$4 sm:$0xff]   ;;  %v3328_v9 = vld [vmem:[%s4588_s1 + $0x58c] ss:$16 sps:$4 sm:$0xff]  }
  0xb3   :  { %1846 = vmatpush1.bf16.msra.mxu1 %v3269_v11  ;;  %v3326_v11 = vld [vmem:[%s4588_s1 + $0x588] ss:$16 sps:$4 sm:$0xff]  }
  0xb4   :  { %1764 = vmatpush1.bf16.msra.mxu0 %v3266_v10  ;;  %1847 = vmatprep.subr.bf16.mxu1 %v3277_v14  ;;  %v3421_v10 = vld [vmem:[%s4590_s2 + $0xb4] ss:$8 sps:$4 sm:$0xff]  }
  0xb5   :  { %1765 = vmatprep.subr.bf16.mxu0 %v3274_v12  ;;  %v3419_v12 = vld [vmem:[%s4590_s2 + $0xb0] ss:$8 sps:$4 sm:$0xff]   ;;  %v3331_v14 = vld [vmem:[%s4588_s1 + $0x5ac] ss:$16 sps:$4 sm:$0xff]  }
  0xb7   :  { %1848 = vmatpush1.bf16.msra.mxu1 %v3275_v16  ;;  %v3329_v16 = vld [vmem:[%s4588_s1 + $0x5a8] ss:$16 sps:$4 sm:$0xff]  }
  0xb8   :  { %1766 = vmatpush1.bf16.msra.mxu0 %v3272_v15  ;;  %1849 = vmatprep.subr.bf16.mxu1 %v3283_v18  ;;  %v3424_v15 = vld [vmem:[%s4590_s2 + $0xc4] ss:$8 sps:$4 sm:$0xff]  }
  0xb9   :  { %1767 = vmatprep.subr.bf16.mxu0 %v3280_v17  ;;  %v3422_v17 = vld [vmem:[%s4590_s2 + $0xc0] ss:$8 sps:$4 sm:$0xff]   ;;  %v3334_v18 = vld [vmem:[%s4588_s1 + $0x5cc] ss:$16 sps:$4 sm:$0xff]  }
  0xbb   :  { %1850 = vmatpush1.bf16.msra.mxu1 %v3281_v21  ;;  %v3332_v21 = vld [vmem:[%s4588_s1 + $0x5c8] ss:$16 sps:$4 sm:$0xff]  }
  0xbc   :  { %1768 = vmatpush1.bf16.msra.mxu0 %v3278_v20  ;;  %1851 = vmatprep.subr.bf16.mxu1 %v3289_v24  ;;  %v3427_v20 = vld [vmem:[%s4590_s2 + $0xd4] ss:$8 sps:$4 sm:$0xff]  }
  0xbd   :  { %1769 = vmatprep.subr.bf16.mxu0 %v3286_v22  ;;  %v3425_v22 = vld [vmem:[%s4590_s2 + $0xd0] ss:$8 sps:$4 sm:$0xff]   ;;  %v3337_v24 = vld [vmem:[%s4588_s1 + $0x5ec] ss:$16 sps:$4 sm:$0xff]  }
  0xbf   :  { %1852 = vmatpush1.bf16.msra.mxu1 %v3287_v26  ;;  %v3340_v26 = vld [vmem:[%s4588_s1 + $0x60c] ss:$16 sps:$4 sm:$0xff]  }
  0xc0   :  { %1770 = vmatpush1.bf16.msra.mxu0 %v3284_v25  ;;  %1862 = vmatprep.subr.bf16.mxu1 %v3292_v27  ;;  %v3335_v25 = vld [vmem:[%s4588_s1 + $0x5e8] ss:$16 sps:$4 sm:$0xff]  }
  0xc1   :  { %v3338_v27 = vld [vmem:[%s4588_s1 + $0x608] ss:$16 sps:$4 sm:$0xff]  }
  0xc2   :  { %1854 = vmatmul.mubr.bf16.vlgmr.msra.gmra.mrb[4].mxu1 %v3749_v19  ;;  %v3388_v19 = vld [vmem:[%s4590_s2 + $0x4] ss:$8 sps:$4 sm:$0xff]  }
  0xc3   :  { %1772 = vmatmul.mubr.bf16.vlgmr.msra.gmra.mrb[0].mxu0 %v4145_v28  ;;  %1863 = vmatpush1.bf16.msra.mxu1 %v3290_v30  ;;  %v3343_v30 = vld [vmem:[%s4588_s1 + $0x62c] ss:$16 sps:$4 sm:$0xff]  }
  0xc4   :  { %1894 = vmatprep.mubr.bf16.mxu1 %v3761_v23  ;;  %1864 = vmatprep.subr.bf16.mxu1 %v3295_v31  ;;  %v3301_v23 = vld [vmem:[%s4588_s1 + $0x46c] ss:$16 sps:$4 sm:$0xff]   ;;  %v3341_v31 = vld [vmem:[%s4588_s1 + $0x628] ss:$16 sps:$4 sm:$0xff]  }
  0xc5   :  { %2344 = vmatprep.subr.bf16.mxu0 %v3388_v19  ;;  %v3350_v19 = vld [vmem:[%s4588_s1 + $0x688] ss:$16 sps:$4 sm:$0xff]  }
  0xc6   :  { %2345 = vmatpush1.bf16.msra.mxu0 %v3386_v33  ;;  %v3352_v33 = vld [vmem:[%s4588_s1 + $0x68c] ss:$16 sps:$4 sm:$0xff]  }
  0xc7   :  { %1865 = vmatpush1.bf16.msra.mxu1 %v3293_v32  ;;  %2346 = vmatprep.subr.bf16.mxu0 %v3391_v34  ;;  %v3346_v32 = vld [vmem:[%s4588_s1 + $0x64c] ss:$16 sps:$4 sm:$0xff]  }
  0xc8   :  { %1866 = vmatprep.subr.bf16.mxu1 %v3298_v13  ;;  %v3344_v13 = vld [vmem:[%s4588_s1 + $0x648] ss:$16 sps:$4 sm:$0xff]   ;;  %v3355_v34 = vld [vmem:[%s4588_s1 + $0x6ac] ss:$16 sps:$4 sm:$0xff]  }
  0xca   :  { %2347 = vmatpush1.bf16.msra.mxu0 %v3389_v3 }
  0xcb   :  { %1867 = vmatpush1.bf16.msra.mxu1 %v3296_v35  ;;  %2348 = vmatprep.subr.bf16.mxu0 %v3394_v36  ;;  %v3353_v35 = vld [vmem:[%s4588_s1 + $0x6a8] ss:$16 sps:$4 sm:$0xff]   ;;  %v3430_v36 = vld [vmem:[%s4590_s2 + $0xe4] ss:$8 sps:$4 sm:$0xff]  }
  0xcc   :  { %1868 = vmatprep.subr.bf16.mxu1 %v3301_v23  ;;  %v3358_v23 = vld [vmem:[%s4588_s1 + $0x6cc] ss:$16 sps:$4 sm:$0xff]  }
  0xce   :  { %2349 = vmatpush1.bf16.msra.mxu0 %v3392_v39 }
  0xcf   :  { %1869 = vmatpush1.bf16.msra.mxu1 %v3299_v37  ;;  %2350 = vmatprep.subr.bf16.mxu0 %v3397_v40  ;;  %v3356_v40 = vld [vmem:[%s4588_s1 + $0x6c8] ss:$16 sps:$4 sm:$0xff]  }
  0xd0   :  { %1870 = vmatprep.subr.bf16.mxu1 %v3304_v38  ;;  %v3428_v38 = vld [vmem:[%s4590_s2 + $0xe0] ss:$8 sps:$4 sm:$0xff]  }
  0xd2   :  { %2351 = vmatpush1.bf16.msra.mxu0 %v3395_v43  ;;  %v3433_v43 = vld [vmem:[%s4590_s2 + $0xf4] ss:$8 sps:$4 sm:$0xff]  }
  0xd3   :  { %1871 = vmatpush1.bf16.msra.mxu1 %v3302_v41  ;;  %2352 = vmatprep.subr.bf16.mxu0 %v3400_v44  ;;  %v3431_v44 = vld [vmem:[%s4590_s2 + $0xf0] ss:$8 sps:$4 sm:$0xff]  }
  0xd4   :  { %1872 = vmatprep.subr.bf16.mxu1 %v3307_v42  ;;  %v3361_v42 = vld [vmem:[%s4588_s1 + $0x6ec] ss:$16 sps:$4 sm:$0xff]  }
  0xd6   :  { %2353 = vmatpush1.bf16.msra.mxu0 %v3398_v47  ;;  %v3362_v47 = vld [vmem:[%s4588_s1 + $0x708] ss:$16 sps:$4 sm:$0xff]  }
  0xd7   :  { %1873 = vmatpush1.bf16.msra.mxu1 %v3305_v45  ;;  %2354 = vmatprep.subr.bf16.mxu0 %v3403_v48  ;;  %v3359_v45 = vld [vmem:[%s4588_s1 + $0x6e8] ss:$16 sps:$4 sm:$0xff]   ;;  %v3436_v48 = vld [vmem:[%s4590_s2 + $0x104] ss:$8 sps:$4 sm:$0xff]  }
  0xd8   :  { %1874 = vmatprep.subr.bf16.mxu1 %v3310_v46  ;;  %v3364_v46 = vld [vmem:[%s4588_s1 + $0x70c] ss:$16 sps:$4 sm:$0xff]  }
  0xda   :  { %2355 = vmatpush1.bf16.msra.mxu0 %v3401_v50  ;;  %v3365_v50 = vld [vmem:[%s4588_s1 + $0x728] ss:$16 sps:$4 sm:$0xff]  }
  0xdb   :  { %1875 = vmatpush1.bf16.msra.mxu1 %v3308_v49  ;;  %2356 = vmatprep.subr.bf16.mxu0 %v3406_v52  ;;  %v3367_v49 = vld [vmem:[%s4588_s1 + $0x72c] ss:$16 sps:$4 sm:$0xff]   ;;  %v3368_v52 = vld [vmem:[%s4588_s1 + $0x748] ss:$16 sps:$4 sm:$0xff]  }
  0xdc   :  { %1876 = vmatprep.subr.bf16.mxu1 %v3313_v51  ;;  %v3370_v51 = vld [vmem:[%s4588_s1 + $0x74c] ss:$16 sps:$4 sm:$0xff]  }
  0xde   :  { %2357 = vmatpush1.bf16.msra.mxu0 %v3404_v54  ;;  %v3371_v54 = vld [vmem:[%s4588_s1 + $0x768] ss:$16 sps:$4 sm:$0xff]  }
  0xdf   :  { %1877 = vmatpush1.bf16.msra.mxu1 %v3311_v53  ;;  %2358 = vmatprep.subr.bf16.mxu0 %v3409_v56  ;;  %v3373_v53 = vld [vmem:[%s4588_s1 + $0x76c] ss:$16 sps:$4 sm:$0xff]   ;;  %v3374_v56 = vld [vmem:[%s4588_s1 + $0x788] ss:$16 sps:$4 sm:$0xff]  }
  0xe0   :  { %1878 = vmatprep.subr.bf16.mxu1 %v3316_v55  ;;  %v3376_v55 = vld [vmem:[%s4588_s1 + $0x78c] ss:$16 sps:$4 sm:$0xff]  }
  0xe2   :  { %2359 = vmatpush1.bf16.msra.mxu0 %v3407_v58  ;;  %v3377_v58 = vld [vmem:[%s4588_s1 + $0x7a8] ss:$16 sps:$4 sm:$0xff]  }
  0xe3   :  { %1879 = vmatpush1.bf16.msra.mxu1 %v3314_v57  ;;  %2360 = vmatprep.subr.bf16.mxu0 %v3412_v60  ;;  %v3379_v57 = vld [vmem:[%s4588_s1 + $0x7ac] ss:$16 sps:$4 sm:$0xff]   ;;  %v3380_v60 = vld [vmem:[%s4588_s1 + $0x7c8] ss:$16 sps:$4 sm:$0xff]  }
  0xe4   :  { %1880 = vmatprep.subr.bf16.mxu1 %v3319_v59  ;;  %v3382_v59 = vld [vmem:[%s4588_s1 + $0x7cc] ss:$16 sps:$4 sm:$0xff]  }
  0xe6   :  { %2361 = vmatpush1.bf16.msra.mxu0 %v3410_v62  ;;  %v3383_v62 = vld [vmem:[%s4588_s1 + $0x7e8] ss:$16 sps:$4 sm:$0xff]  }
  0xe7   :  { %1881 = vmatpush1.bf16.msra.mxu1 %v3317_v61  ;;  %2362 = vmatprep.subr.bf16.mxu0 %v3415_v1  ;;  %v3385_v61 = vld [vmem:[%s4588_s1 + $0x7ec] ss:$16 sps:$4 sm:$0xff]  }
  0xe8   :  { %1882 = vmatprep.subr.bf16.mxu1 %v3322_v0 }
  0xea   :  { %2363 = vmatpush1.bf16.msra.mxu0 %v3413_v4 }
  0xeb   :  { %1883 = vmatpush1.bf16.msra.mxu1 %v3320_v2  ;;  %2364 = vmatprep.subr.bf16.mxu0 %v3418_v6 }
  0xec   :  { %1884 = vmatprep.subr.bf16.mxu1 %v3325_v5 }
  0xee   :  { %2365 = vmatpush1.bf16.msra.mxu0 %v3416_v8 }
  0xef   :  { %1885 = vmatpush1.bf16.msra.mxu1 %v3323_v7  ;;  %2366 = vmatprep.subr.bf16.mxu0 %v3421_v10 }
  0xf0   :  { %1886 = vmatprep.subr.bf16.mxu1 %v3328_v9 }
  0xf2   :  { %2367 = vmatpush1.bf16.msra.mxu0 %v3419_v12  ;;  %v3434_v12 = vld [vmem:[%s4590_s2 + $0x100] ss:$8 sps:$4 sm:$0xff]  }
  0xf3   :  { %1887 = vmatpush1.bf16.msra.mxu1 %v3326_v11  ;;  %2368 = vmatprep.subr.bf16.mxu0 %v3424_v15  ;;  %v3437_v15 = vld [vmem:[%s4590_s2 + $0x110] ss:$8 sps:$4 sm:$0xff]  }
  0xf4   :  { %1888 = vmatprep.subr.bf16.mxu1 %v3331_v14 }
  0xf6   :  { %2369 = vmatpush1.bf16.msra.mxu0 %v3422_v17  ;;  %v3442_v17 = vld [vmem:[%s4590_s2 + $0x124] ss:$8 sps:$4 sm:$0xff]  }
  0xf7   :  { %1889 = vmatpush1.bf16.msra.mxu1 %v3329_v16  ;;  %2370 = vmatprep.subr.bf16.mxu0 %v3427_v20  ;;  %v3482_v16 = vld [vmem:[%s4591_s3 + $0x40] sm:$0xff]   ;;  %v3484_v20 = vld [vmem:[%s4591_s3 + $0x48] sm:$0xff]  }
  0xf8   :  { %1890 = vmatprep.subr.bf16.mxu1 %v3334_v18  ;;  %v3483_v18 = vld [vmem:[%s4591_s3] sm:$0xff]  }
  0xfa   :  { %2371 = vmatpush1.bf16.msra.mxu0 %v3425_v22  ;;  %v3486_v22 = vld [vmem:[%s4591_s3 + $0x50] sm:$0xff]  }
  0xfb   :  { %1891 = vmatpush1.bf16.msra.mxu1 %v3332_v21  ;;  %2372 = vmatprep.subr.bf16.mxu0 %v3430_v36  ;;  %v3485_v21 = vld [vmem:[%s4591_s3 + $0x8] sm:$0xff]   ;;  %v3457_v36 = vld [vmem:[%s4590_s2 + $0x174] ss:$8 sps:$4 sm:$0xff]  }
  0xfc   :  { %1892 = vmatprep.subr.bf16.mxu1 %v3337_v24  ;;  %v3440_v24 = vld [vmem:[%s4590_s2 + $0x120] ss:$8 sps:$4 sm:$0xff]  }
  0xfe   :  { %2373 = vmatpush1.bf16.msra.mxu0 %v3428_v38  ;;  %v3460_v38 = vld [vmem:[%s4590_s2 + $0x184] ss:$8 sps:$4 sm:$0xff]  }
  0xff   :  { %1893 = vmatpush1.bf16.msra.mxu1 %v3335_v25  ;;  %2374 = vmatprep.subr.bf16.mxu0 %v3433_v43  ;;  %v3445_v25 = vld [vmem:[%s4590_s2 + $0x134] ss:$8 sps:$4 sm:$0xff]   ;;  %v3464_v43 = vld [vmem:[%s4590_s2 + $0x1a0] ss:$8 sps:$4 sm:$0xff]  }
 0x100   :  { %1903 = vmatprep.subr.bf16.mxu1 %v3340_v26  ;;  %v3487_v26 = vld [vmem:[%s4591_s3 + $0x10] sm:$0xff]  }
 0x102   :  { %1895 = vmatmul.mubr.bf16.vlgmr.msra.gmra.mrb[4].mxu1 %v3691_v63  ;;  %v3349_v63 = vld [vmem:[%s4588_s1 + $0x66c] ss:$16 sps:$4 sm:$0xff]   ;;  %2375 = vmatpush1.bf16.msra.mxu0 %v3431_v44 }
 0x103   :  { %1904 = vmatpush1.bf16.msra.mxu1 %v3338_v27  ;;  %1935 = vmatprep.mubr.bf16.mxu1 %v3960_v29  ;;  %v3347_v29 = vld [vmem:[%s4588_s1 + $0x668] ss:$16 sps:$4 sm:$0xff]   ;;  %v3469_v44 = vld [vmem:[%s4590_s2 + $0x1b4] ss:$8 sps:$4 sm:$0xff]  }
 0x104   :  { %1905 = vmatprep.subr.bf16.mxu1 %v3343_v30  ;;  %2385 = vmatprep.subr.bf16.mxu0 %v3436_v48  ;;  %v3443_v27 = vld [vmem:[%s4590_s2 + $0x130] ss:$8 sps:$4 sm:$0xff]   ;;  %v3475_v48 = vld [vmem:[%s4590_s2 + $0x1d4] ss:$8 sps:$4 sm:$0xff]  }
 0x105   :  { %v3488_v30 = vld [vmem:[%s4591_s3 + $0x58] sm:$0xff]  }
 0x107   :  { %1906 = vmatpush1.bf16.msra.mxu1 %v3341_v31  ;;  %v3448_v31 = vld [vmem:[%s4590_s2 + $0x144] ss:$8 sps:$4 sm:$0xff]  }
 0x108   :  { %1907 = vmatprep.subr.bf16.mxu1 %v3346_v32  ;;  %v3489_v32 = vld [vmem:[%s4591_s3 + $0x18] sm:$0xff]  }
 0x10b   :  { %1908 = vmatpush1.bf16.msra.mxu1 %v3344_v13  ;;  %v3490_v13 = vld [vmem:[%s4591_s3 + $0x60] sm:$0xff]  }
 0x10c   :  { %1909 = vmatprep.subr.bf16.mxu1 %v3349_v63  ;;  %v3446_v63 = vld [vmem:[%s4590_s2 + $0x140] ss:$8 sps:$4 sm:$0xff]  }
 0x10f   :  { %1910 = vmatpush1.bf16.msra.mxu1 %v3347_v29  ;;  %v3451_v29 = vld [vmem:[%s4590_s2 + $0x154] ss:$8 sps:$4 sm:$0xff]  }
 0x110   :  { %1911 = vmatprep.subr.bf16.mxu1 %v3352_v33  ;;  %v3491_v33 = vld [vmem:[%s4591_s3 + $0x20] sm:$0xff]  }
 0x113   :  { %1912 = vmatpush1.bf16.msra.mxu1 %v3350_v19  ;;  %v3492_v19 = vld [vmem:[%s4591_s3 + $0x68] sm:$0xff]  }
 0x114   :  { %1913 = vmatprep.subr.bf16.mxu1 %v3355_v34  ;;  %v3449_v34 = vld [vmem:[%s4590_s2 + $0x150] ss:$8 sps:$4 sm:$0xff]  }
 0x115   :  { %v1650_v3 = vpop.f32.mrb[0].mxu1 }
 0x116   :  { %v1652_v37 = vpop.f32.mrb[1].mxu1 }
 0x117   :  { %v1654_v39 = vpop.f32.mrb[2].mxu1  ;;  %1914 = vmatpush1.bf16.msra.mxu1 %v3353_v35  ;;  %v3454_v35 = vld [vmem:[%s4590_s2 + $0x164] ss:$8 sps:$4 sm:$0xff]  }
 0x118   :  { %v1655_v41 = vpop.f32.mrb[3].mxu1  ;;  %1915 = vmatprep.subr.bf16.mxu1 %v3358_v23  ;;  %v3493_v23 = vld [vmem:[%s4591_s3 + $0x28] sm:$0xff]  }
 0x119   :  { %v3458_v39 = vld [vmem:[%s4590_s2 + $0x180] ss:$8 sps:$4 sm:$0xff]   ;;  %v3461_v41 = vld [vmem:[%s4590_s2 + $0x190] ss:$8 sps:$4 sm:$0xff]  }
 0x11b   :  { %1916 = vmatpush1.bf16.msra.mxu1 %v3356_v40  ;;  %v3463_v40 = vld [vmem:[%s4590_s2 + $0x194] ss:$8 sps:$4 sm:$0xff]  }
 0x11c   :  { %1917 = vmatprep.subr.bf16.mxu1 %v3361_v42  ;;  %v3466_v42 = vld [vmem:[%s4590_s2 + $0x1a4] ss:$8 sps:$4 sm:$0xff]  }
 0x11f   :  { %1918 = vmatpush1.bf16.msra.mxu1 %v3359_v45  ;;  %v3467_v45 = vld [vmem:[%s4590_s2 + $0x1b0] ss:$8 sps:$4 sm:$0xff]  }
 0x120   :  { %1919 = vmatprep.subr.bf16.mxu1 %v3364_v46  ;;  %v3472_v46 = vld [vmem:[%s4590_s2 + $0x1c4] ss:$8 sps:$4 sm:$0xff]  }
 0x123   :  { %1920 = vmatpush1.bf16.msra.mxu1 %v3362_v47  ;;  %v3470_v47 = vld [vmem:[%s4590_s2 + $0x1c0] ss:$8 sps:$4 sm:$0xff]  }
 0x124   :  { %1921 = vmatprep.subr.bf16.mxu1 %v3367_v49  ;;  %v3473_v49 = vld [vmem:[%s4590_s2 + $0x1d0] ss:$8 sps:$4 sm:$0xff]  }
 0x127   :  { %1922 = vmatpush1.bf16.msra.mxu1 %v3365_v50  ;;  %v3478_v50 = vld [vmem:[%s4590_s2 + $0x1e4] ss:$8 sps:$4 sm:$0xff]  }
 0x128   :  { %1923 = vmatprep.subr.bf16.mxu1 %v3370_v51  ;;  %v3476_v51 = vld [vmem:[%s4590_s2 + $0x1e0] ss:$8 sps:$4 sm:$0xff]  }
 0x12b   :  { %1924 = vmatpush1.bf16.msra.mxu1 %v3368_v52  ;;  %v3481_v52 = vld [vmem:[%s4590_s2 + $0x1f4] ss:$8 sps:$4 sm:$0xff]  }
 0x12c   :  { %1925 = vmatprep.subr.bf16.mxu1 %v3373_v53  ;;  %v3479_v53 = vld [vmem:[%s4590_s2 + $0x1f0] ss:$8 sps:$4 sm:$0xff]  }
 0x12f   :  { %1926 = vmatpush1.bf16.msra.mxu1 %v3371_v54 }
 0x130   :  { %1927 = vmatprep.subr.bf16.mxu1 %v3376_v55 }
 0x133   :  { %1928 = vmatpush1.bf16.msra.mxu1 %v3374_v56 }
 0x134   :  { %1929 = vmatprep.subr.bf16.mxu1 %v3379_v57 }
 0x137   :  { %1930 = vmatpush1.bf16.msra.mxu1 %v3377_v58 }
 0x138   :  { %1931 = vmatprep.subr.bf16.mxu1 %v3382_v59 }
 0x13b   :  { %1932 = vmatpush1.bf16.msra.mxu1 %v3380_v60 }
 0x13c   :  { %1933 = vmatprep.subr.bf16.mxu1 %v3385_v61 }
 0x13f   :  { %1934 = vmatpush1.bf16.msra.mxu1 %v3383_v62 }
 0x140   :  { %2952 = vmatprep.subr.bf16.mxu1 %v3482_v16 }
 0x142   :  { %1936 = vmatmul.mubr.bf16.vlgmr.msra.gmra.mrb[4].mxu1 %v4145_v28  ;;  %v3439_v28 = vld [vmem:[%s4590_s2 + $0x114] ss:$8 sps:$4 sm:$0xff]  }
 0x143   :  { %2953 = vmatpush3.bf16.msra.mxu1 %v3483_v18 }
 0x144   :  { %2954 = vmatprep.subr.bf16.mxu1 %v3484_v20 }
 0x147   :  { %2955 = vmatpush3.bf16.msra.mxu1 %v3485_v21 }
 0x148   :  { %2956 = vmatprep.subr.bf16.mxu1 %v3486_v22 }
 0x14b   :  { %2957 = vmatpush3.bf16.msra.mxu1 %v3487_v26 }
 0x14c   :  { %2958 = vmatprep.subr.bf16.mxu1 %v3488_v30 }
 0x14f   :  { %2959 = vmatpush3.bf16.msra.mxu1 %v3489_v32 }
 0x150   :  { %2960 = vmatprep.subr.bf16.mxu1 %v3490_v13 }
 0x153   :  { %2961 = vmatpush3.bf16.msra.mxu1 %v3491_v33 }
 0x154   :  { %2962 = vmatprep.subr.bf16.mxu1 %v3492_v19 }
 0x157   :  { %2963 = vmatpush3.bf16.msra.mxu1 %v3493_v23 }
 0x196   :  { %v1773_v0 = vpop.f32.mrb[0].mxu0 }
 0x197   :  { %v2974_v1 = vadd.f32 %v1773_v0, %v1650_v3  ;;  %v1775_v2 = vpop.f32.mrb[1].mxu0  ;;  %v3452_v3 = vld [vmem:[%s4590_s2 + $0x160] ss:$8 sps:$4 sm:$0xff]  }
 0x198   :  { %v2975_v4 = vadd.f32 %v1775_v2, %v1652_v37  ;;  %v1777_v5 = vpop.f32.mrb[2].mxu0  ;;  %v3455_v37 = vld [vmem:[%s4590_s2 + $0x170] ss:$8 sps:$4 sm:$0xff]  }
 0x199   :  { %vm1944_vm0 = vcmp.ge.f32.partialorder %v2974_v1, 0.0  ;;  %v1948_v6 = vmul.f32 0.2, %v2974_v1  ;;  %v1778_v7 = vpop.f32.mrb[3].mxu0  ;;  %v3495_v2 = vld [vmem:[%s4591_s3 + $0x30] sm:$0xff]   ;;  %v3497_v5 = vld [vmem:[%s4591_s3 + $0x38] sm:$0xff]  }
 0x19a   :  { %vm1945_vm1 = vcmp.ge.f32.partialorder %v2975_v4, 0.0  ;;  %v1949_v8 = vmul.f32 0.2, %v2975_v4 }
 0x19b   :  { %v1952_v9 = vsel %vm1944_vm0, %v2974_v1, %v1948_v6  ;;  %v3494_v1 = vld [vmem:[%s4591_s3 + $0x70] sm:$0xff]  }
 0x19c   :  { %v1953_v10 = vsel %vm1945_vm1, %v2975_v4, %v1949_v8  ;;  %v1956_v14 = vpack.c.bf16 %v1952_v9, %v1952_v9  ;;  %2964 = vmatprep.subr.bf16.mxu1 %v3494_v1  ;;  %v3496_v4 = vld [vmem:[%s4591_s3 + $0x78] sm:$0xff]  }
 0x19d   :  { %v1957_v11 = vpack.c.bf16 %v1953_v10, %v1953_v10  ;;  %2965 = vmatpush3.bf16.msra.mxu1 %v3495_v2 }
 0x19e   :  { %2966 = vmatprep.subr.bf16.mxu1 %v3496_v4 }
 0x19f   :  { %2376 = vmatprep.mubr.bf16.mxu0 %v1957_v11 }
 0x1a0   :  { %2377 = vmatmul.mubr.bf16.vlgmr.msra.gmra.mrb[4].mxu0 %v1956_v14 }
 0x1a1   :  { %2386 = vmatpush1.bf16.msra.mxu0 %v3434_v12  ;;  %2967 = vmatpush3.bf16.msra.mxu1 %v3497_v5 }
 0x1a2   :  { %2387 = vmatprep.subr.bf16.mxu0 %v3439_v28 }
 0x1a5   :  { %2388 = vmatpush1.bf16.msra.mxu0 %v3437_v15 }
 0x1a6   :  { %2389 = vmatprep.subr.bf16.mxu0 %v3442_v17  ;;  %v2935_v17 = vld [vmem:[%s4592_s4] ss:$0 sm:$0xff] }
 0x1a9   :  { %2390 = vmatpush1.bf16.msra.mxu0 %v3440_v24 }
 0x1aa   :  { %2391 = vmatprep.subr.bf16.mxu0 %v3445_v25 }
 0x1ad   :  { %2392 = vmatpush1.bf16.msra.mxu0 %v3443_v27 }
 0x1ae   :  { %2393 = vmatprep.subr.bf16.mxu0 %v3448_v31 }
 0x1b1   :  { %2394 = vmatpush1.bf16.msra.mxu0 %v3446_v63 }
 0x1b2   :  { %2395 = vmatprep.subr.bf16.mxu0 %v3451_v29 }
 0x1b5   :  { %2396 = vmatpush1.bf16.msra.mxu0 %v3449_v34 }
 0x1b6   :  { %2397 = vmatprep.subr.bf16.mxu0 %v3454_v35 }
 0x1b9   :  { %2398 = vmatpush1.bf16.msra.mxu0 %v3452_v3 }
 0x1ba   :  { %2399 = vmatprep.subr.bf16.mxu0 %v3457_v36 }
 0x1bd   :  { %2400 = vmatpush1.bf16.msra.mxu0 %v3455_v37 }
 0x1be   :  { %2401 = vmatprep.subr.bf16.mxu0 %v3460_v38 }
 0x1c1   :  { %2402 = vmatpush1.bf16.msra.mxu0 %v3458_v39 }
 0x1c2   :  { %2403 = vmatprep.subr.bf16.mxu0 %v3463_v40 }
 0x1c5   :  { %2404 = vmatpush1.bf16.msra.mxu0 %v3461_v41 }
 0x1c6   :  { %2405 = vmatprep.subr.bf16.mxu0 %v3466_v42 }
 0x1c9   :  { %2406 = vmatpush1.bf16.msra.mxu0 %v3464_v43 }
 0x1ca   :  { %2407 = vmatprep.subr.bf16.mxu0 %v3469_v44 }
 0x1cd   :  { %2408 = vmatpush1.bf16.msra.mxu0 %v3467_v45 }
 0x1ce   :  { %2409 = vmatprep.subr.bf16.mxu0 %v3472_v46 }
 0x1d1   :  { %2410 = vmatpush1.bf16.msra.mxu0 %v3470_v47 }
 0x1d2   :  { %2411 = vmatprep.subr.bf16.mxu0 %v3475_v48 }
 0x1d5   :  { %2412 = vmatpush1.bf16.msra.mxu0 %v3473_v49 }
 0x1d6   :  { %2413 = vmatprep.subr.bf16.mxu0 %v3478_v50 }
 0x1d9   :  { %2414 = vmatpush1.bf16.msra.mxu0 %v3476_v51 }
 0x1da   :  { %2415 = vmatprep.subr.bf16.mxu0 %v3481_v52 }
 0x1dd   :  { %2416 = vmatpush1.bf16.msra.mxu0 %v3479_v53 }
 0x215   :  { %v1937_v54 = vpop.f32.mrb[4].mxu1 }
 0x216   :  { %vm1946_vm2 = vcmp.ge.f32.partialorder %v1937_v54, 0.0  ;;  %v1950_v55 = vmul.f32 0.2, %v1937_v54  ;;  %v1939_v56 = vpop.f32.mrb[5].mxu1 }
 0x217   :  { %vm1947_vm3 = vcmp.ge.f32.partialorder %v1939_v56, 0.0  ;;  %v1951_v57 = vmul.f32 0.2, %v1939_v56  ;;  %v1941_v58 = vpop.f32.mrb[6].mxu1 }
 0x218   :  { %v1954_v59 = vsel %vm1946_vm2, %v1937_v54, %v1950_v55  ;;  %v1942_v60 = vpop.f32.mrb[7].mxu1 }
 0x219   :  { %v1955_v61 = vsel %vm1947_vm3, %v1939_v56, %v1951_v57  ;;  %v1958_v0 = vpack.c.bf16 %v1954_v59, %v1954_v59 }
 0x21a   :  { %v1959_v62 = vpack.c.bf16 %v1955_v61, %v1955_v61 }
 0x21c   :  { %2417 = vmatprep.mubr.bf16.mxu0 %v1959_v62 }
 0x21d   :  { %2418 = vmatmul.mubr.bf16.vlgmr.msra.gmra.mrb[4].mxu0 %v1958_v0 }
 0x2f0   :  { %v2419_v6 = vpop.f32.mrb[4].mxu0 }
 0x2f1   :  { %vm2426_vm4 = vcmp.ge.f32.partialorder %v2419_v6, 0.0  ;;  %v2428_v7 = vmul.f32 0.2, %v2419_v6  ;;  %v2421_v8 = vpop.f32.mrb[5].mxu0 }
 0x2f2   :  { %vm2427_vm5 = vcmp.ge.f32.partialorder %v2421_v8, 0.0  ;;  %v2429_v9 = vmul.f32 0.2, %v2421_v8  ;;  %v2423_v10 = vpop.f32.mrb[6].mxu0 }
 0x2f3   :  { %v2430_v11 = vsel %vm2426_vm4, %v2419_v6, %v2428_v7  ;;  %v2424_v12 = vpop.f32.mrb[7].mxu0 }
 0x2f4   :  { %v2431_v14 = vsel %vm2427_vm5, %v2421_v8, %v2429_v9  ;;  %v2432_v15 = vpack.c.bf16 %v2430_v11, %v2430_v11 }
 0x2f5   :  { %v2433_v28 = vpack.c.bf16 %v2431_v14, %v2431_v14 }
 0x2f7   :  { %2601 = vmatprep.mubr.bf16.mxu1 %v2433_v28 }
 0x2f8   :  { %2602 = vmatmul.mubr.bf16.vlgmr.msra.gmra.mrb[8].mxu1 %v2432_v15 }
 0x3cb   :  { %v2968_v16 = vpop.f32.mrb[8].mxu1 }
 0x3cc   :  { %v2969_v18 = vpop.f32.mrb[9].mxu1 }
 0x3cd   :  { %v2970_v20 = vadd.f32 %v2969_v18, %v2968_v16  ;;  %v2971_v21 = vpop.f32.mrb[10].mxu1 }
 0x3ce   :  { %v2972_v22 = vpop.f32.mrb[11].mxu1 }
 0x3cf   :  { %v2604_v24 = vadd.f32 %v2970_v20, %v2935_v17 }
 0x3d1   :  { %2610 = vst.msk [vmem:[%s4593_s5] sm:$0x3] %vm2609_vm6, %v2604_v24 }

// kernel: _lambda_.16
= control target key start
LH: loop header
LB: loop body
LE: loop exit
PB: predicated region body
PF: predicated region fallthrough
CT: control target
= control target key end

     0   :  { %s786_s15 = smov 0   ;;  %s788_s16 = smov 0   ;;  %s906_s0 = inlined_call_operand.vmem [shape: bf16[2,4,16,32], index: 0, kind: input, shape index: {}]   ;;  %s907_s1 = inlined_call_operand.vmem [shape: bf16[2,16,32], index: 1, kind: input, shape index: {}]   ;;  %s908_s2 = inlined_call_operand.vmem [shape: bf16[32,32], index: 2, kind: input, shape index: {}]   ;;  %s909_s3 = inlined_call_operand.vmem [shape: bf16[32,32], index: 3, kind: input, shape index: {}]   ;;  %s910_s4 = inlined_call_operand.vmem [shape: bf16[2,16,32], index: 4, kind: output, shape index: {}]  }
   0x1   :  { %s790_s17 = smov 0   ;;  %s792_s18 = smov 0  }
   0x2   :  { %s794_s19 = smov 0   ;;  %s796_s20 = smov 0  }
   0x3   :  { %s798_s21 = smov 0  }
   0x4 LB: > { %s23_s22 = sadd.s32 1, %s749_s19  ;;  %s26_s23 = sadd.s32 1, %s753_s20  ;;  %s757_s21 = sphi %s798_s21, %s14_s21   ;;  %s753_s20 = sphi %s796_s20, %s916_s20   ;;  %s749_s19 = sphi %s794_s19, %s915_s19   ;;  %s745_s18 = sphi %s792_s18, %s914_s18   ;;  %s741_s17 = sphi %s790_s17, %s913_s17   ;;  %s737_s16 = sphi %s788_s16, %s912_s16   ;;  %s733_s15 = sphi %s786_s15, %s911_s15  }
   0x5   : > { %p24_p0 = scmp.ge.s32.totalorder %s23_s22, 2  ;;  %p42_p1 = scmp.ne.s32.totalorder %s737_s16, %s733_s15 }
   0x6   : > { %p43_p2 = scmp.eq.s32.totalorder %s757_s21, 0  ;;  %s35_s27 = sadd.s32 1, %s737_s16 }
   0x7   : > { %s918_s22 = smov (%p24_p0, %s23_s22), 0  ;;  %s920_s23 = smov (!%p24_p0, %s26_s23), %s753_s20 }
   0x8   : > { %p44_p3 = por %p43_p2, %p42_p1  ;;  %p28_p4 = scmp.ge.s32.totalorder %s920_s23, 2 }
   0x9   : > { %s31_s24 = ssub.s32 %s749_s19, %s918_s22  ;;  %p595_p6 = scmp.ge.s32.totalorder %s757_s21, 4 }
   0xa   : > { %s922_s23 = smov (%p28_p4, %s920_s23), 0 }
   0xb   : > { %s30_s25 = ssub.s32 %s753_s20, %s922_s23  ;;  %172 = sbr.rel (%p595_p6) target bundleno = 26 (0x1a), region = 24 }
   0xc   : > { %s32_s26 = sor.u32 %s31_s24, %s30_s25 }
   0xd   : > { %p33_p5 = scmp.eq.s32.totalorder %s32_s26, 0 }
   0xf   : > { %s837_s28 = scalar_select %p33_p5, %s737_s16, %s35_s27  }
  0x12   : > { %175 = sbr.rel (!%p44_p3) target bundleno = 26 (0x1a), region = 28  ;;  %s177_s29 = sand.u32 (%p44_p3), 1, %s737_s16  }
  0x13   : > { %s597_s30 = sshll.u32 (%p44_p3), %s753_s20, 3  ;;  %s596_s5 = sshll.u32 (%p44_p3), %s177_s29, 4 }
  0x14   : > { %s181_s6 = sadd.s32 (%p44_p3), %s749_s19, %s597_s30  ;;  %s179_s11 = scalar_lea.vmem (%p44_p3), [#allocation3], %s596_s5 }
  0x15   : > { %s598_s7 = sshll.u32 (%p44_p3), %s181_s6, 2 }
  0x16   : > { %s183_s10 = scalar_lea.vmem (%p44_p3), %s906_s0, %s598_s7 }
  0x17   : > { %v199_v0 = vld [vmem:[%s183_s10] sm:$0xf] (%p44_p3)  ;;  %v201_v1 = vld [vmem:[%s183_s10 + $0x8] sm:$0xf] (%p44_p3)  ;;  %v203_v2 = vld [vmem:[%s183_s10 + $0x10] sm:$0xf] (%p44_p3) }
  0x18   : > { %200 = vst [vmem:[%s179_s11] sm:$0xf] (%p44_p3), %v199_v0  ;;  %202 = vst [vmem:[%s179_s11 + $0x4] sm:$0xf] (%p44_p3), %v201_v1  ;;  %v205_v3 = vld [vmem:[%s183_s10 + $0x18] sm:$0xf] (%p44_p3) }
  0x19   : > { %204 = vst [vmem:[%s179_s11 + $0x8] sm:$0xf] %v203_v2  ;;  %206 = vst [vmem:[%s179_s11 + $0xc] sm:$0xf] %v205_v3 }
  0x1a PF: > { %p599_p7 = scmp.ge.s32.totalorder %s757_s21, 1  ;;  %p247_p8 = scmp.lt.s32.totalorder %s757_s21, 5 }
  0x1c   : > { %p248_p9 = pnand %p599_p7, %p247_p8 }
  0x1d   : > { %v697_v4 = vld [vmem:[%s908_s2] sm:$0xff] (!%p248_p9)   ;;  %s254_s14 = sand.u32 (!%p248_p9), 1, %s733_s15   ;;  %v698_v5 = vld [vmem:[%s908_s2 + $0x8] sm:$0xff] (!%p248_p9)   ;;  %vm337_vm0 = vcmask (!%p248_p9), 261120   ;;  %v759_v8 = vmov (!%p248_p9), 0.0   ;;  %p290_p10 = scmp.lt.s32.totalorder (!%p248_p9), %s745_s18, 1 }
  0x1e   : > { %251 = sbr.rel (%p248_p9) target bundleno = 275 (0x113), region = 73  ;;  %s600_s26 = sshll.u32 (!%p248_p9), %s254_s14, 4  ;;  %623 = vmatprep.subr.bf16.mxu0 (!%p248_p9), %v697_v4  ;;  %v701_v6 = vld [vmem:[%s909_s3] sm:$0xff] (!%p248_p9)   ;;  %631 = vmatprep.subr.bf16.mxu1 (!%p248_p9), %v759_v8  ;;  %v702_v10 = vld [vmem:[%s909_s3 + $0x8] sm:$0xff] (!%p248_p9)   ;;  %vm760_vm1 = vmmov (!%p248_p9), 0   ;;  %vm484_vm6 = vcmask (!%p248_p9), 257024  }
  0x1f   : > { %624 = vmatpush3.bf16.msra.mxu0 (!%p248_p9), %v697_v4  ;;  %s256_s30 = scalar_lea.vmem (!%p248_p9), [#allocation3], %s600_s26  ;;  %632 = vmatpush3.bf16.msra.mxu1 (!%p248_p9), %v701_v6  ;;  %p292_p11 = scmp.lt.s32.totalorder (!%p248_p9), %s741_s17, 1 }
  0x20   : > { %v699_v7 = vld [vmem:[%s256_s30] sm:$0xff] (!%p248_p9)   ;;  %625 = vmatprep.subr.bf16.mxu0 (!%p248_p9), %v698_v5  ;;  %633 = vmatprep.subr.bf16.mxu1 (!%p248_p9), %v759_v8  ;;  %v700_v9 = vld [vmem:[%s256_s30 + $0x8] sm:$0xff] (!%p248_p9)  }
  0x21   : > { %627 = vmatprep.mubr.msk.bf16.mxu0 (!%p248_p9), %vm337_vm0, %v699_v7  ;;  %635 = vmatprep.mubr.msk.bf16.mxu1 (!%p248_p9), %vm760_vm1, %v759_v8 }
  0x23   : > { %626 = vmatpush3.bf16.msra.mxu0 (!%p248_p9), %v698_v5  ;;  %634 = vmatpush3.bf16.msra.mxu1 (!%p248_p9), %v702_v10 }
  0x25   : > { %s924_s18 = smov (!%p290_p10, %s745_s18), 1  ;;  %s926_s17 = smov (!%p292_p11, %s741_s17), 1 }
  0x26   : > { %s601_s6 = sshll.u32 %s924_s18, 1  ;;  %628 = vmatmul.mubr.msk.bf16.vlgmr.msra.gmra.mrb[0].mxu0 %vm337_vm0, %v700_v9 }
  0x27   : > { %s867_s7 = sadd.s32 %s601_s6, %s926_s17 }
  0x28   : > { %s602_s8 = sshll.u32 %s867_s7, 2 }
  0x29   : > { %s297_s11 = scalar_lea.vmem %s907_s1, %s602_s8  ;;  %s305_s12 = scalar_lea.vmem %s910_s4, %s602_s8 }
  0x2a   : > { %v397_v11 = vld [vmem:[%s297_s11] sm:$0xf] }
  0x2b   : > { %636 = vmatmul.mubr.msk.bf16.vlgmr.msra.gmra.mrb[0].mxu1 %vm337_vm0, %v397_v11 }
  0xf9   : > { %v629_v12 = vpop.f32.mrb[0].mxu0 }
  0xfa   : > { %395 = vst.msk [vmem:[#allocation2 + $0x10] sm:$0xff] %vm337_vm0, %v629_v12  ;;  %v378_v13 = vpop.f32.mrb[1].mxu0 }
  0xfb   : > { %393 = vst.msk [vmem:[#allocation2] sm:$0xff] %vm337_vm0, %v378_v13  ;;  %v630_v14 = vpop.f32.mrb[2].mxu0 }
  0xfc   : > { %396 = vst.msk [vmem:[#allocation2 + $0x18] sm:$0xff] %vm337_vm0, %v630_v14  ;;  %v381_v15 = vpop.f32.mrb[3].mxu0 }
  0xfd   : > { %394 = vst.msk [vmem:[#allocation2 + $0x8] sm:$0xff] %vm337_vm0, %v381_v15 }
  0xfe   : > { %v451_v16 = vpop.f32.mrb[0].mxu1 }
  0xff   : > { %v637_v17 = vpop.f32.mrb[1].mxu1 }
 0x100   : > { %v454_v18 = vpop.f32.mrb[2].mxu1 }
 0x101   : > { %v470_v19 = vld [vmem:[#allocation2 + $0x10] sm:$0xff]  ;;  %v638_v20 = vpop.f32.mrb[3].mxu1 }
 0x102   : > { %v457_v21 = vld [vmem:[#allocation2] sm:$0xff]  ;;  %v471_v23 = vadd.f32 %v470_v19, %v451_v16 }
 0x103   : > { %v458_v22 = vadd.f32 %v457_v21, %v451_v16  ;;  %v477_v24 = vld [vmem:[#allocation2 + $0x18] sm:$0xff] }
 0x104   : > { %v463_v25 = vld [vmem:[#allocation2 + $0x8] sm:$0xff]  ;;  %v478_v28 = vadd.f32 %v477_v24, %v451_v16  ;;  %v473_v30 = vmul.f32 0.01, %v471_v23  ;;  %vm472_vm4 = vcmp.ge.f32.partialorder %v471_v23, 0.0 }
 0x105   : > { %v460_v26 = vmul.f32 0.01, %v458_v22  ;;  %v464_v27 = vadd.f32 %v463_v25, %v451_v16  ;;  %vm459_vm2 = vcmp.ge.f32.partialorder %v458_v22, 0.0 }
 0x106   : > { %v480_v33 = vmul.f32 0.01, %v478_v28  ;;  %vm479_vm5 = vcmp.ge.f32.partialorder %v478_v28, 0.0  ;;  %v474_v35 = vsel %vm472_vm4, %v471_v23, %v473_v30 }
 0x107   : > { %vm465_vm3 = vcmp.ge.f32.partialorder %v464_v27, 0.0  ;;  %v466_v29 = vmul.f32 0.01, %v464_v27  ;;  %v461_v31 = vsel %vm459_vm2, %v458_v22, %v460_v26 }
 0x108   : > { %v481_v37 = vsel %vm479_vm5, %v478_v28, %v480_v33 }
 0x109   : > { %v467_v32 = vsel %vm465_vm3, %v464_v27, %v466_v29 }
 0x10a   : > { %v468_v34 = vmax.f32 %v461_v31, %v467_v32 }
 0x10c   : > { %v475_v36 = vmax.f32 %v468_v34, %v474_v35 }
 0x10e   : > { %v482_v38 = vmax.f32 %v475_v36, %v481_v37 }
 0x110   : > { %v483_v39 = vpack.c.bf16 %v482_v38, %v482_v38 }
 0x112   : > { %485 = vst.msk [vmem:[%s305_s12] sm:$0xf] %vm484_vm6, %v483_v39 }
 0x113 PF: > { %s14_s21 = sadd.s32 1, %s757_s21   ;;  %s911_s15 = smov %s737_s16 }
 0x114   : > { %p11_p12 = scmp.ge.s32.totalorder %s14_s21, 6   ;;  %s912_s16 = smov %s837_s28 }
 0x115   : > { %s913_s17 = smov %s749_s19  ;;  %s914_s18 = smov %s753_s20 }
 0x116   : > { %s915_s19 = smov %s918_s22  ;;  %s916_s20 = smov %s922_s23 }
 0x117   :  { %13 = sbr.rel (!%p11_p12) target bundleno = 4 (0x4), region = 118 }

// kernel: _lambda_.17
= control target key start
LH: loop header
LB: loop body
LE: loop exit
PB: predicated region body
PF: predicated region fallthrough
CT: control target
= control target key end

     0   :  { %7 = vsyncpa [#allocation5], 0  ;;  %s780_s0 = inlined_call_operand.vmem [shape: bf16[2,16,64], index: 0, kind: input, shape index: {}]   ;;  %s781_s1 = inlined_call_operand.vmem [shape: bf16[64,64], index: 1, kind: input, shape index: {}]   ;;  %s782_s2 = inlined_call_operand.hbm [shape: f32[2,1,128], index: 2, kind: output, shape index: {}]  }
   0x1   :  { %9 = vsyncpa [#allocation5 + $0x1], 0  ;;  %s617_s9 = smov 0   ;;  %s619_s10 = smov 0  }
   0x2   :  { %s621_s11 = smov 0   ;;  %s623_s12 = smov 0  }
   0x3   :  { %s625_s13 = smov 0   ;;  %s627_s14 = smov 0  }
   0x4   :  { %s629_s15 = smov 0   ;;  %s631_s16 = smov 0  }
   0x5 LB: > { %s387_s17 = sadd.s32 4294967295, %s596_s16   ;;  %s388_s18 = sadd.s32 4294967294, %s596_s16   ;;  %s596_s16 = sphi %s631_s16, %s15_s16   ;;  %s592_s15 = sphi %s629_s15, %s791_s15   ;;  %s588_s14 = sphi %s627_s14, %s790_s14   ;;  %s584_s13 = sphi %s625_s13, %s789_s13   ;;  %s580_s12 = sphi %s623_s12, %s788_s12   ;;  %s576_s11 = sphi %s621_s11, %s787_s11   ;;  %s572_s10 = sphi %s619_s10, %s786_s10   ;;  %s568_s9 = sphi %s617_s9, %s785_s9  }
   0x6   : > { %s24_s19 = sadd.s32 1, %s588_s14  ;;  %s27_s20 = sadd.s32 1, %s592_s15 }
   0x7   : > { %p25_p0 = scmp.ge.s32.totalorder %s24_s19, 2  ;;  %p93_p1 = scmp.ne.s32.totalorder %s576_s11, %s572_s10 }
   0x8   : > { %p94_p2 = scmp.eq.s32.totalorder %s387_s17, 3  ;;  %p99_p4 = scmp.ne.s32.totalorder %s572_s10, %s568_s9 }
   0x9   : > { %s793_s19 = smov (%p25_p0, %s24_s19), 0  ;;  %s795_s20 = smov (!%p25_p0, %s27_s20), %s592_s15 }
   0xa   : > { %p666_p3 = por %p94_p2, %p93_p1  ;;  %p29_p5 = scmp.ge.s32.totalorder %s795_s20, 2 }
   0xb   : > { %p100_p6 = scmp.eq.s32.totalorder %s388_s18, 3  ;;  %p391_p7 = scmp.ge.s32.totalorder %s596_s16, 1 }
   0xc   : > { %p132_p8 = scmp.lt.s32.totalorder %s596_s16, 5  ;;  %s797_s20 = smov (%p29_p5, %s795_s20), 0 }
   0xd   : > { %p676_p9 = por %p100_p6, %p99_p4  ;;  %s80_s23 = ssub.s32 %s592_s15, %s797_s20 }
   0xe   : > { %p133_p10 = pnand %p391_p7, %p132_p8  ;;  %s83_s24 = sadd.s32 1, %s576_s11 }
   0xf   : > { %p81_p11 = scmp.eq.s32.totalorder %s80_s23, 0  ;;  %s154_s26 = sand.u32 (!%p133_p10), 1, %s572_s10   ;;  %v598_v0 = vmov (!%p133_p10), 0.0   ;;  %v498_v1 = vld [vmem:[%s781_s1] sm:$0xff] (!%p133_p10)   ;;  %v499_v2 = vld [vmem:[%s781_s1 + $0x8] sm:$0xff] (!%p133_p10)   ;;  %vm599_vm0 = vmmov (!%p133_p10), 0  }
  0x10   : > { %136 = sbr.rel (%p133_p10) target bundleno = 448 (0x1c0), region = 28  ;;  %412 = vmatprep.subr.bf16.mxu0 (!%p133_p10), %v598_v0  ;;  %420 = vmatprep.mubr.msk.bf16.mxu0 (!%p133_p10), %vm599_vm0, %v598_v0  ;;  %p156_p12 = scmp.lt.s32.totalorder (!%p133_p10), %s584_s13, 1  ;;  %v500_v3 = vld [vmem:[%s781_s1 + $0x10] sm:$0xff] (!%p133_p10)   ;;  %v501_v4 = vld [vmem:[%s781_s1 + $0x18] sm:$0xff] (!%p133_p10)   ;;  %vm198_vm1 = vcmask (!%p133_p10), 523264  }
  0x11   : > { %s684_s25 = scalar_select %p81_p11, %s576_s11, %s83_s24  }
  0x12   : > { %413 = vmatpush3.bf16.msra.mxu0 (!%p133_p10), %v498_v1  ;;  %p158_p13 = scmp.lt.s32.totalorder (!%p133_p10), %s580_s12, 1  ;;  %s710_s29 = scalar_lea.vmem (!%p133_p10), [#allocation4], %s154_s26 }
  0x13   : > { %414 = vmatprep.subr.bf16.mxu0 (!%p133_p10), %v598_v0  ;;  %p399_p0 = scmp.ne.s32.totalorder (!%p133_p10), %s580_s12, 0 }
  0x16   : > { %415 = vmatpush3.bf16.msra.mxu0 (!%p133_p10), %v499_v2 }
  0x17   : > { %s157_s3 = scalar_select %p156_p12, %s584_s13, 1  ;;  %416 = vmatprep.subr.bf16.mxu0 %v598_v0 }
  0x18   : > { %s159_s4 = scalar_select %p158_p13, %s580_s12, 1 }
  0x19   : > { %s392_s7 = sshll.u32 %s157_s3, 1  ;;  %vm256_vm3 = vcmask (!%p399_p0), 516096  }
  0x1a   : > { %s161_s8 = sadd.s32 %s392_s7, %s159_s4  ;;  %417 = vmatpush3.bf16.msra.mxu0 %v500_v3 }
  0x1b   : > { %s393_s17 = sshll.u32 %s161_s8, 2  ;;  %418 = vmatprep.subr.bf16.mxu0 %v598_v0 }
  0x1c   : > { %s163_s28 = scalar_lea.vmem %s780_s0, %s393_s17 }
  0x1d   : > { %v165_v5 = vld [vmem:[%s163_s28] sm:$0xf] }
  0x1e   : > { %419 = vmatpush3.bf16.msra.mxu0 %v501_v4 }
  0x21   : > { %421 = vmatmul.mubr.msk.bf16.vlgmr.msra.gmra.mrb[0].mxu0 %vm198_vm1, %v165_v5 }
  0xf4   : > { %v236_v6 = vpop.f32.mrb[0].mxu0 }
  0xf5   : > { %vm242_vm2 = vcmp.ge.f32.partialorder %v236_v6, 0.0  ;;  %v243_v7 = vmul.f32 0.01, %v236_v6  ;;  %v422_v8 = vpop.f32.mrb[1].mxu0 }
  0xf6   : > { %v239_v9 = vpop.f32.mrb[2].mxu0 }
  0xf7   : > { %v244_v10 = vsel %vm242_vm2, %v236_v6, %v243_v7  ;;  %v423_v11 = vpop.f32.mrb[3].mxu0 }
  0xf8   : > { %v245_v12 = vsel %vm198_vm1, %v244_v10, -inf }
  0xf9   : > { %v246_v13 = vrot.slane %v245_v12, 4 }
  0xfb   : > { %v247_v14 = vmax.f32 %v245_v12, %v246_v13 }
  0xfd   : > { %v248_v15 = vrot.slane %v247_v14, 2  ;;  %255 = sbr.rel (%p399_p0) target bundleno = 262 (0x106), region = 32 }
  0xff   : > { %v249_v16 = vmax.f32 %v247_v14, %v248_v15 }
 0x101   : > { %v250_v17 = vrot.slane %v249_v16, 1 }
 0x103   : > { %v251_v18 = vmax.f32 %v249_v16, %v250_v17 }
 0x105   : > { %257 = vst.msk [vmem:[#allocation2] sm:$0x1] %vm256_vm3, %v251_v18 }
 0x106 PF: > { %p400_p1 = scmp.le.s32.totalorder %s580_s12, 0 }
 0x107   : > { %vm264_vm4 = vcmask (!%p400_p1), 516096  }
 0x108   : > { %261 = sbr.rel (%p400_p1) target bundleno = 272 (0x110), region = 36 }
 0x10c   : > { %v262_v19 = vld [vmem:[#allocation2] sm:$0x1] (!%p400_p1) }
 0x10d   : > { %v263_v20 = vmax.f32 (!%p400_p1), %v262_v19, %v251_v18 }
 0x10f   : > { %265 = vst.msk [vmem:[#allocation2] sm:$0x1] %vm264_vm4, %v263_v20 }
 0x110 PF: > { %v266_v21 = vsel %vm198_vm1, %v244_v10, 0.0  ;;  %vm276_vm5 = vcmask (!%p399_p0), 516096  }
 0x111   : > { %v267_v22 = vrot.slane %v266_v21, 4 }
 0x113   : > { %v268_v23 = vadd.f32 %v267_v22, %v266_v21 }
 0x115   : > { %v269_v24 = vrot.slane %v268_v23, 2  ;;  %275 = sbr.rel (%p399_p0) target bundleno = 286 (0x11e), region = 40 }
 0x117   : > { %v270_v25 = vadd.f32 %v269_v24, %v268_v23 }
 0x119   : > { %v271_v26 = vrot.slane %v270_v25, 1 }
 0x11b   : > { %v272_v27 = vadd.f32 %v271_v26, %v270_v25 }
 0x11d   : > { %277 = vst.msk [vmem:[#allocation3] sm:$0x1] %vm276_vm5, %v272_v27 }
 0x11e PF: > { %280 = sbr.rel (%p400_p1) target bundleno = 296 (0x128), region = 44  ;;  %vm283_vm6 = vcmask (!%p400_p1), 516096  }
 0x124   : > { %v281_v28 = vld [vmem:[#allocation3] sm:$0x1] (!%p400_p1) }
 0x125   : > { %v282_v29 = vadd.f32 %v281_v28, %v272_v27 }
 0x127   : > { %284 = vst.msk [vmem:[#allocation3] sm:$0x1] %vm283_vm6, %v282_v29 }
 0x128 PF: > { %p403_p2 = scmp.ne.s32.totalorder %s580_s12, 1 }
 0x129   : > { %v293_v31 = vlaneseq (!%p403_p2)  ;;  %s600_s30 = smov (!%p403_p2), 64   ;;  %v289_v36 = vld [vmem:[#allocation2] sm:$0x1] (!%p403_p2) }
 0x12a   : > { %288 = sbr.rel (%p403_p2) target bundleno = 424 (0x1a8), region = 48 }
 0x12b   : > { %v294_v33 = vshrl.u32 (!%p403_p2), %v293_v31, 7 }
 0x12d   : > { %v295_v34 = vsub.s32 (!%p403_p2), 0, %v294_v33 }
 0x12e   : > { %v290_v30 = vld [vmem:[#allocation3] sm:$0x1] (!%p403_p2) }
 0x12f   : > { %v291_v32 = vmul.f32 (!%p403_p2), 0.0625, %v290_v30 }
 0x131   : > { %v296_v35 = vrot.slane %v291_v32, %v295_v34 }
 0x133   : > { %297 = vrot.lane.b32.xlu0 %v296_v35, %s600_s30 }
 0x1a5   : > { %v298_v37 = vpop.permute.xlu0 %297 }
 0x1a6   : > { %v300_v38 = vsel %vm198_vm1, %v289_v36, %v298_v37 }
 0x1a7   : > { %301 = vst [vmem:[%s710_s29] sm:$0x1] %v300_v38 }
 0x1a8 PF: > { %s404_s12 = sshll.u32 %s584_s13, 4  ;;  %s315_s6 = sshll.u32 %s710_s29, 4  ;;  %s316_s6 = int_to_ptr.vmem [resolvable:$true] %s315_s6 }
 0x1a9   : > { %s730_s5 = scalar_lea.hbm %s782_s2, %s404_s12  ;;  %s303_s7 = scalar_lea.sflag [#allocation5], %s154_s26 }
 0x1aa   : > { %s502_s8 = scalar_lea.vmem %s316_s6, 16  ;;  %s601_s17 = smov [#allocation4]  }
 0x1ab   : > { %p503_p4 = scmp.ne.s32.totalorder %s316_s6, %s502_s8  ;;  %s506_s18 = sshll.u32 %s601_s17, 4  ;;  %s507_s18 = int_to_ptr.vmem [resolvable:$false] %s506_s18 }
 0x1ac   : > { %s508_s23 = scalar_lea.vmem %s507_s18, 32  ;;  %p509_p7 = scmp.lt.s32.totalorder %s316_s6, %s507_s18 }
 0x1ad   : > { %p504_p5 = pnand %p503_p4, %p666_p3  ;;  %p510_p8 = scmp.lt.s32.totalorder %s508_s23, %s502_s8 }
 0x1af   : > { %p505_p6 = pneg %p504_p5  ;;  %p511_p10 = por %p510_p8, %p509_p7 }
 0x1b1   : > { %p512_p11 = pnand %p511_p10, %p505_p6 }
 0x1b3   : > { %515 = shalt.err (!%p512_p11)
}
 0x1b4   : > { %s516_s13 = scalar_lea.hbm %s730_s5, 16  ;;  %s520_s27 = scalar_lea.hbm %s782_s2, 32 }
 0x1b5   : > { %p517_p12 = scmp.ne.s32.totalorder %s730_s5, %s516_s13  ;;  %p521_p1 = scmp.lt.u32.totalorder %s730_s5, %s782_s2 }
 0x1b6   : > { %p522_p2 = scmp.lt.u32.totalorder %s520_s27, %s516_s13  ;;  %p524_p5 = scmp.lt.u32.totalorder %s516_s13, %s730_s5 }
 0x1b7   : > { %p518_p13 = pnand %p517_p12, %p666_p3 }
 0x1b8   : > { %p523_p4 = por %p522_p2, %p521_p1 }
 0x1b9   : > { %p519_p0 = pneg %p518_p13 }
 0x1ba   : > { %p525_p6 = por %p524_p5, %p523_p4 }
 0x1bc   : > { %p526_p7 = pnand %p525_p6, %p519_p0 }
 0x1be   : > { %529 = shalt.err (!%p526_p7)
}
 0x1bf   : > { %424 = dma.vmem_to_hbm [thread:$0]  (%p666_p3), %s316_s6, 16, %s730_s5, %s303_s7  }
 0x1c0 PF: > { %p430_p8 = scmp.ge.s32.totalorder %s596_s16, 2  ;;  %s327_s30 = sand.u32 1, %s568_s9  }
 0x1c1   : > { %s328_s12 = scalar_lea.sflag [#allocation5], %s327_s30 }
 0x1c2   : > { %p427_p10 = pnand %p430_p8, %p676_p9 }
 0x1c4   : > { %563 = dma.done.wait (!%p427_p10), %s328_s12, 16  }
 0x1c5   : > { %565 = vsyncadd (!%p427_p10), %s328_s12, 4294967280  ;;  %s15_s16 = sadd.s32 1, %s596_s16   ;;  %s785_s9 = smov %s572_s10 }
 0x1c6   : > { %p12_p11 = scmp.ge.s32.totalorder %s15_s16, 6   ;;  %s786_s10 = smov %s576_s11 }
 0x1c7   : > { %s787_s11 = smov %s684_s25  ;;  %s788_s12 = smov %s588_s14 }
 0x1c8   : > { %s789_s13 = smov %s592_s15  ;;  %s790_s14 = smov %s793_s19 }
 0x1c9   : > { %s791_s15 = smov %s797_s20  ;;  %14 = sbr.rel (!%p12_p11) target bundleno = 5 (0x5), region = 83 }
 0x1d0   :  { %332 = vsyncpa [#allocation5], 1 }
 0x1d1   :  { %334 = vsyncpa [#allocation5 + $0x1], 1 }

</bundles_post_ra>
